<compile_context>
chip_gen: v5e
topology: v5e:2x2
jax: 0.10.0
libtpu: 0.0.40
codegen_flags: <defaults>
</compile_context>

<pallas_src>
import functools
import math

import numpy as np

import jax
import jax.numpy as jnp
from jax.experimental import pallas as pl
from jax.experimental.pallas import tpu as pltpu


# Padded half-width (in lanes) of one even/odd-w output column group, per conv.
# conv1 needs 14*6=84 live lanes, conv2 needs 5*16=80; pad to 128 so every slice of
# the matmul accumulator starts on a vreg lane boundary.
_HALF1 = 128
_HALF2 = 128
_BW1 = 2 * _HALF1   # column-block width for one conv1 output row (even-w | odd-w)
_BW2 = 2 * _HALF2


# --------------------------- parameter packing (host, once) ---------------------------


def _banded(w_oihw, w_in, c_in, w_out, c_out, k, half):
    """Per-ki banded matrices turning one flattened input row into one conv-output row.

    Returns a list (over ki) of [w_in*c_in, 2*half] matrices M_ki with
      M_ki[(wout+kj)*c_in + cin, (wout%2)*half + (wout//2)*c_out + cout] = w[cout,cin,ki,kj]
    so that  conv_row[h] = sum_ki  x_row[h+ki] @ M_ki,  with output columns grouped as
    (even wout block | odd wout block) for the lane-sliced W max-pool.
    """
    mats = []
    for ki in range(k):
        m = np.zeros((w_in * c_in, 2 * half), np.float32)
        for wout in range(w_out):
            col0 = (wout % 2) * half + (wout // 2) * c_out
            for kj in range(k):
                win = wout + kj
                for cin in range(c_in):
                    m[win * c_in + cin, col0:col0 + c_out] += w_oihw[:, cin, ki, kj]
        mats.append(m)
    return mats


def pack_params(params, compute_dtype=jnp.bfloat16):
    """Pack PyTorch-layout parameters into the kernel's matmul operands (done once)."""
    w1 = np.asarray(params["conv1_w"], np.float32)   # [6, 3, 5, 5]
    b1 = np.asarray(params["conv1_b"], np.float32)   # [6]
    w2 = np.asarray(params["conv2_w"], np.float32)   # [16, 6, 5, 5]
    b2 = np.asarray(params["conv2_b"], np.float32)   # [16]
    f1w = np.asarray(params["fc1_w"], np.float32)    # [120, 400]  (in order c*25 + h*5 + w)
    f1b = np.asarray(params["fc1_b"], np.float32)
    f2w = np.asarray(params["fc2_w"], np.float32)    # [84, 120]
    f2b = np.asarray(params["fc2_b"], np.float32)
    f3w = np.asarray(params["fc3_w"], np.float32)    # [C, 84]
    f3b = np.asarray(params["fc3_b"], np.float32)

    m1 = _banded(w1, w_in=32, c_in=3, w_out=28, c_out=6, k=5, half=_HALF1)   # 5 x [96, 256]
    m2 = _banded(w2, w_in=14, c_in=6, w_out=10, c_out=16, k=5, half=_HALF2)  # 5 x [84, 256]

    # conv1: operand m = (j0, r) is the input-row group r (rows h%4 == r), shifted by j0.
    # Its 4 output column blocks are the conv rows (2s+a) of pooled row 2q+s; the tap is
    # ki = 4*j0 + r - (2s + a) when that lies in [0, 5).
    w1big = np.zeros((8, 96, 4 * _BW1), np.float32)
    for j0 in range(2):
        for r in range(4):
            mi = j0 * 4 + r
            for s in range(2):
                for a in range(2):
                    ki = 4 * j0 + r - (2 * s + a)
                    if 0 <= ki < 5:
                        blk = 2 * s + a
                        w1big[mi, :, blk * _BW1:(blk + 1) * _BW1] = m1[ki]

    # conv2: operand m = (j0, s) is pooled1 H-parity group s shifted by j0; column block a
    # is conv2 row (2P + a); tap ki = 2*j0 + s - a when in [0, 5).
    w2big = np.zeros((6, 84, 2 * _BW2), np.float32)
    for j0 in range(3):
        for s in range(2):
            mi = j0 * 2 + s
            for a in range(2):
                ki = 2 * j0 + s - a
                if 0 <= ki < 5:
                    w2big[mi, :, a * _BW2:(a + 1) * _BW2] = m2[ki]

    # fc1: one [80, 120] slab per pooled2 spatial row h; our row layout is (w, c) minor,
    # PyTorch's flatten of the NCHW view is index c*25 + h*5 + w.
    wf1 = np.zeros((5, 80, 120), np.float32)
    for h in range(5):
        for w in range(5):
            for c in range(16):
                wf1[h, w * 16 + c, :] = f1w[:, c * 25 + h * 5 + w]

    packed = {
        "w1": w1big, "b1": np.tile(b1, 14)[None, :],      # bias tiled over the 14 pooled w's
        "w2": w2big, "b2": np.tile(b2, 5)[None, :],
        "wf1": wf1, "bf1": f1b[None, :],
        "wf2": f2w.T.copy(), "bf2": f2b[None, :],
        "wf3": f3w.T.copy(), "bf3": f3b[None, :],
    }
    out = {}
    for k_, v in packed.items():
        # weights in compute dtype (bf16 MXU path), biases kept f32 (added to f32 accum).
        out[k_] = jnp.asarray(v, compute_dtype if k_.startswith("w") else jnp.float32)
    return out


# --------------------------------- fused forward ---------------------------------


def cnn_svhn_forward(x_nchw, packed, *, block_batch=16):
    """Full CNNSVHN forward: x [B, 3, 32, 32] f32 -> log-probs [B, num_classes] f32."""
    B = x_nchw.shape[0]
    C = packed["wf3"].shape[1]
    cdtype = packed["w1"].dtype

    bblk = max(1, min(block_batch, B))        # images per grid step
    nb = -(-B // bblk)                        # number of batch blocks
    bpad = nb * bblk
    M = bblk * 8                              # matmul rows per step (8 rows / image)
    mpad = M + 8                              # +8 pad rows so shifted slices stay in-bounds

    # ---- XLA glue: pure re-layout of the raw input (no amplification, ~12 KB/image) ----
    xh = jnp.transpose(x_nchw, (0, 2, 3, 1)).reshape(B, 32, 96)          # NHWC, (W,C) in lanes
    if bpad != B:
        xh = jnp.concatenate([xh, jnp.zeros((bpad - B, 32, 96), xh.dtype)], axis=0)
    xg = jnp.stack([xh[:, r::4, :] for r in range(4)], axis=1)           # [Bpad, 4, 8, 96]
    xb = xg.reshape(nb, bblk, 4, 8, 96).transpose(0, 2, 1, 3, 4).reshape(nb, 4, M, 96)
    xb = jnp.pad(xb, ((0, 0), (0, 0), (0, 8), (0, 0))).astype(cdtype)    # [nb, 4, M+8, 96]

    def kernel(x_ref, w1_ref, b1_ref, w2_ref, b2_ref,
               wf1_ref, bf1_ref, wf2_ref, bf2_ref, wf3_ref, bf3_ref,
               out_ref, a1_scr, p2_scr):
        f32 = jnp.float32

        # -------- conv1 + bias + ReLU + 2x2 max-pool (8 matmuls, pools are lane maxes) ---
        acc1 = None
        for j0 in range(2):
            for r in range(4):
                lhs = x_ref[r, pl.ds(j0, M), :]                            # [M, 96]
                t = jnp.dot(lhs, w1_ref[j0 * 4 + r], preferred_element_type=f32)
                acc1 = t if acc1 is None else acc1 + t                     # [M, 4*_BW1]
        for s in range(2):
            lo = (2 * s) * _BW1
            pair = jnp.maximum(acc1[:, lo:lo + _BW1],
                               acc1[:, lo + _BW1:lo + 2 * _BW1])           # H max-pool
            pooled = jnp.maximum(pair[:, :_HALF1], pair[:, _HALF1:_BW1])[:, :84]  # W max-pool
            a1 = jnp.maximum(pooled + b1_ref[...], 0.0)                    # bias + ReLU
            a1_scr[s, pl.ds(0, M), :] = a1.astype(cdtype)
            a1_scr[s, pl.ds(M, 8), :] = jnp.zeros((8, 84), cdtype)

        # -------- conv2 + bias + ReLU + 2x2 max-pool (6 matmuls) -------------------------
        acc2 = None
        for j0 in range(3):
            for s in range(2):
                lhs = a1_scr[s, pl.ds(j0, M), :]                           # [M, 84]
                t = jnp.dot(lhs, w2_ref[j0 * 2 + s], preferred_element_type=f32)
                acc2 = t if acc2 is None else acc2 + t                     # [M, 2*_BW2]
        pair2 = jnp.maximum(acc2[:, :_BW2], acc2[:, _BW2:2 * _BW2])
        pooled2 = jnp.maximum(pair2[:, :_HALF2], pair2[:, _HALF2:_BW2])[:, :80]
        p2 = jnp.maximum(pooled2 + b2_ref[...], 0.0)
        p2_scr[pl.ds(0, M), :] = p2.astype(cdtype)
        p2_scr[pl.ds(M, 8), :] = jnp.zeros((8, 80), cdtype)

        # -------- fc1 (400->120) as 5 row-shifted matmuls, + ReLU ------------------------
        h1 = None
        for hrow in range(5):
            t = jnp.dot(p2_scr[pl.ds(hrow, M), :], wf1_ref[hrow], preferred_element_type=f32)
            h1 = t if h1 is None else h1 + t
        h1 = jnp.maximum(h1 + bf1_ref[...], 0.0).astype(cdtype)

        # -------- fc2 + ReLU, fc3, log_softmax -------------------------------------------
        h2 = jnp.maximum(
            jnp.dot(h1, wf2_ref[...], preferred_element_type=f32) + bf2_ref[...], 0.0
        ).astype(cdtype)
        logits = jnp.dot(h2, wf3_ref[...], preferred_element_type=f32) + bf3_ref[...]
        zmax = jnp.max(logits, axis=1, keepdims=True)
        z = logits - zmax
        lse = jnp.log(jnp.sum(jnp.exp(z), axis=1, keepdims=True))
        out_ref[...] = z - lse                                             # valid rows: ::8

    const2 = lambda i: (0, 0)
    const3 = lambda i: (0, 0, 0)
    out = pl.pallas_call(
        kernel,
        out_shape=jax.ShapeDtypeStruct((nb * M, C), jnp.float32),
        grid=(nb,),
        in_specs=[
            pl.BlockSpec((None, 4, mpad, 96), lambda i: (i, 0, 0, 0)),     # input block
            pl.BlockSpec((8, 96, 4 * _BW1), const3),                       # conv1 packed W
            pl.BlockSpec((1, 84), const2),                                 # conv1 bias (tiled)
            pl.BlockSpec((6, 84, 2 * _BW2), const3),                       # conv2 packed W
            pl.BlockSpec((1, 80), const2),                                 # conv2 bias (tiled)
            pl.BlockSpec((5, 80, 120), const3),                            # fc1 packed W
            pl.BlockSpec((1, 120), const2),
            pl.BlockSpec((120, 84), const2),                               # fc2 W^T
            pl.BlockSpec((1, 84), const2),
            pl.BlockSpec((84, C), const2),                                 # fc3 W^T
            pl.BlockSpec((1, C), const2),
        ],
        out_specs=pl.BlockSpec((M, C), lambda i: (i, 0)),
        scratch_shapes=[
            pltpu.VMEM((2, mpad, 84), cdtype),    # pooled conv1 activation (H-parity split)
            pltpu.VMEM((mpad, 80), cdtype),       # pooled conv2 activation
        ],
        compiler_params=pltpu.CompilerParams(
            dimension_semantics=("parallel",),
            vmem_limit_bytes=32 * 1024 * 1024,
        ),
    )(xb, packed["w1"], packed["b1"], packed["w2"], packed["b2"],
      packed["wf1"], packed["bf1"], packed["wf2"], packed["bf2"],
      packed["wf3"], packed["bf3"])

    # One valid logits row per image (every 8th row); the rest are padding rows.
    return out[::8][:B]


# --------------------------------- reference & init ---------------------------------


def init_params(key, num_classes):
    """PyTorch-default-style init in PyTorch-native layouts."""
    def u(k, shape, fan_in):
        bound = 1.0 / math.sqrt(fan_in)
        return jax.random.uniform(k, shape, jnp.float32, -bound, bound)

    ks = jax.random.split(key, 10)
    return {
        "conv1_w": u(ks[0], (6, 3, 5, 5), 3 * 25), "conv1_b": u(ks[1], (6,), 3 * 25),
        "conv2_w": u(ks[2], (16, 6, 5, 5), 6 * 25), "conv2_b": u(ks[3], (16,), 6 * 25),
        "fc1_w": u(ks[4], (120, 400), 400), "fc1_b": u(ks[5], (120,), 400),
        "fc2_w": u(ks[6], (84, 120), 120), "fc2_b": u(ks[7], (84,), 120),
        "fc3_w": u(ks[8], (num_classes, 84), 84), "fc3_b": u(ks[9], (num_classes,), 84),
    }


def reference_forward(x, params):
    """Pure-JAX (f32) reference of the PyTorch module, for correctness checking."""
    dn = ("NCHW", "OIHW", "NCHW")
    y = jax.lax.conv_general_dilated(x, params["conv1_w"], (1, 1), "VALID",
                                     dimension_numbers=dn)
    y = jax.nn.relu(y + params["conv1_b"][None, :, None, None])
    y = jax.lax.reduce_window(y, -jnp.inf, jax.lax.max, (1, 1, 2, 2), (1, 1, 2, 2), "VALID")
    y = jax.lax.conv_general_dilated(y, params["conv2_w"], (1, 1), "VALID",
                                     dimension_numbers=dn)
    y = jax.nn.relu(y + params["conv2_b"][None, :, None, None])
    y = jax.lax.reduce_window(y, -jnp.inf, jax.lax.max, (1, 1, 2, 2), (1, 1, 2, 2), "VALID")
    y = y.reshape(y.shape[0], -1)                       # (c, h, w) flatten, like torch .view
    y = jax.nn.relu(y @ params["fc1_w"].T + params["fc1_b"])
    y = jax.nn.relu(y @ params["fc2_w"].T + params["fc2_b"])
    y = y @ params["fc3_w"].T + params["fc3_b"]
    return jax.nn.log_softmax(y, axis=-1)


# --------------------------------------- main ---------------------------------------

if __name__ == "__main__":
    num_classes = 10  # args.num_classes

    key = jax.random.PRNGKey(0)
    kx, kp = jax.random.split(key)
    batch = 2
    x = jax.random.normal(kx, (batch, 3, 32, 32), jnp.float32)   # NCHW, like PyTorch

    params = init_params(kp, num_classes)
    packed = pack_params(params, compute_dtype=jnp.bfloat16)     # done once, off the hot path

    fwd = jax.jit(functools.partial(cnn_svhn_forward, packed=packed))
    out = jax.block_until_ready(fwd(x))

    assert out.shape == (batch, num_classes), out.shape
    assert bool(jnp.all(jnp.isfinite(out)))
    row_sums = jnp.exp(out).sum(axis=1)
    assert bool(jnp.allclose(row_sums, 1.0, atol=1e-3)), row_sums

    ref = reference_forward(x, params)
    err = float(jnp.max(jnp.abs(out - ref)))
    # bf16 weights/activations vs f32 reference -> small deviation; real bugs would be O(1).
    assert err < 0.25, f"max |pallas - reference| = {err}"

    print("KERNEL_OK")
</pallas_src>

<mosaic_0001>
module attributes {stable_mosaic.version = 11 : i64} {
  func.func @kernel(%arg0: i32, %arg1: memref<1x4x24x96xbf16, #tpu.memory_space<vmem>>, %arg2: memref<8x96x1024xbf16, #tpu.memory_space<vmem>>, %arg3: memref<1x84xf32, #tpu.memory_space<vmem>>, %arg4: memref<6x84x512xbf16, #tpu.memory_space<vmem>>, %arg5: memref<1x80xf32, #tpu.memory_space<vmem>>, %arg6: memref<5x80x120xbf16, #tpu.memory_space<vmem>>, %arg7: memref<1x120xf32, #tpu.memory_space<vmem>>, %arg8: memref<120x84xbf16, #tpu.memory_space<vmem>>, %arg9: memref<1x84xf32, #tpu.memory_space<vmem>>, %arg10: memref<84x10xbf16, #tpu.memory_space<vmem>>, %arg11: memref<1x10xf32, #tpu.memory_space<vmem>>, %arg12: memref<16x10xf32, #tpu.memory_space<vmem>>, %arg13: memref<2x24x84xbf16, #tpu.memory_space<vmem>>, %arg14: memref<24x80xbf16, #tpu.memory_space<vmem>>) attributes {dimension_semantics = [#tpu.dimension_semantics<parallel>], iteration_bounds = array<i64: 1>, scalar_prefetch = 0 : i64, scratch_operands = 2 : i64, tpu.core_type = #tpu.core_type<tc>, window_params = [{transform_indices = @transform_0, window_bounds = array<i64: 1, 4, 24, 96>}, {pipeline_mode = #tpu.pipeline_mode<synchronous>, transform_indices = @transform_1, window_bounds = array<i64: 8, 96, 1024>}, {pipeline_mode = #tpu.pipeline_mode<synchronous>, transform_indices = @transform_2, window_bounds = array<i64: 1, 84>}, {pipeline_mode = #tpu.pipeline_mode<synchronous>, transform_indices = @transform_3, window_bounds = array<i64: 6, 84, 512>}, {pipeline_mode = #tpu.pipeline_mode<synchronous>, transform_indices = @transform_4, window_bounds = array<i64: 1, 80>}, {pipeline_mode = #tpu.pipeline_mode<synchronous>, transform_indices = @transform_5, window_bounds = array<i64: 5, 80, 120>}, {pipeline_mode = #tpu.pipeline_mode<synchronous>, transform_indices = @transform_6, window_bounds = array<i64: 1, 120>}, {pipeline_mode = #tpu.pipeline_mode<synchronous>, transform_indices = @transform_7, window_bounds = array<i64: 120, 84>}, {pipeline_mode = #tpu.pipeline_mode<synchronous>, transform_indices = @transform_8, window_bounds = array<i64: 1, 84>}, {pipeline_mode = #tpu.pipeline_mode<synchronous>, transform_indices = @transform_9, window_bounds = array<i64: 84, 10>}, {pipeline_mode = #tpu.pipeline_mode<synchronous>, transform_indices = @transform_10, window_bounds = array<i64: 1, 10>}, {transform_indices = @transform_11, window_bounds = array<i64: 16, 10>}]} {
    %c0 = arith.constant 0 : index
    %c0_0 = arith.constant 0 : index
    %c0_1 = arith.constant 0 : index
    %c0_2 = arith.constant 0 : index
    %0 = vector.load %arg1[%c0, %c0_0, %c0_1, %c0_2] : memref<1x4x24x96xbf16, #tpu.memory_space<vmem>>, vector<1x1x16x96xbf16>
    %1 = vector.shape_cast %0 : vector<1x1x16x96xbf16> to vector<16x96xbf16>
    %c0_3 = arith.constant 0 : index
    %c0_4 = arith.constant 0 : index
    %c0_5 = arith.constant 0 : index
    %2 = vector.load %arg2[%c0_3, %c0_4, %c0_5] : memref<8x96x1024xbf16, #tpu.memory_space<vmem>>, vector<1x96x1024xbf16>
    %3 = vector.shape_cast %2 : vector<1x96x1024xbf16> to vector<96x1024xbf16>
    %cst = arith.constant dense<0.000000e+00> : vector<16x1024xf32>
    %4 = tpu.matmul %1, %3, %cst {dimension_numbers = #tpu.dot_dimension_numbers<[1], [0], [0], [1], [0, 0, 1, 1], [], []>} : vector<16x96xbf16>, vector<96x1024xbf16>, vector<16x1024xf32> -> vector<16x1024xf32>
    %c0_6 = arith.constant 0 : index
    %c1 = arith.constant 1 : index
    %c0_7 = arith.constant 0 : index
    %c0_8 = arith.constant 0 : index
    %5 = vector.load %arg1[%c0_6, %c1, %c0_7, %c0_8] : memref<1x4x24x96xbf16, #tpu.memory_space<vmem>>, vector<1x1x16x96xbf16>
    %6 = vector.shape_cast %5 : vector<1x1x16x96xbf16> to vector<16x96xbf16>
    %c1_9 = arith.constant 1 : index
    %c0_10 = arith.constant 0 : index
    %c0_11 = arith.constant 0 : index
    %7 = vector.load %arg2[%c1_9, %c0_10, %c0_11] : memref<8x96x1024xbf16, #tpu.memory_space<vmem>>, vector<1x96x1024xbf16>
    %8 = vector.shape_cast %7 : vector<1x96x1024xbf16> to vector<96x1024xbf16>
    %cst_12 = arith.constant dense<0.000000e+00> : vector<16x1024xf32>
    %9 = tpu.matmul %6, %8, %cst_12 {dimension_numbers = #tpu.dot_dimension_numbers<[1], [0], [0], [1], [0, 0, 1, 1], [], []>} : vector<16x96xbf16>, vector<96x1024xbf16>, vector<16x1024xf32> -> vector<16x1024xf32>
    %10 = arith.addf %4, %9 : vector<16x1024xf32>
    %c0_13 = arith.constant 0 : index
    %c2 = arith.constant 2 : index
    %c0_14 = arith.constant 0 : index
    %c0_15 = arith.constant 0 : index
    %11 = vector.load %arg1[%c0_13, %c2, %c0_14, %c0_15] : memref<1x4x24x96xbf16, #tpu.memory_space<vmem>>, vector<1x1x16x96xbf16>
    %12 = vector.shape_cast %11 : vector<1x1x16x96xbf16> to vector<16x96xbf16>
    %c2_16 = arith.constant 2 : index
    %c0_17 = arith.constant 0 : index
    %c0_18 = arith.constant 0 : index
    %13 = vector.load %arg2[%c2_16, %c0_17, %c0_18] : memref<8x96x1024xbf16, #tpu.memory_space<vmem>>, vector<1x96x1024xbf16>
    %14 = vector.shape_cast %13 : vector<1x96x1024xbf16> to vector<96x1024xbf16>
    %cst_19 = arith.constant dense<0.000000e+00> : vector<16x1024xf32>
    %15 = tpu.matmul %12, %14, %cst_19 {dimension_numbers = #tpu.dot_dimension_numbers<[1], [0], [0], [1], [0, 0, 1, 1], [], []>} : vector<16x96xbf16>, vector<96x1024xbf16>, vector<16x1024xf32> -> vector<16x1024xf32>
    %16 = arith.addf %10, %15 : vector<16x1024xf32>
    %c0_20 = arith.constant 0 : index
    %c3 = arith.constant 3 : index
    %c0_21 = arith.constant 0 : index
    %c0_22 = arith.constant 0 : index
    %17 = vector.load %arg1[%c0_20, %c3, %c0_21, %c0_22] : memref<1x4x24x96xbf16, #tpu.memory_space<vmem>>, vector<1x1x16x96xbf16>
    %18 = vector.shape_cast %17 : vector<1x1x16x96xbf16> to vector<16x96xbf16>
    %c3_23 = arith.constant 3 : index
    %c0_24 = arith.constant 0 : index
    %c0_25 = arith.constant 0 : index
    %19 = vector.load %arg2[%c3_23, %c0_24, %c0_25] : memref<8x96x1024xbf16, #tpu.memory_space<vmem>>, vector<1x96x1024xbf16>
    %20 = vector.shape_cast %19 : vector<1x96x1024xbf16> to vector<96x1024xbf16>
    %cst_26 = arith.constant dense<0.000000e+00> : vector<16x1024xf32>
    %21 = tpu.matmul %18, %20, %cst_26 {dimension_numbers = #tpu.dot_dimension_numbers<[1], [0], [0], [1], [0, 0, 1, 1], [], []>} : vector<16x96xbf16>, vector<96x1024xbf16>, vector<16x1024xf32> -> vector<16x1024xf32>
    %22 = arith.addf %16, %21 : vector<16x1024xf32>
    %c0_27 = arith.constant 0 : index
    %c0_28 = arith.constant 0 : index
    %c1_29 = arith.constant 1 : index
    %c0_30 = arith.constant 0 : index
    %23 = vector.load %arg1[%c0_27, %c0_28, %c1_29, %c0_30] : memref<1x4x24x96xbf16, #tpu.memory_space<vmem>>, vector<1x1x16x96xbf16>
    %24 = vector.shape_cast %23 : vector<1x1x16x96xbf16> to vector<16x96xbf16>
    %c4 = arith.constant 4 : index
    %c0_31 = arith.constant 0 : index
    %c0_32 = arith.constant 0 : index
    %25 = vector.load %arg2[%c4, %c0_31, %c0_32] : memref<8x96x1024xbf16, #tpu.memory_space<vmem>>, vector<1x96x1024xbf16>
    %26 = vector.shape_cast %25 : vector<1x96x1024xbf16> to vector<96x1024xbf16>
    %cst_33 = arith.constant dense<0.000000e+00> : vector<16x1024xf32>
    %27 = tpu.matmul %24, %26, %cst_33 {dimension_numbers = #tpu.dot_dimension_numbers<[1], [0], [0], [1], [0, 0, 1, 1], [], []>} : vector<16x96xbf16>, vector<96x1024xbf16>, vector<16x1024xf32> -> vector<16x1024xf32>
    %28 = arith.addf %22, %27 : vector<16x1024xf32>
    %c0_34 = arith.constant 0 : index
    %c1_35 = arith.constant 1 : index
    %c1_36 = arith.constant 1 : index
    %c0_37 = arith.constant 0 : index
    %29 = vector.load %arg1[%c0_34, %c1_35, %c1_36, %c0_37] : memref<1x4x24x96xbf16, #tpu.memory_space<vmem>>, vector<1x1x16x96xbf16>
    %30 = vector.shape_cast %29 : vector<1x1x16x96xbf16> to vector<16x96xbf16>
    %c5 = arith.constant 5 : index
    %c0_38 = arith.constant 0 : index
    %c0_39 = arith.constant 0 : index
    %31 = vector.load %arg2[%c5, %c0_38, %c0_39] : memref<8x96x1024xbf16, #tpu.memory_space<vmem>>, vector<1x96x1024xbf16>
    %32 = vector.shape_cast %31 : vector<1x96x1024xbf16> to vector<96x1024xbf16>
    %cst_40 = arith.constant dense<0.000000e+00> : vector<16x1024xf32>
    %33 = tpu.matmul %30, %32, %cst_40 {dimension_numbers = #tpu.dot_dimension_numbers<[1], [0], [0], [1], [0, 0, 1, 1], [], []>} : vector<16x96xbf16>, vector<96x1024xbf16>, vector<16x1024xf32> -> vector<16x1024xf32>
    %34 = arith.addf %28, %33 : vector<16x1024xf32>
    %c0_41 = arith.constant 0 : index
    %c2_42 = arith.constant 2 : index
    %c1_43 = arith.constant 1 : index
    %c0_44 = arith.constant 0 : index
    %35 = vector.load %arg1[%c0_41, %c2_42, %c1_43, %c0_44] : memref<1x4x24x96xbf16, #tpu.memory_space<vmem>>, vector<1x1x16x96xbf16>
    %36 = vector.shape_cast %35 : vector<1x1x16x96xbf16> to vector<16x96xbf16>
    %c6 = arith.constant 6 : index
    %c0_45 = arith.constant 0 : index
    %c0_46 = arith.constant 0 : index
    %37 = vector.load %arg2[%c6, %c0_45, %c0_46] : memref<8x96x1024xbf16, #tpu.memory_space<vmem>>, vector<1x96x1024xbf16>
    %38 = vector.shape_cast %37 : vector<1x96x1024xbf16> to vector<96x1024xbf16>
    %cst_47 = arith.constant dense<0.000000e+00> : vector<16x1024xf32>
    %39 = tpu.matmul %36, %38, %cst_47 {dimension_numbers = #tpu.dot_dimension_numbers<[1], [0], [0], [1], [0, 0, 1, 1], [], []>} : vector<16x96xbf16>, vector<96x1024xbf16>, vector<16x1024xf32> -> vector<16x1024xf32>
    %40 = arith.addf %34, %39 : vector<16x1024xf32>
    %c0_48 = arith.constant 0 : index
    %c3_49 = arith.constant 3 : index
    %c1_50 = arith.constant 1 : index
    %c0_51 = arith.constant 0 : index
    %41 = vector.load %arg1[%c0_48, %c3_49, %c1_50, %c0_51] : memref<1x4x24x96xbf16, #tpu.memory_space<vmem>>, vector<1x1x16x96xbf16>
    %42 = vector.shape_cast %41 : vector<1x1x16x96xbf16> to vector<16x96xbf16>
    %c7 = arith.constant 7 : index
    %c0_52 = arith.constant 0 : index
    %c0_53 = arith.constant 0 : index
    %43 = vector.load %arg2[%c7, %c0_52, %c0_53] : memref<8x96x1024xbf16, #tpu.memory_space<vmem>>, vector<1x96x1024xbf16>
    %44 = vector.shape_cast %43 : vector<1x96x1024xbf16> to vector<96x1024xbf16>
    %cst_54 = arith.constant dense<0.000000e+00> : vector<16x1024xf32>
    %45 = tpu.matmul %42, %44, %cst_54 {dimension_numbers = #tpu.dot_dimension_numbers<[1], [0], [0], [1], [0, 0, 1, 1], [], []>} : vector<16x96xbf16>, vector<96x1024xbf16>, vector<16x1024xf32> -> vector<16x1024xf32>
    %46 = arith.addf %40, %45 : vector<16x1024xf32>
    %47 = vector.extract_strided_slice %46 {offsets = [0, 0], sizes = [16, 256], strides = [1, 1]} : vector<16x1024xf32> to vector<16x256xf32>
    %48 = vector.extract_strided_slice %46 {offsets = [0, 256], sizes = [16, 256], strides = [1, 1]} : vector<16x1024xf32> to vector<16x256xf32>
    %49 = arith.maximumf %47, %48 : vector<16x256xf32>
    %50 = vector.extract_strided_slice %49 {offsets = [0, 0], sizes = [16, 128], strides = [1, 1]} : vector<16x256xf32> to vector<16x128xf32>
    %51 = vector.extract_strided_slice %49 {offsets = [0, 128], sizes = [16, 128], strides = [1, 1]} : vector<16x256xf32> to vector<16x128xf32>
    %52 = arith.maximumf %50, %51 : vector<16x128xf32>
    %53 = vector.extract_strided_slice %52 {offsets = [0, 0], sizes = [16, 84], strides = [1, 1]} : vector<16x128xf32> to vector<16x84xf32>
    %c0_55 = arith.constant 0 : index
    %c0_56 = arith.constant 0 : index
    %54 = vector.load %arg3[%c0_55, %c0_56] : memref<1x84xf32, #tpu.memory_space<vmem>>, vector<1x84xf32>
    %55 = vector.broadcast %54 : vector<1x84xf32> to vector<16x84xf32>
    %56 = arith.addf %53, %55 : vector<16x84xf32>
    %cst_57 = arith.constant 0.000000e+00 : f32
    %57 = vector.broadcast %cst_57 : f32 to vector<16x84xf32>
    %58 = arith.maximumf %56, %57 : vector<16x84xf32>
    %59 = arith.truncf %58 : vector<16x84xf32> to vector<16x84xbf16>
    %c0_58 = arith.constant 0 : index
    %c0_59 = arith.constant 0 : index
    %c0_60 = arith.constant 0 : index
    %60 = vector.load %arg13[%c0_58, %c0_59, %c0_60] : memref<2x24x84xbf16, #tpu.memory_space<vmem>>, vector<1x16x84xbf16>
    %61 = vector.shape_cast %60 : vector<1x16x84xbf16> to vector<16x84xbf16>
    %62 = vector.shape_cast %59 : vector<16x84xbf16> to vector<1x16x84xbf16>
    tpu.vector_store %arg13[%c0_58, %c0_59, %c0_60], %62 {strides = array<i32>} : memref<2x24x84xbf16, #tpu.memory_space<vmem>>, vector<1x16x84xbf16>,
    %cst_61 = arith.constant 0.000000e+00 : bf16
    %63 = vector.broadcast %cst_61 : bf16 to vector<8x84xbf16>
    %c0_62 = arith.constant 0 : index
    %c16 = arith.constant 16 : index
    %c0_63 = arith.constant 0 : index
    %64 = vector.load %arg13[%c0_62, %c16, %c0_63] : memref<2x24x84xbf16, #tpu.memory_space<vmem>>, vector<1x8x84xbf16>
    %65 = vector.shape_cast %64 : vector<1x8x84xbf16> to vector<8x84xbf16>
    %66 = vector.shape_cast %63 : vector<8x84xbf16> to vector<1x8x84xbf16>
    tpu.vector_store %arg13[%c0_62, %c16, %c0_63], %66 {strides = array<i32>} : memref<2x24x84xbf16, #tpu.memory_space<vmem>>, vector<1x8x84xbf16>,
    %67 = vector.extract_strided_slice %46 {offsets = [0, 512], sizes = [16, 256], strides = [1, 1]} : vector<16x1024xf32> to vector<16x256xf32>
    %68 = vector.extract_strided_slice %46 {offsets = [0, 768], sizes = [16, 256], strides = [1, 1]} : vector<16x1024xf32> to vector<16x256xf32>
    %69 = arith.maximumf %67, %68 : vector<16x256xf32>
    %70 = vector.extract_strided_slice %69 {offsets = [0, 0], sizes = [16, 128], strides = [1, 1]} : vector<16x256xf32> to vector<16x128xf32>
    %71 = vector.extract_strided_slice %69 {offsets = [0, 128], sizes = [16, 128], strides = [1, 1]} : vector<16x256xf32> to vector<16x128xf32>
    %72 = arith.maximumf %70, %71 : vector<16x128xf32>
    %73 = vector.extract_strided_slice %72 {offsets = [0, 0], sizes = [16, 84], strides = [1, 1]} : vector<16x128xf32> to vector<16x84xf32>
    %c0_64 = arith.constant 0 : index
    %c0_65 = arith.constant 0 : index
    %74 = vector.load %arg3[%c0_64, %c0_65] : memref<1x84xf32, #tpu.memory_space<vmem>>, vector<1x84xf32>
    %75 = vector.broadcast %74 : vector<1x84xf32> to vector<16x84xf32>
    %76 = arith.addf %73, %75 : vector<16x84xf32>
    %cst_66 = arith.constant 0.000000e+00 : f32
    %77 = vector.broadcast %cst_66 : f32 to vector<16x84xf32>
    %78 = arith.maximumf %76, %77 : vector<16x84xf32>
    %79 = arith.truncf %78 : vector<16x84xf32> to vector<16x84xbf16>
    %c1_67 = arith.constant 1 : index
    %c0_68 = arith.constant 0 : index
    %c0_69 = arith.constant 0 : index
    %80 = vector.load %arg13[%c1_67, %c0_68, %c0_69] : memref<2x24x84xbf16, #tpu.memory_space<vmem>>, vector<1x16x84xbf16>
    %81 = vector.shape_cast %80 : vector<1x16x84xbf16> to vector<16x84xbf16>
    %82 = vector.shape_cast %79 : vector<16x84xbf16> to vector<1x16x84xbf16>
    tpu.vector_store %arg13[%c1_67, %c0_68, %c0_69], %82 {strides = array<i32>} : memref<2x24x84xbf16, #tpu.memory_space<vmem>>, vector<1x16x84xbf16>,
    %cst_70 = arith.constant 0.000000e+00 : bf16
    %83 = vector.broadcast %cst_70 : bf16 to vector<8x84xbf16>
    %c1_71 = arith.constant 1 : index
    %c16_72 = arith.constant 16 : index
    %c0_73 = arith.constant 0 : index
    %84 = vector.load %arg13[%c1_71, %c16_72, %c0_73] : memref<2x24x84xbf16, #tpu.memory_space<vmem>>, vector<1x8x84xbf16>
    %85 = vector.shape_cast %84 : vector<1x8x84xbf16> to vector<8x84xbf16>
    %86 = vector.shape_cast %83 : vector<8x84xbf16> to vector<1x8x84xbf16>
    tpu.vector_store %arg13[%c1_71, %c16_72, %c0_73], %86 {strides = array<i32>} : memref<2x24x84xbf16, #tpu.memory_space<vmem>>, vector<1x8x84xbf16>,
    %c0_74 = arith.constant 0 : index
    %c0_75 = arith.constant 0 : index
    %c0_76 = arith.constant 0 : index
    %87 = vector.load %arg13[%c0_74, %c0_75, %c0_76] : memref<2x24x84xbf16, #tpu.memory_space<vmem>>, vector<1x16x84xbf16>
    %88 = vector.shape_cast %87 : vector<1x16x84xbf16> to vector<16x84xbf16>
    %c0_77 = arith.constant 0 : index
    %c0_78 = arith.constant 0 : index
    %c0_79 = arith.constant 0 : index
    %89 = vector.load %arg4[%c0_77, %c0_78, %c0_79] : memref<6x84x512xbf16, #tpu.memory_space<vmem>>, vector<1x84x512xbf16>
    %90 = vector.shape_cast %89 : vector<1x84x512xbf16> to vector<84x512xbf16>
    %cst_80 = arith.constant dense<0.000000e+00> : vector<16x512xf32>
    %91 = tpu.matmul %88, %90, %cst_80 {dimension_numbers = #tpu.dot_dimension_numbers<[1], [0], [0], [1], [0, 0, 1, 1], [], []>} : vector<16x84xbf16>, vector<84x512xbf16>, vector<16x512xf32> -> vector<16x512xf32>
    %c1_81 = arith.constant 1 : index
    %c0_82 = arith.constant 0 : index
    %c0_83 = arith.constant 0 : index
    %92 = vector.load %arg13[%c1_81, %c0_82, %c0_83] : memref<2x24x84xbf16, #tpu.memory_space<vmem>>, vector<1x16x84xbf16>
    %93 = vector.shape_cast %92 : vector<1x16x84xbf16> to vector<16x84xbf16>
    %c1_84 = arith.constant 1 : index
    %c0_85 = arith.constant 0 : index
    %c0_86 = arith.constant 0 : index
    %94 = vector.load %arg4[%c1_84, %c0_85, %c0_86] : memref<6x84x512xbf16, #tpu.memory_space<vmem>>, vector<1x84x512xbf16>
    %95 = vector.shape_cast %94 : vector<1x84x512xbf16> to vector<84x512xbf16>
    %cst_87 = arith.constant dense<0.000000e+00> : vector<16x512xf32>
    %96 = tpu.matmul %93, %95, %cst_87 {dimension_numbers = #tpu.dot_dimension_numbers<[1], [0], [0], [1], [0, 0, 1, 1], [], []>} : vector<16x84xbf16>, vector<84x512xbf16>, vector<16x512xf32> -> vector<16x512xf32>
    %97 = arith.addf %91, %96 : vector<16x512xf32>
    %c0_88 = arith.constant 0 : index
    %c1_89 = arith.constant 1 : index
    %c0_90 = arith.constant 0 : index
    %98 = vector.load %arg13[%c0_88, %c1_89, %c0_90] : memref<2x24x84xbf16, #tpu.memory_space<vmem>>, vector<1x16x84xbf16>
    %99 = vector.shape_cast %98 : vector<1x16x84xbf16> to vector<16x84xbf16>
    %c2_91 = arith.constant 2 : index
    %c0_92 = arith.constant 0 : index
    %c0_93 = arith.constant 0 : index
    %100 = vector.load %arg4[%c2_91, %c0_92, %c0_93] : memref<6x84x512xbf16, #tpu.memory_space<vmem>>, vector<1x84x512xbf16>
    %101 = vector.shape_cast %100 : vector<1x84x512xbf16> to vector<84x512xbf16>
    %cst_94 = arith.constant dense<0.000000e+00> : vector<16x512xf32>
    %102 = tpu.matmul %99, %101, %cst_94 {dimension_numbers = #tpu.dot_dimension_numbers<[1], [0], [0], [1], [0, 0, 1, 1], [], []>} : vector<16x84xbf16>, vector<84x512xbf16>, vector<16x512xf32> -> vector<16x512xf32>
    %103 = arith.addf %97, %102 : vector<16x512xf32>
    %c1_95 = arith.constant 1 : index
    %c1_96 = arith.constant 1 : index
    %c0_97 = arith.constant 0 : index
    %104 = vector.load %arg13[%c1_95, %c1_96, %c0_97] : memref<2x24x84xbf16, #tpu.memory_space<vmem>>, vector<1x16x84xbf16>
    %105 = vector.shape_cast %104 : vector<1x16x84xbf16> to vector<16x84xbf16>
    %c3_98 = arith.constant 3 : index
    %c0_99 = arith.constant 0 : index
    %c0_100 = arith.constant 0 : index
    %106 = vector.load %arg4[%c3_98, %c0_99, %c0_100] : memref<6x84x512xbf16, #tpu.memory_space<vmem>>, vector<1x84x512xbf16>
    %107 = vector.shape_cast %106 : vector<1x84x512xbf16> to vector<84x512xbf16>
    %cst_101 = arith.constant dense<0.000000e+00> : vector<16x512xf32>
    %108 = tpu.matmul %105, %107, %cst_101 {dimension_numbers = #tpu.dot_dimension_numbers<[1], [0], [0], [1], [0, 0, 1, 1], [], []>} : vector<16x84xbf16>, vector<84x512xbf16>, vector<16x512xf32> -> vector<16x512xf32>
    %109 = arith.addf %103, %108 : vector<16x512xf32>
    %c0_102 = arith.constant 0 : index
    %c2_103 = arith.constant 2 : index
    %c0_104 = arith.constant 0 : index
    %110 = vector.load %arg13[%c0_102, %c2_103, %c0_104] : memref<2x24x84xbf16, #tpu.memory_space<vmem>>, vector<1x16x84xbf16>
    %111 = vector.shape_cast %110 : vector<1x16x84xbf16> to vector<16x84xbf16>
    %c4_105 = arith.constant 4 : index
    %c0_106 = arith.constant 0 : index
    %c0_107 = arith.constant 0 : index
    %112 = vector.load %arg4[%c4_105, %c0_106, %c0_107] : memref<6x84x512xbf16, #tpu.memory_space<vmem>>, vector<1x84x512xbf16>
    %113 = vector.shape_cast %112 : vector<1x84x512xbf16> to vector<84x512xbf16>
    %cst_108 = arith.constant dense<0.000000e+00> : vector<16x512xf32>
    %114 = tpu.matmul %111, %113, %cst_108 {dimension_numbers = #tpu.dot_dimension_numbers<[1], [0], [0], [1], [0, 0, 1, 1], [], []>} : vector<16x84xbf16>, vector<84x512xbf16>, vector<16x512xf32> -> vector<16x512xf32>
    %115 = arith.addf %109, %114 : vector<16x512xf32>
    %c1_109 = arith.constant 1 : index
    %c2_110 = arith.constant 2 : index
    %c0_111 = arith.constant 0 : index
    %116 = vector.load %arg13[%c1_109, %c2_110, %c0_111] : memref<2x24x84xbf16, #tpu.memory_space<vmem>>, vector<1x16x84xbf16>
    %117 = vector.shape_cast %116 : vector<1x16x84xbf16> to vector<16x84xbf16>
    %c5_112 = arith.constant 5 : index
    %c0_113 = arith.constant 0 : index
    %c0_114 = arith.constant 0 : index
    %118 = vector.load %arg4[%c5_112, %c0_113, %c0_114] : memref<6x84x512xbf16, #tpu.memory_space<vmem>>, vector<1x84x512xbf16>
    %119 = vector.shape_cast %118 : vector<1x84x512xbf16> to vector<84x512xbf16>
    %cst_115 = arith.constant dense<0.000000e+00> : vector<16x512xf32>
    %120 = tpu.matmul %117, %119, %cst_115 {dimension_numbers = #tpu.dot_dimension_numbers<[1], [0], [0], [1], [0, 0, 1, 1], [], []>} : vector<16x84xbf16>, vector<84x512xbf16>, vector<16x512xf32> -> vector<16x512xf32>
    %121 = arith.addf %115, %120 : vector<16x512xf32>
    %122 = vector.extract_strided_slice %121 {offsets = [0, 0], sizes = [16, 256], strides = [1, 1]} : vector<16x512xf32> to vector<16x256xf32>
    %123 = vector.extract_strided_slice %121 {offsets = [0, 256], sizes = [16, 256], strides = [1, 1]} : vector<16x512xf32> to vector<16x256xf32>
    %124 = arith.maximumf %122, %123 : vector<16x256xf32>
    %125 = vector.extract_strided_slice %124 {offsets = [0, 0], sizes = [16, 128], strides = [1, 1]} : vector<16x256xf32> to vector<16x128xf32>
    %126 = vector.extract_strided_slice %124 {offsets = [0, 128], sizes = [16, 128], strides = [1, 1]} : vector<16x256xf32> to vector<16x128xf32>
    %127 = arith.maximumf %125, %126 : vector<16x128xf32>
    %128 = vector.extract_strided_slice %127 {offsets = [0, 0], sizes = [16, 80], strides = [1, 1]} : vector<16x128xf32> to vector<16x80xf32>
    %c0_116 = arith.constant 0 : index
    %c0_117 = arith.constant 0 : index
    %129 = vector.load %arg5[%c0_116, %c0_117] : memref<1x80xf32, #tpu.memory_space<vmem>>, vector<1x80xf32>
    %130 = vector.broadcast %129 : vector<1x80xf32> to vector<16x80xf32>
    %131 = arith.addf %128, %130 : vector<16x80xf32>
    %cst_118 = arith.constant 0.000000e+00 : f32
    %132 = vector.broadcast %cst_118 : f32 to vector<16x80xf32>
    %133 = arith.maximumf %131, %132 : vector<16x80xf32>
    %134 = arith.truncf %133 : vector<16x80xf32> to vector<16x80xbf16>
    %c0_119 = arith.constant 0 : index
    %c0_120 = arith.constant 0 : index
    %135 = vector.load %arg14[%c0_119, %c0_120] : memref<24x80xbf16, #tpu.memory_space<vmem>>, vector<16x80xbf16>
    tpu.vector_store %arg14[%c0_119, %c0_120], %134 {strides = array<i32>} : memref<24x80xbf16, #tpu.memory_space<vmem>>, vector<16x80xbf16>,
    %cst_121 = arith.constant 0.000000e+00 : bf16
    %136 = vector.broadcast %cst_121 : bf16 to vector<8x80xbf16>
    %c16_122 = arith.constant 16 : index
    %c0_123 = arith.constant 0 : index
    %137 = vector.load %arg14[%c16_122, %c0_123] : memref<24x80xbf16, #tpu.memory_space<vmem>>, vector<8x80xbf16>
    tpu.vector_store %arg14[%c16_122, %c0_123], %136 {strides = array<i32>} : memref<24x80xbf16, #tpu.memory_space<vmem>>, vector<8x80xbf16>,
    %c0_124 = arith.constant 0 : index
    %c0_125 = arith.constant 0 : index
    %138 = vector.load %arg14[%c0_124, %c0_125] : memref<24x80xbf16, #tpu.memory_space<vmem>>, vector<16x80xbf16>
    %c0_126 = arith.constant 0 : index
    %c0_127 = arith.constant 0 : index
    %c0_128 = arith.constant 0 : index
    %139 = vector.load %arg6[%c0_126, %c0_127, %c0_128] : memref<5x80x120xbf16, #tpu.memory_space<vmem>>, vector<1x80x120xbf16>
    %140 = vector.shape_cast %139 : vector<1x80x120xbf16> to vector<80x120xbf16>
    %cst_129 = arith.constant dense<0.000000e+00> : vector<16x120xf32>
    %141 = tpu.matmul %138, %140, %cst_129 {dimension_numbers = #tpu.dot_dimension_numbers<[1], [0], [0], [1], [0, 0, 1, 1], [], []>} : vector<16x80xbf16>, vector<80x120xbf16>, vector<16x120xf32> -> vector<16x120xf32>
    %c1_130 = arith.constant 1 : index
    %c0_131 = arith.constant 0 : index
    %142 = vector.load %arg14[%c1_130, %c0_131] : memref<24x80xbf16, #tpu.memory_space<vmem>>, vector<16x80xbf16>
    %c1_132 = arith.constant 1 : index
    %c0_133 = arith.constant 0 : index
    %c0_134 = arith.constant 0 : index
    %143 = vector.load %arg6[%c1_132, %c0_133, %c0_134] : memref<5x80x120xbf16, #tpu.memory_space<vmem>>, vector<1x80x120xbf16>
    %144 = vector.shape_cast %143 : vector<1x80x120xbf16> to vector<80x120xbf16>
    %cst_135 = arith.constant dense<0.000000e+00> : vector<16x120xf32>
    %145 = tpu.matmul %142, %144, %cst_135 {dimension_numbers = #tpu.dot_dimension_numbers<[1], [0], [0], [1], [0, 0, 1, 1], [], []>} : vector<16x80xbf16>, vector<80x120xbf16>, vector<16x120xf32> -> vector<16x120xf32>
    %146 = arith.addf %141, %145 : vector<16x120xf32>
    %c2_136 = arith.constant 2 : index
    %c0_137 = arith.constant 0 : index
    %147 = vector.load %arg14[%c2_136, %c0_137] : memref<24x80xbf16, #tpu.memory_space<vmem>>, vector<16x80xbf16>
    %c2_138 = arith.constant 2 : index
    %c0_139 = arith.constant 0 : index
    %c0_140 = arith.constant 0 : index
    %148 = vector.load %arg6[%c2_138, %c0_139, %c0_140] : memref<5x80x120xbf16, #tpu.memory_space<vmem>>, vector<1x80x120xbf16>
    %149 = vector.shape_cast %148 : vector<1x80x120xbf16> to vector<80x120xbf16>
    %cst_141 = arith.constant dense<0.000000e+00> : vector<16x120xf32>
    %150 = tpu.matmul %147, %149, %cst_141 {dimension_numbers = #tpu.dot_dimension_numbers<[1], [0], [0], [1], [0, 0, 1, 1], [], []>} : vector<16x80xbf16>, vector<80x120xbf16>, vector<16x120xf32> -> vector<16x120xf32>
    %151 = arith.addf %146, %150 : vector<16x120xf32>
    %c3_142 = arith.constant 3 : index
    %c0_143 = arith.constant 0 : index
    %152 = vector.load %arg14[%c3_142, %c0_143] : memref<24x80xbf16, #tpu.memory_space<vmem>>, vector<16x80xbf16>
    %c3_144 = arith.constant 3 : index
    %c0_145 = arith.constant 0 : index
    %c0_146 = arith.constant 0 : index
    %153 = vector.load %arg6[%c3_144, %c0_145, %c0_146] : memref<5x80x120xbf16, #tpu.memory_space<vmem>>, vector<1x80x120xbf16>
    %154 = vector.shape_cast %153 : vector<1x80x120xbf16> to vector<80x120xbf16>
    %cst_147 = arith.constant dense<0.000000e+00> : vector<16x120xf32>
    %155 = tpu.matmul %152, %154, %cst_147 {dimension_numbers = #tpu.dot_dimension_numbers<[1], [0], [0], [1], [0, 0, 1, 1], [], []>} : vector<16x80xbf16>, vector<80x120xbf16>, vector<16x120xf32> -> vector<16x120xf32>
    %156 = arith.addf %151, %155 : vector<16x120xf32>
    %c4_148 = arith.constant 4 : index
    %c0_149 = arith.constant 0 : index
    %157 = vector.load %arg14[%c4_148, %c0_149] : memref<24x80xbf16, #tpu.memory_space<vmem>>, vector<16x80xbf16>
    %c4_150 = arith.constant 4 : index
    %c0_151 = arith.constant 0 : index
    %c0_152 = arith.constant 0 : index
    %158 = vector.load %arg6[%c4_150, %c0_151, %c0_152] : memref<5x80x120xbf16, #tpu.memory_space<vmem>>, vector<1x80x120xbf16>
    %159 = vector.shape_cast %158 : vector<1x80x120xbf16> to vector<80x120xbf16>
    %cst_153 = arith.constant dense<0.000000e+00> : vector<16x120xf32>
    %160 = tpu.matmul %157, %159, %cst_153 {dimension_numbers = #tpu.dot_dimension_numbers<[1], [0], [0], [1], [0, 0, 1, 1], [], []>} : vector<16x80xbf16>, vector<80x120xbf16>, vector<16x120xf32> -> vector<16x120xf32>
    %161 = arith.addf %156, %160 : vector<16x120xf32>
    %c0_154 = arith.constant 0 : index
    %c0_155 = arith.constant 0 : index
    %162 = vector.load %arg7[%c0_154, %c0_155] : memref<1x120xf32, #tpu.memory_space<vmem>>, vector<1x120xf32>
    %163 = vector.broadcast %162 : vector<1x120xf32> to vector<16x120xf32>
    %164 = arith.addf %161, %163 : vector<16x120xf32>
    %cst_156 = arith.constant 0.000000e+00 : f32
    %165 = vector.broadcast %cst_156 : f32 to vector<16x120xf32>
    %166 = arith.maximumf %164, %165 : vector<16x120xf32>
    %167 = arith.truncf %166 : vector<16x120xf32> to vector<16x120xbf16>
    %c0_157 = arith.constant 0 : index
    %c0_158 = arith.constant 0 : index
    %168 = vector.load %arg8[%c0_157, %c0_158] : memref<120x84xbf16, #tpu.memory_space<vmem>>, vector<120x84xbf16>
    %cst_159 = arith.constant dense<0.000000e+00> : vector<16x84xf32>
    %169 = tpu.matmul %167, %168, %cst_159 {dimension_numbers = #tpu.dot_dimension_numbers<[1], [0], [0], [1], [0, 0, 1, 1], [], []>} : vector<16x120xbf16>, vector<120x84xbf16>, vector<16x84xf32> -> vector<16x84xf32>
    %c0_160 = arith.constant 0 : index
    %c0_161 = arith.constant 0 : index
    %170 = vector.load %arg9[%c0_160, %c0_161] : memref<1x84xf32, #tpu.memory_space<vmem>>, vector<1x84xf32>
    %171 = vector.broadcast %170 : vector<1x84xf32> to vector<16x84xf32>
    %172 = arith.addf %169, %171 : vector<16x84xf32>
    %cst_162 = arith.constant 0.000000e+00 : f32
    %173 = vector.broadcast %cst_162 : f32 to vector<16x84xf32>
    %174 = arith.maximumf %172, %173 : vector<16x84xf32>
    %175 = arith.truncf %174 : vector<16x84xf32> to vector<16x84xbf16>
    %c0_163 = arith.constant 0 : index
    %c0_164 = arith.constant 0 : index
    %176 = vector.load %arg10[%c0_163, %c0_164] : memref<84x10xbf16, #tpu.memory_space<vmem>>, vector<84x10xbf16>
    %cst_165 = arith.constant dense<0.000000e+00> : vector<16x10xf32>
    %177 = tpu.matmul %175, %176, %cst_165 {dimension_numbers = #tpu.dot_dimension_numbers<[1], [0], [0], [1], [0, 0, 1, 1], [], []>} : vector<16x84xbf16>, vector<84x10xbf16>, vector<16x10xf32> -> vector<16x10xf32>
    %c0_166 = arith.constant 0 : index
    %c0_167 = arith.constant 0 : index
    %178 = vector.load %arg11[%c0_166, %c0_167] : memref<1x10xf32, #tpu.memory_space<vmem>>, vector<1x10xf32>
    %179 = vector.broadcast %178 : vector<1x10xf32> to vector<16x10xf32>
    %180 = arith.addf %177, %179 : vector<16x10xf32>
    %cst_168 = arith.constant dense<0xFF800000> : vector<16xf32>
    %181 = vector.multi_reduction <maximumf>, %180, %cst_168 [1] : vector<16x10xf32> to vector<16xf32>
    %182 = vector.shape_cast %181 : vector<16xf32> to vector<16x1xf32>
    %183 = vector.broadcast %182 : vector<16x1xf32> to vector<16x10xf32>
    %184 = arith.subf %180, %183 : vector<16x10xf32>
    %185 = math.exp %184 : vector<16x10xf32>
    %cst_169 = arith.constant dense<0.000000e+00> : vector<16xf32>
    %186 = vector.multi_reduction <add>, %185, %cst_169 [1] : vector<16x10xf32> to vector<16xf32>
    %187 = vector.shape_cast %186 : vector<16xf32> to vector<16x1xf32>
    %188 = math.log %187 : vector<16x1xf32>
    %189 = vector.broadcast %188 : vector<16x1xf32> to vector<16x10xf32>
    %190 = arith.subf %184, %189 : vector<16x10xf32>
    %c0_170 = arith.constant 0 : index
    %c0_171 = arith.constant 0 : index
    %191 = vector.load %arg12[%c0_170, %c0_171] : memref<16x10xf32, #tpu.memory_space<vmem>>, vector<16x10xf32>
    tpu.vector_store %arg12[%c0_170, %c0_171], %190 {strides = array<i32>} : memref<16x10xf32, #tpu.memory_space<vmem>>, vector<16x10xf32>,
    return
  }
  func.func @transform_0(%arg0: i32) -> (i32, i32, i32, i32) {
    %c0_i32 = arith.constant 0 : i32
    %c0_i32_0 = arith.constant 0 : i32
    %c0_i32_1 = arith.constant 0 : i32
    %c0_i32_2 = arith.constant 0 : i32
    return %arg0, %c0_i32, %c0_i32_0, %c0_i32_1 : i32, i32, i32, i32
  }
  func.func @transform_1(%arg0: i32) -> (i32, i32, i32) {
    %c0_i32 = arith.constant 0 : i32
    %c0_i32_0 = arith.constant 0 : i32
    %c0_i32_1 = arith.constant 0 : i32
    %c0_i32_2 = arith.constant 0 : i32
    return %c0_i32, %c0_i32_0, %c0_i32_1 : i32, i32, i32
  }
  func.func @transform_2(%arg0: i32) -> (i32, i32) {
    %c0_i32 = arith.constant 0 : i32
    %c0_i32_0 = arith.constant 0 : i32
    %c0_i32_1 = arith.constant 0 : i32
    return %c0_i32, %c0_i32_0 : i32, i32
  }
  func.func @transform_3(%arg0: i32) -> (i32, i32, i32) {
    %c0_i32 = arith.constant 0 : i32
    %c0_i32_0 = arith.constant 0 : i32
    %c0_i32_1 = arith.constant 0 : i32
    %c0_i32_2 = arith.constant 0 : i32
    return %c0_i32, %c0_i32_0, %c0_i32_1 : i32, i32, i32
  }
  func.func @transform_4(%arg0: i32) -> (i32, i32) {
    %c0_i32 = arith.constant 0 : i32
    %c0_i32_0 = arith.constant 0 : i32
    %c0_i32_1 = arith.constant 0 : i32
    return %c0_i32, %c0_i32_0 : i32, i32
  }
  func.func @transform_5(%arg0: i32) -> (i32, i32, i32) {
    %c0_i32 = arith.constant 0 : i32
    %c0_i32_0 = arith.constant 0 : i32
    %c0_i32_1 = arith.constant 0 : i32
    %c0_i32_2 = arith.constant 0 : i32
    return %c0_i32, %c0_i32_0, %c0_i32_1 : i32, i32, i32
  }
  func.func @transform_6(%arg0: i32) -> (i32, i32) {
    %c0_i32 = arith.constant 0 : i32
    %c0_i32_0 = arith.constant 0 : i32
    %c0_i32_1 = arith.constant 0 : i32
    return %c0_i32, %c0_i32_0 : i32, i32
  }
  func.func @transform_7(%arg0: i32) -> (i32, i32) {
    %c0_i32 = arith.constant 0 : i32
    %c0_i32_0 = arith.constant 0 : i32
    %c0_i32_1 = arith.constant 0 : i32
    return %c0_i32, %c0_i32_0 : i32, i32
  }
  func.func @transform_8(%arg0: i32) -> (i32, i32) {
    %c0_i32 = arith.constant 0 : i32
    %c0_i32_0 = arith.constant 0 : i32
    %c0_i32_1 = arith.constant 0 : i32
    return %c0_i32, %c0_i32_0 : i32, i32
  }
  func.func @transform_9(%arg0: i32) -> (i32, i32) {
    %c0_i32 = arith.constant 0 : i32
    %c0_i32_0 = arith.constant 0 : i32
    %c0_i32_1 = arith.constant 0 : i32
    return %c0_i32, %c0_i32_0 : i32, i32
  }
  func.func @transform_10(%arg0: i32) -> (i32, i32) {
    %c0_i32 = arith.constant 0 : i32
    %c0_i32_0 = arith.constant 0 : i32
    %c0_i32_1 = arith.constant 0 : i32
    return %c0_i32, %c0_i32_0 : i32, i32
  }
  func.func @transform_11(%arg0: i32) -> (i32, i32) {
    %c0_i32 = arith.constant 0 : i32
    %c0_i32_0 = arith.constant 0 : i32
    return %arg0, %c0_i32 : i32, i32
  }
}

</mosaic_0001>

<bundles_post_ra>
// kernel: cnn_svhn_forward.1
= control target key start
LH: loop header
LB: loop body
LE: loop exit
PB: predicated region body
PF: predicated region fallthrough
CT: control target
= control target key end

     0   :  { %16 = vsyncpa [#allocation5], 0  ;;  %s9557_s0 = inlined_call_operand.vmem [shape: bf16[1,4,24,96], index: 0, kind: input, shape index: {}]   ;;  %s9558_s1 = inlined_call_operand.hbm [shape: bf16[8,96,1024], index: 1, kind: input, shape index: {}]   ;;  %s9559_s2 = inlined_call_operand.hbm [shape: f32[1,84], index: 2, kind: input, shape index: {}]   ;;  %s9560_s3 = inlined_call_operand.hbm [shape: bf16[6,84,512], index: 3, kind: input, shape index: {}]   ;;  %s9561_s4 = inlined_call_operand.hbm [shape: f32[1,80], index: 4, kind: input, shape index: {}]   ;;  %s9562_s5 = inlined_call_operand.hbm [shape: bf16[5,80,120], index: 5, kind: input, shape index: {}]   ;;  %s9563_s6 = inlined_call_operand.hbm [shape: f32[1,120], index: 6, kind: input, shape index: {}]   ;;  %s9564_s7 = inlined_call_operand.hbm [shape: bf16[120,84], index: 7, kind: input, shape index: {}]   ;;  %s9565_s8 = inlined_call_operand.hbm [shape: f32[1,84], index: 8, kind: input, shape index: {}]   ;;  %s9566_s9 = inlined_call_operand.hbm [shape: bf16[84,10], index: 9, kind: input, shape index: {}]   ;;  %s9567_s10 = inlined_call_operand.hbm [shape: f32[1,10], index: 10, kind: input, shape index: {}]   ;;  %s9568_s11 = inlined_call_operand.vmem [shape: f32[16,10], index: 11, kind: output, shape index: {}]  }
   0x1   :  { %17 = vsyncpa [#allocation7], 0 }
   0x2   :  { %18 = vsyncpa [#allocation10], 0 }
   0x3   :  { %19 = vsyncpa [#allocation13], 0 }
   0x4   :  { %20 = vsyncpa [#allocation16], 0  ;;  %s42_s19 = sshll.u32 %s9559_s2, 4  ;;  %s43_s19 = int_to_ptr.hbm [resolvable:$true] %s42_s19 }
   0x5   :  { %21 = vsyncpa [#allocation19], 0  ;;  %s8749_s20 = smov [#allocation6]   ;;  %s66_s24 = sshll.u32 %s9561_s4, 4  ;;  %s67_s24 = int_to_ptr.hbm [resolvable:$true] %s66_s24 }
   0x6   :  { %s44_s21 = sshll.u32 %s8749_s20, 4  ;;  %s8750_s25 = smov [#allocation9]   ;;  %s45_s21 = int_to_ptr.vmem [resolvable:$true] %s44_s21 }
   0x7   :  { %47 = dma.hbm_to_vmem [thread:$0]  %s43_s19, 16, %s45_s21, [#allocation7]  }
   0x8   :  { %s68_s26 = sshll.u32 %s8750_s25, 4  ;;  %s90_s29 = sshll.u32 %s9563_s6, 4  ;;  %s69_s26 = int_to_ptr.vmem [resolvable:$true] %s68_s26  ;;  %s91_s29 = int_to_ptr.hbm [resolvable:$true] %s90_s29 }
   0x9   :  { %71 = dma.hbm_to_vmem [thread:$0]  %s67_s24, 16, %s69_s26, [#allocation10]  }
   0xa   :  { %s114_s12 = sshll.u32 %s9565_s8, 4  ;;  %s8751_s13 = smov [#allocation12]   ;;  %s115_s12 = int_to_ptr.hbm [resolvable:$true] %s114_s12 }
   0xb   :  { %s92_s14 = sshll.u32 %s8751_s13, 4  ;;  %s8752_s4 = smov [#allocation15]   ;;  %s93_s14 = int_to_ptr.vmem [resolvable:$true] %s92_s14 }
   0xc   :  { %95 = dma.hbm_to_vmem [thread:$0]  %s91_s29, 16, %s93_s14, [#allocation13]  }
   0xd   :  { %s116_s15 = sshll.u32 %s8752_s4, 4  ;;  %s28_s18 = sshll.u32 %s9558_s1, 4  ;;  %s117_s15 = int_to_ptr.vmem [resolvable:$true] %s116_s15  ;;  %s29_s18 = int_to_ptr.hbm [resolvable:$true] %s28_s18 }
   0xe   :  { %119 = dma.hbm_to_vmem [thread:$0]  %s115_s12, 16, %s117_s15, [#allocation16]  }
   0xf   :  { %s8753_s6 = smov [#allocation4]   ;;  %s52_s8 = sshll.u32 %s9560_s3, 4  ;;  %s53_s8 = int_to_ptr.hbm [resolvable:$true] %s52_s8 }
  0x10   :  { %s30_s19 = sshll.u32 %s8753_s6, 4  ;;  %s8754_s22 = smov 512   ;;  %s31_s19 = int_to_ptr.vmem [resolvable:$true] %s30_s19 }
  0x11   :  { %s8755_s23 = smov 32   ;;  %s8756_s24 = smov [#allocation8]  }
  0x12   :  { %36 = dma.hbm_to_vmem [thread:$0]  %s29_s18, 49152, %s31_s19, [#allocation5], %s8754_s22, %s8754_s22, %s8755_s23  }
  0x13   :  { %s54_s25 = sshll.u32 %s8756_s24, 4  ;;  %s8757_s26 = smov 256   ;;  %s55_s25 = int_to_ptr.vmem [resolvable:$true] %s54_s25 }
  0x14   :  { %s8758_s27 = smov 16   ;;  %s76_s29 = sshll.u32 %s9562_s5, 4  ;;  %s77_s29 = int_to_ptr.hbm [resolvable:$true] %s76_s29 }
  0x15   :  { %60 = dma.hbm_to_vmem [thread:$0]  %s53_s8, 16896, %s55_s25, [#allocation7], %s8757_s26, %s8757_s26, %s8758_s27  }
  0x16   :  { %s8759_s2 = smov [#allocation11]   ;;  %s100_s13 = sshll.u32 %s9564_s7, 4  ;;  %s101_s13 = int_to_ptr.hbm [resolvable:$true] %s100_s13 }
  0x17   :  { %s78_s30 = sshll.u32 %s8759_s2, 4  ;;  %s8760_s14 = smov 64   ;;  %s79_s30 = int_to_ptr.vmem [resolvable:$true] %s78_s30 }
  0x18   :  { %s8761_s4 = smov 4   ;;  %s8762_s15 = smov [#allocation14]  }
  0x19   :  { %84 = dma.hbm_to_vmem [thread:$0]  %s77_s29, 3200, %s79_s30, [#allocation10], %s8760_s14, %s8760_s14, %s8761_s4  }
  0x1a   :  { %s102_s16 = sshll.u32 %s8762_s15, 4  ;;  %s124_s6 = sshll.u32 %s9566_s9, 4  ;;  %s103_s16 = int_to_ptr.vmem [resolvable:$true] %s102_s16  ;;  %s125_s6 = int_to_ptr.hbm [resolvable:$true] %s124_s6 }
  0x1b   :  { %108 = dma.hbm_to_vmem [thread:$0]  %s101_s13, 960, %s103_s16, [#allocation13], %s8760_s14, %s8760_s14, %s8761_s4  }
  0x1c   :  { %s138_s20 = sshll.u32 %s9567_s10, 4  ;;  %s8763_s21 = smov [#allocation17]   ;;  %s139_s20 = int_to_ptr.hbm [resolvable:$true] %s138_s20 }
  0x1d   :  { %s126_s8 = sshll.u32 %s8763_s21, 4  ;;  %s8764_s7 = smov [#allocation18]   ;;  %s127_s8 = int_to_ptr.vmem [resolvable:$true] %s126_s8 }
  0x1e   :  { %132 = dma.hbm_to_vmem [thread:$0]  %s125_s6, 704, %s127_s8, [#allocation16], %s8760_s14, %s8760_s14, %s8761_s4  }
  0x1f   :  { %s140_s22 = sshll.u32 %s8764_s7, 4  ;;  %s141_s22 = int_to_ptr.vmem [resolvable:$true] %s140_s22 }
  0x20   :  { %143 = dma.hbm_to_vmem [thread:$0]  %s139_s20, 16, %s141_s22, [#allocation19]  }
  0x21   :  { %8737 = dma.done.wait [#allocation5], 49152  }
  0x22   :  { %8738 = vsyncadd [#allocation5], 4294918144 }
  0x23   :  { %8739 = dma.done.wait [#allocation7], 16912  }
  0x24   :  { %8740 = vsyncadd [#allocation7], 4294950384 }
  0x25   :  { %8741 = dma.done.wait [#allocation10], 3216  }
  0x26   :  { %8742 = vsyncadd [#allocation10], 4294964080 }
  0x27   :  { %8743 = dma.done.wait [#allocation13], 976  }
  0x28   :  { %8744 = vsyncadd [#allocation13], 4294966320 }
  0x29   :  { %8745 = dma.done.wait [#allocation16], 720  }
  0x2a   :  { %8746 = vsyncadd [#allocation16], 4294966576 }
  0x2b   :  { %8747 = dma.done.wait [#allocation19], 16  }
  0x2c   :  { %8748 = vsyncadd [#allocation19], 4294967280  ;;  %v5755_v0 = vld [vmem:[#allocation4 + $0x2c0] sm:$0xf]  ;;  %v7991_v2 = vld [vmem:[#allocation4 + $0x2c4] sm:$0xf] }
  0x2d   :  { %v7995_v1 = vld [vmem:[#allocation4 + $0x2dc] sm:$0xf0]  ;;  %v5757_v4 = vld [vmem:[#allocation4 + $0x2e0] sm:$0xf0]  ;;  %v5763_v5 = vld [vmem:[#allocation4 + $0x2c8] sm:$0xf] }
  0x2e   :  { %v5756_v3 = vor.u32 %v7995_v1, %v5755_v0  ;;  %v7996_v6 = vld [vmem:[#allocation4 + $0x2e4] sm:$0xf0]  ;;  %v5760_v7 = vor.u32 %v7991_v2, %v5757_v4  ;;  %v7992_v9 = vld [vmem:[#allocation4 + $0x2cc] sm:$0xf]  ;;  %v5723_v11 = vld [vmem:[#allocation4 + $0x280] sm:$0xf] }
  0x2f   :  { %v5764_v8 = vor.u32 %v7996_v6, %v5763_v5  ;;  %v5765_v10 = vld [vmem:[#allocation4 + $0x2e8] sm:$0xf0]  ;;  %v7987_v13 = vld [vmem:[#allocation4 + $0x29c] sm:$0xf0]  ;;  %v7983_v14 = vld [vmem:[#allocation4 + $0x284] sm:$0xf] }
  0x30   :  { %538 = vmatpush.bf16.msra.mxu0 %v5756_v3  ;;  %v5768_v12 = vor.u32 %v7992_v9, %v5765_v10  ;;  %v5725_v15 = vld [vmem:[#allocation4 + $0x2a0] sm:$0xf0]  ;;  %552 = vmatpush.bf16.msra.mxu1 %v5760_v7  ;;  %v5724_v16 = vor.u32 %v7987_v13, %v5723_v11  ;;  %v5731_v18 = vld [vmem:[#allocation4 + $0x288] sm:$0xf]  ;;  %v7984_v20 = vld [vmem:[#allocation4 + $0x28c] sm:$0xf] }
  0x31   :  { %566 = vmatpush.bf16.msra.mxu2 %v5764_v8  ;;  %v5728_v17 = vor.u32 %v7983_v14, %v5725_v15  ;;  %v7988_v19 = vld [vmem:[#allocation4 + $0x2a4] sm:$0xf0]  ;;  %v5733_v22 = vld [vmem:[#allocation4 + $0x2a8] sm:$0xf0]  ;;  %v5691_v23 = vld [vmem:[#allocation4 + $0x240] sm:$0xf] }
  0x32   :  { %580 = vmatpush.bf16.msra.mxu3 %v5768_v12  ;;  %v5732_v21 = vor.u32 %v7988_v19, %v5731_v18  ;;  %v7979_v24 = vld [vmem:[#allocation4 + $0x25c] sm:$0xf0]  ;;  %v5736_v25 = vor.u32 %v7984_v20, %v5733_v22  ;;  %v7975_v26 = vld [vmem:[#allocation4 + $0x244] sm:$0xf]  ;;  %v5699_v28 = vld [vmem:[#allocation4 + $0x248] sm:$0xf] }
  0x33   :  { %v5693_v27 = vld [vmem:[#allocation4 + $0x260] sm:$0xf0]  ;;  %v5692_v29 = vor.u32 %v7979_v24, %v5691_v23  ;;  %v7980_v30 = vld [vmem:[#allocation4 + $0x264] sm:$0xf0]  ;;  %v7976_v31 = vld [vmem:[#allocation4 + $0x24c] sm:$0xf] }
  0x34   :  { %539 = vmatpush.bf16.msra.mxu0 %v5724_v16  ;;  %v5701_v32 = vld [vmem:[#allocation4 + $0x268] sm:$0xf0]  ;;  %553 = vmatpush.bf16.msra.mxu1 %v5728_v17  ;;  %v5696_v33 = vor.u32 %v7975_v26, %v5693_v27  ;;  %v5700_v34 = vor.u32 %v7980_v30, %v5699_v28  ;;  %v5659_v35 = vld [vmem:[#allocation4 + $0x200] sm:$0xf]  ;;  %v7967_v37 = vld [vmem:[#allocation4 + $0x204] sm:$0xf] }
  0x35   :  { %567 = vmatpush.bf16.msra.mxu2 %v5732_v21  ;;  %v7971_v36 = vld [vmem:[#allocation4 + $0x21c] sm:$0xf0]  ;;  %v5704_v38 = vor.u32 %v7976_v31, %v5701_v32  ;;  %v5661_v39 = vld [vmem:[#allocation4 + $0x220] sm:$0xf0]  ;;  %v5667_v40 = vld [vmem:[#allocation4 + $0x208] sm:$0xf] }
  0x36   :  { %581 = vmatpush.bf16.msra.mxu3 %v5736_v25  ;;  %v7972_v41 = vld [vmem:[#allocation4 + $0x224] sm:$0xf0]  ;;  %v7968_v42 = vld [vmem:[#allocation4 + $0x20c] sm:$0xf]  ;;  %v5660_v44 = vor.u32 %v7971_v36, %v5659_v35  ;;  %v5664_v45 = vor.u32 %v7967_v37, %v5661_v39  ;;  %v5627_v47 = vld [vmem:[#allocation4 + $0x1c0] sm:$0xf] }
  0x37   :  { %v5669_v43 = vld [vmem:[#allocation4 + $0x228] sm:$0xf0]  ;;  %v5668_v46 = vor.u32 %v7972_v41, %v5667_v40  ;;  %v7963_v48 = vld [vmem:[#allocation4 + $0x1dc] sm:$0xf0]  ;;  %v7959_v49 = vld [vmem:[#allocation4 + $0x1c4] sm:$0xf] }
  0x38   :  { %540 = vmatpush.bf16.msra.mxu0 %v5692_v29  ;;  %554 = vmatpush.bf16.msra.mxu1 %v5696_v33  ;;  %v5672_v50 = vor.u32 %v7968_v42, %v5669_v43  ;;  %v5629_v51 = vld [vmem:[#allocation4 + $0x1e0] sm:$0xf0]  ;;  %v5635_v52 = vld [vmem:[#allocation4 + $0x1c8] sm:$0xf]  ;;  %v7960_v54 = vld [vmem:[#allocation4 + $0x1cc] sm:$0xf]  ;;  %v5628_v56 = vor.u32 %v7963_v48, %v5627_v47 }
  0x39   :  { %568 = vmatpush.bf16.msra.mxu2 %v5700_v34  ;;  %v7964_v53 = vld [vmem:[#allocation4 + $0x1e4] sm:$0xf0]  ;;  %v5637_v55 = vld [vmem:[#allocation4 + $0x1e8] sm:$0xf0]  ;;  %v5595_v57 = vld [vmem:[#allocation4 + $0x180] sm:$0xf]  ;;  %v5632_v59 = vor.u32 %v7959_v49, %v5629_v51 }
  0x3a   :  { %582 = vmatpush.bf16.msra.mxu3 %v5704_v38  ;;  %v7955_v58 = vld [vmem:[#allocation4 + $0x19c] sm:$0xf0]  ;;  %v5636_v60 = vor.u32 %v7964_v53, %v5635_v52  ;;  %v7951_v61 = vld [vmem:[#allocation4 + $0x184] sm:$0xf]  ;;  %v5603_v63 = vld [vmem:[#allocation4 + $0x188] sm:$0xf]  ;;  %v5640_v0 = vor.u32 %v7960_v54, %v5637_v55 }
  0x3b   :  { %v5597_v62 = vld [vmem:[#allocation4 + $0x1a0] sm:$0xf0]  ;;  %v7956_v1 = vld [vmem:[#allocation4 + $0x1a4] sm:$0xf0]  ;;  %v7952_v2 = vld [vmem:[#allocation4 + $0x18c] sm:$0xf]  ;;  %v5596_v7 = vor.u32 %v7955_v58, %v5595_v57 }
  0x3c   :  { %541 = vmatpush.bf16.msra.mxu0 %v5660_v44  ;;  %555 = vmatpush.bf16.msra.mxu1 %v5664_v45  ;;  %v5605_v3 = vld [vmem:[#allocation4 + $0x1a8] sm:$0xf0]  ;;  %v5771_v4 = vld [vmem:[#allocation4 + $0x2d0] sm:$0xf]  ;;  %v7993_v6 = vld [vmem:[#allocation4 + $0x2d4] sm:$0xf]  ;;  %v5600_v11 = vor.u32 %v7951_v61, %v5597_v62  ;;  %v5604_v12 = vor.u32 %v7956_v1, %v5603_v63 }
  0x3d   :  { %569 = vmatpush.bf16.msra.mxu2 %v5668_v46  ;;  %v7997_v5 = vld [vmem:[#allocation4 + $0x2ec] sm:$0xf0]  ;;  %v5773_v8 = vld [vmem:[#allocation4 + $0x2f0] sm:$0xf0]  ;;  %v5779_v9 = vld [vmem:[#allocation4 + $0x2d8] sm:$0xf]  ;;  %v5608_v15 = vor.u32 %v7952_v2, %v5605_v3 }
  0x3e   :  { %583 = vmatpush.bf16.msra.mxu3 %v5672_v50  ;;  %v7998_v10 = vld [vmem:[#allocation4 + $0x2f4] sm:$0xf0]  ;;  %v7994_v13 = vld [vmem:[#allocation4 + $0x2dc] sm:$0xf]  ;;  %v5772_v16 = vor.u32 %v7997_v5, %v5771_v4  ;;  %v5776_v17 = vor.u32 %v7993_v6, %v5773_v8  ;;  %v5739_v19 = vld [vmem:[#allocation4 + $0x290] sm:$0xf] }
  0x3f   :  { %v5781_v14 = vld [vmem:[#allocation4 + $0x2f8] sm:$0xf0]  ;;  %v5780_v18 = vor.u32 %v7998_v10, %v5779_v9  ;;  %v7989_v20 = vld [vmem:[#allocation4 + $0x2ac] sm:$0xf0]  ;;  %v7985_v21 = vld [vmem:[#allocation4 + $0x294] sm:$0xf] }
  0x40   :  { %542 = vmatpush.bf16.msra.mxu0 %v5628_v56  ;;  %556 = vmatpush.bf16.msra.mxu1 %v5632_v59  ;;  %v5784_v22 = vor.u32 %v7994_v13, %v5781_v14  ;;  %v5741_v23 = vld [vmem:[#allocation4 + $0x2b0] sm:$0xf0]  ;;  %v5747_v24 = vld [vmem:[#allocation4 + $0x298] sm:$0xf]  ;;  %v7986_v26 = vld [vmem:[#allocation4 + $0x29c] sm:$0xf]  ;;  %v5740_v29 = vor.u32 %v7989_v20, %v5739_v19 }
  0x41   :  { %570 = vmatpush.bf16.msra.mxu2 %v5636_v60  ;;  %v7990_v25 = vld [vmem:[#allocation4 + $0x2b4] sm:$0xf0]  ;;  %v5749_v27 = vld [vmem:[#allocation4 + $0x2b8] sm:$0xf0]  ;;  %v8859_v28 = vld [vmem:[%s9557_s0 + $0xc] sm:$0xff]  ;;  %vm532_vm0 = vcmask 785408   ;;  %v5744_v30 = vor.u32 %v7985_v21, %v5741_v23 }
  0x42   :  { %584 = vmatpush.bf16.msra.mxu3 %v5640_v0  ;;  %v5748_v31 = vor.u32 %v7990_v25, %v5747_v24  ;;  %v5707_v32 = vld [vmem:[#allocation4 + $0x250] sm:$0xf]  ;;  %v7977_v34 = vld [vmem:[#allocation4 + $0x254] sm:$0xf]  ;;  %v5752_v35 = vor.u32 %v7986_v26, %v5749_v27  ;;  %v5715_v37 = vld [vmem:[#allocation4 + $0x258] sm:$0xf] }
  0x43   :  { %v7981_v33 = vld [vmem:[#allocation4 + $0x26c] sm:$0xf0]  ;;  %v5709_v36 = vld [vmem:[#allocation4 + $0x270] sm:$0xf0]  ;;  %v7982_v38 = vld [vmem:[#allocation4 + $0x274] sm:$0xf0] }
  0x44   :  { %543 = vmatpush.bf16.msra.mxu0 %v5596_v7  ;;  %557 = vmatpush.bf16.msra.mxu1 %v5600_v11  ;;  %v7978_v39 = vld [vmem:[#allocation4 + $0x25c] sm:$0xf]  ;;  %v5708_v41 = vor.u32 %v7981_v33, %v5707_v32  ;;  %v5712_v42 = vor.u32 %v7977_v34, %v5709_v36  ;;  %v5716_v43 = vor.u32 %v7982_v38, %v5715_v37  ;;  %v5675_v44 = vld [vmem:[#allocation4 + $0x210] sm:$0xf]  ;;  %v7969_v46 = vld [vmem:[#allocation4 + $0x214] sm:$0xf] }
  0x45   :  { %571 = vmatpush.bf16.msra.mxu2 %v5604_v12  ;;  %v5717_v40 = vld [vmem:[#allocation4 + $0x278] sm:$0xf0]  ;;  %v7973_v45 = vld [vmem:[#allocation4 + $0x22c] sm:$0xf0]  ;;  %v5677_v48 = vld [vmem:[#allocation4 + $0x230] sm:$0xf0] }
  0x46   :  { %585 = vmatpush.bf16.msra.mxu3 %v5608_v15  ;;  %v5720_v47 = vor.u32 %v7978_v39, %v5717_v40  ;;  %v5683_v49 = vld [vmem:[#allocation4 + $0x218] sm:$0xf]  ;;  %v7970_v51 = vld [vmem:[#allocation4 + $0x21c] sm:$0xf]  ;;  %v5676_v53 = vor.u32 %v7973_v45, %v5675_v44  ;;  %v5680_v54 = vor.u32 %v7969_v46, %v5677_v48  ;;  %v5643_v56 = vld [vmem:[#allocation4 + $0x1d0] sm:$0xf] }
  0x47   :  { %5785 = vmatmul.msk.bf16.vlgmr.msra.gmra.mxu0 %vm532_vm0, %v8859_v28  ;;  %5786 = vmatmul.msk.bf16.vlgmr.msra.gmra.mxu1 %vm532_vm0, %v8859_v28  ;;  %v7974_v50 = vld [vmem:[#allocation4 + $0x234] sm:$0xf0]  ;;  %v5685_v52 = vld [vmem:[#allocation4 + $0x238] sm:$0xf0]  ;;  %v7965_v57 = vld [vmem:[#allocation4 + $0x1ec] sm:$0xf0] }
  0x48   :  { %594 = vmatpush.bf16.msrb.mxu0 %v5772_v16  ;;  %608 = vmatpush.bf16.msrb.mxu1 %v5776_v17  ;;  %v5684_v55 = vor.u32 %v7974_v50, %v5683_v49  ;;  %v7961_v58 = vld [vmem:[#allocation4 + $0x1d4] sm:$0xf]  ;;  %v5688_v59 = vor.u32 %v7970_v51, %v5685_v52  ;;  %v5651_v61 = vld [vmem:[#allocation4 + $0x1d8] sm:$0xf]  ;;  %v7962_v63 = vld [vmem:[#allocation4 + $0x1dc] sm:$0xf]  ;;  %v5644_v1 = vor.u32 %v7965_v57, %v5643_v56 }
  0x49   :  { %622 = vmatpush.bf16.msrb.mxu2 %v5780_v18  ;;  %5788 = vmatmul.msk.bf16.vlgmr.msra.gmra.mxu3 %vm532_vm0, %v8859_v28  ;;  %v5645_v60 = vld [vmem:[#allocation4 + $0x1f0] sm:$0xf0]  ;;  %v7966_v62 = vld [vmem:[#allocation4 + $0x1f4] sm:$0xf0]  ;;  %v5653_v0 = vld [vmem:[#allocation4 + $0x1f8] sm:$0xf0] }
  0x4a   :  { %636 = vmatpush.bf16.msrb.mxu3 %v5784_v22  ;;  %5787 = vmatmul.msk.bf16.vlgmr.msra.gmra.mxu2 %vm532_vm0, %v8859_v28  ;;  %v5611_v2 = vld [vmem:[#allocation4 + $0x190] sm:$0xf]  ;;  %v5648_v4 = vor.u32 %v7961_v58, %v5645_v60  ;;  %v5652_v5 = vor.u32 %v7966_v62, %v5651_v61  ;;  %v7953_v6 = vld [vmem:[#allocation4 + $0x194] sm:$0xf]  ;;  %v5619_v8 = vld [vmem:[#allocation4 + $0x198] sm:$0xf]  ;;  %v5656_v9 = vor.u32 %v7962_v63, %v5653_v0 }
  0x4b   :  { %v7957_v3 = vld [vmem:[#allocation4 + $0x1ac] sm:$0xf0]  ;;  %v5613_v7 = vld [vmem:[#allocation4 + $0x1b0] sm:$0xf0]  ;;  %v7958_v10 = vld [vmem:[#allocation4 + $0x1b4] sm:$0xf0] }
  0x4c   :  { %595 = vmatpush.bf16.msrb.mxu0 %v5740_v29  ;;  %609 = vmatpush.bf16.msrb.mxu1 %v5744_v30  ;;  %v7954_v11 = vld [vmem:[#allocation4 + $0x19c] sm:$0xf]  ;;  %v5959_v13 = vld [vmem:[#allocation4 + $0x140] sm:$0xf]  ;;  %v7942_v15 = vld [vmem:[#allocation4 + $0x144] sm:$0xf]  ;;  %v5612_v16 = vor.u32 %v7957_v3, %v5611_v2  ;;  %v5616_v20 = vor.u32 %v7953_v6, %v5613_v7  ;;  %v5620_v21 = vor.u32 %v7958_v10, %v5619_v8 }
  0x4d   :  { %623 = vmatpush.bf16.msrb.mxu2 %v5748_v31  ;;  %v5621_v12 = vld [vmem:[#allocation4 + $0x1b8] sm:$0xf0]  ;;  %v7946_v14 = vld [vmem:[#allocation4 + $0x15c] sm:$0xf0]  ;;  %v5961_v17 = vld [vmem:[#allocation4 + $0x160] sm:$0xf0] }
  0x4e   :  { %637 = vmatpush.bf16.msrb.mxu3 %v5752_v35  ;;  %v5967_v18 = vld [vmem:[#allocation4 + $0x148] sm:$0xf]  ;;  %v7943_v22 = vld [vmem:[#allocation4 + $0x14c] sm:$0xf]  ;;  %v5624_v24 = vor.u32 %v7954_v11, %v5621_v12  ;;  %v5960_v25 = vor.u32 %v7946_v14, %v5959_v13  ;;  %v5964_v26 = vor.u32 %v7942_v15, %v5961_v17  ;;  %v5927_v29 = vld [vmem:[#allocation4 + $0x100] sm:$0xf] }
  0x4f   :  { %v7947_v19 = vld [vmem:[#allocation4 + $0x164] sm:$0xf0]  ;;  %v5969_v23 = vld [vmem:[#allocation4 + $0x168] sm:$0xf0]  ;;  %v7938_v30 = vld [vmem:[#allocation4 + $0x11c] sm:$0xf0] }
  0x50   :  { %596 = vmatpush.bf16.msrb.mxu0 %v5708_v41  ;;  %610 = vmatpush.bf16.msrb.mxu1 %v5712_v42  ;;  %v5968_v27 = vor.u32 %v7947_v19, %v5967_v18  ;;  %v7934_v31 = vld [vmem:[#allocation4 + $0x104] sm:$0xf]  ;;  %v5972_v32 = vor.u32 %v7943_v22, %v5969_v23  ;;  %v5935_v34 = vld [vmem:[#allocation4 + $0x108] sm:$0xf]  ;;  %v7935_v36 = vld [vmem:[#allocation4 + $0x10c] sm:$0xf]  ;;  %v5928_v38 = vor.u32 %v7938_v30, %v5927_v29 }
  0x51   :  { %624 = vmatpush.bf16.msrb.mxu2 %v5716_v43  ;;  %v5929_v33 = vld [vmem:[#allocation4 + $0x120] sm:$0xf0]  ;;  %v7939_v35 = vld [vmem:[#allocation4 + $0x124] sm:$0xf0]  ;;  %v5937_v37 = vld [vmem:[#allocation4 + $0x128] sm:$0xf0] }
  0x52   :  { %638 = vmatpush.bf16.msrb.mxu3 %v5720_v47  ;;  %v5932_v39 = vor.u32 %v7934_v31, %v5929_v33  ;;  %v5936_v40 = vor.u32 %v7939_v35, %v5935_v34  ;;  %v5895_v41 = vld [vmem:[#allocation4 + $0xc0] sm:$0xf]  ;;  %v7926_v43 = vld [vmem:[#allocation4 + $0xc4] sm:$0xf]  ;;  %v5940_v44 = vor.u32 %v7935_v36, %v5937_v37  ;;  %v5903_v46 = vld [vmem:[#allocation4 + $0xc8] sm:$0xf] }
  0x53   :  { %v7930_v42 = vld [vmem:[#allocation4 + $0xdc] sm:$0xf0]  ;;  %v5897_v45 = vld [vmem:[#allocation4 + $0xe0] sm:$0xf0]  ;;  %v7931_v47 = vld [vmem:[#allocation4 + $0xe4] sm:$0xf0] }
  0x54   :  { %597 = vmatpush.bf16.msrb.mxu0 %v5676_v53  ;;  %611 = vmatpush.bf16.msrb.mxu1 %v5680_v54  ;;  %v7927_v48 = vld [vmem:[#allocation4 + $0xcc] sm:$0xf]  ;;  %v5896_v50 = vor.u32 %v7930_v42, %v5895_v41  ;;  %v5900_v51 = vor.u32 %v7926_v43, %v5897_v45  ;;  %v5904_v52 = vor.u32 %v7931_v47, %v5903_v46  ;;  %v5863_v53 = vld [vmem:[#allocation4 + $0x80] sm:$0xf]  ;;  %v5865_v57 = vld [vmem:[#allocation4 + $0xa0] sm:$0xf0] }
  0x55   :  { %625 = vmatpush.bf16.msrb.mxu2 %v5684_v55  ;;  %v5905_v49 = vld [vmem:[#allocation4 + $0xe8] sm:$0xf0]  ;;  %v7922_v54 = vld [vmem:[#allocation4 + $0x9c] sm:$0xf0]  ;;  %v7918_v55 = vld [vmem:[#allocation4 + $0x84] sm:$0xf] }
  0x56   :  { %639 = vmatpush.bf16.msrb.mxu3 %v5688_v59  ;;  %v5908_v56 = vor.u32 %v7927_v48, %v5905_v49  ;;  %v5871_v58 = vld [vmem:[#allocation4 + $0x88] sm:$0xf]  ;;  %v7919_v60 = vld [vmem:[#allocation4 + $0x8c] sm:$0xf]  ;;  %v5864_v62 = vor.u32 %v7922_v54, %v5863_v53  ;;  %v5831_v0 = vld [vmem:[#allocation4 + $0x40] sm:$0xf] }
  0x57   :  { %v7923_v59 = vld [vmem:[#allocation4 + $0xa4] sm:$0xf0]  ;;  %v5873_v61 = vld [vmem:[#allocation4 + $0xa8] sm:$0xf0]  ;;  %v7910_v2 = vld [vmem:[#allocation4 + $0x44] sm:$0xf] }
  0x58   :  { %598 = vmatpush.bf16.msrb.mxu0 %v5644_v1  ;;  %612 = vmatpush.bf16.msrb.mxu1 %v5648_v4  ;;  %v5872_v63 = vor.u32 %v7923_v59, %v5871_v58  ;;  %v7914_v1 = vld [vmem:[#allocation4 + $0x5c] sm:$0xf0]  ;;  %v5876_v3 = vor.u32 %v7919_v60, %v5873_v61  ;;  %v5833_v4 = vld [vmem:[#allocation4 + $0x60] sm:$0xf0]  ;;  %v7915_v6 = vld [vmem:[#allocation4 + $0x64] sm:$0xf0] }
  0x59   :  { %626 = vmatpush.bf16.msrb.mxu2 %v5652_v5  ;;  %v5839_v5 = vld [vmem:[#allocation4 + $0x48] sm:$0xf]  ;;  %v7911_v7 = vld [vmem:[#allocation4 + $0x4c] sm:$0xf]  ;;  %v5799_v10 = vld [vmem:[#allocation4] sm:$0xf]  ;;  %v5836_v12 = vor.u32 %v7910_v2, %v5833_v4 }
  0x5a   :  { %640 = vmatpush.bf16.msrb.mxu3 %v5656_v9  ;;  %v5841_v8 = vld [vmem:[#allocation4 + $0x68] sm:$0xf0]  ;;  %v5832_v9 = vor.u32 %v7914_v1, %v5831_v0  ;;  %v7906_v11 = vld [vmem:[#allocation4 + $0x1c] sm:$0xf0]  ;;  %v5840_v13 = vor.u32 %v7915_v6, %v5839_v5  ;;  %v7902_v14 = vld [vmem:[#allocation4 + $0x4] sm:$0xf] }
  0x5b   :  { %v5801_v15 = vld [vmem:[#allocation4 + $0x20] sm:$0xf0]  ;;  %v5844_v17 = vor.u32 %v7911_v7, %v5841_v8  ;;  %v7907_v18 = vld [vmem:[#allocation4 + $0x24] sm:$0xf0]  ;;  %v7903_v19 = vld [vmem:[#allocation4 + $0xc] sm:$0xf] }
  0x5c   :  { %599 = vmatpush.bf16.msrb.mxu0 %v5612_v16  ;;  %613 = vmatpush.bf16.msrb.mxu1 %v5616_v20  ;;  %v5807_v16 = vld [vmem:[#allocation4 + $0x8] sm:$0xf]  ;;  %v5809_v20 = vld [vmem:[#allocation4 + $0x28] sm:$0xf0]  ;;  %v7948_v22 = vld [vmem:[#allocation4 + $0x16c] sm:$0xf0]  ;;  %v5804_v29 = vor.u32 %v7902_v14, %v5801_v15 }
  0x5d   :  { %627 = vmatpush.bf16.msrb.mxu2 %v5620_v21  ;;  %v5975_v21 = vld [vmem:[#allocation4 + $0x150] sm:$0xf]  ;;  %v7944_v23 = vld [vmem:[#allocation4 + $0x154] sm:$0xf]  ;;  %v5808_v30 = vor.u32 %v7907_v18, %v5807_v16  ;;  %v7945_v31 = vld [vmem:[#allocation4 + $0x15c] sm:$0xf]  ;;  %v5812_v33 = vor.u32 %v7903_v19, %v5809_v20 }
  0x5e   :  { %641 = vmatpush.bf16.msrb.mxu3 %v5624_v24  ;;  %v5800_v24 = vor.u32 %v7906_v11, %v5799_v10  ;;  %v5976_v34 = vor.u32 %v7948_v22, %v5975_v21  ;;  %v8880_v35 = vld [vmem:[%s9557_s0] sm:$0xff]  ;;  %v5945_v42 = vld [vmem:[#allocation4 + $0x130] sm:$0xf0]  ;;  %v5951_v43 = vld [vmem:[#allocation4 + $0x118] sm:$0xf]  ;;  %vm3845_vm2 = vcmask 1041408  }
  0x5f   :  { %5789 = vmatmul.msk.bf16.vlgmr.msrb.gmra.mxu0 %vm532_vm0, %v8859_v28  ;;  %5790 = vmatmul.msk.bf16.vlgmr.msrb.gmra.mxu1 %vm532_vm0, %v8859_v28  ;;  %v7937_v45 = vld [vmem:[#allocation4 + $0x11c] sm:$0xf]  ;;  %v5913_v54 = vld [vmem:[#allocation4 + $0xf0] sm:$0xf0]  ;;  %v5887_v2 = vld [vmem:[#allocation4 + $0x98] sm:$0xf] }
  0x60   :  { %898 = vmatpush.bf16.msra.mxu0 %v5960_v25  ;;  %912 = vmatpush.bf16.msra.mxu1 %v5964_v26  ;;  %v5977_v25 = vld [vmem:[#allocation4 + $0x170] sm:$0xf0]  ;;  %v5983_v26 = vld [vmem:[#allocation4 + $0x158] sm:$0xf]  ;;  %v5953_v46 = vld [vmem:[#allocation4 + $0x138] sm:$0xf0] }
  0x61   :  { %926 = vmatpush.bf16.msra.mxu2 %v5968_v27  ;;  %5792 = vmatmul.msk.bf16.vlgmr.msrb.gmra.mxu3 %vm532_vm0, %v8859_v28  ;;  %v7949_v27 = vld [vmem:[#allocation4 + $0x174] sm:$0xf0]  ;;  %v5980_v36 = vor.u32 %v7944_v23, %v5977_v25  ;;  %v5956_v53 = vor.u32 %v7937_v45, %v5953_v46  ;;  %v5921_v58 = vld [vmem:[#allocation4 + $0xf8] sm:$0xf0]  ;;  %v5881_v1 = vld [vmem:[#allocation4 + $0xb0] sm:$0xf0] }
  0x62   :  { %940 = vmatpush.bf16.msra.mxu3 %v5972_v32  ;;  %5791 = vmatmul.msk.bf16.vlgmr.msrb.gmra.mxu2 %vm532_vm0, %v8859_v28  ;;  %v5868_v28 = vor.u32 %v7918_v55, %v5865_v57  ;;  %v5985_v32 = vld [vmem:[#allocation4 + $0x178] sm:$0xf0]  ;;  %v5984_v37 = vor.u32 %v7949_v27, %v5983_v26  ;;  %v5919_v55 = vld [vmem:[#allocation4 + $0xd8] sm:$0xf]  ;;  %v7916_v10 = vld [vmem:[#allocation4 + $0x6c] sm:$0xf0] }
  0x63   :  { %v5988_v41 = vor.u32 %v7945_v31, %v5985_v32  ;;  %v7929_v57 = vld [vmem:[#allocation4 + $0xdc] sm:$0xf]  ;;  %v7912_v11 = vld [vmem:[#allocation4 + $0x54] sm:$0xf]  ;;  %v5855_v14 = vld [vmem:[#allocation4 + $0x58] sm:$0xf] }
  0x64   :  { %899 = vmatpush.bf16.msra.mxu0 %v5928_v38  ;;  %913 = vmatpush.bf16.msra.mxu1 %v5932_v39  ;;  %v5943_v38 = vld [vmem:[#allocation4 + $0x110] sm:$0xf]  ;;  %v5924_v0 = vor.u32 %v7929_v57, %v5921_v58  ;;  %v7921_v4 = vld [vmem:[#allocation4 + $0x9c] sm:$0xf]  ;;  %v7917_v15 = vld [vmem:[#allocation4 + $0x74] sm:$0xf0] }
  0x65   :  { %927 = vmatpush.bf16.msra.mxu2 %v5936_v40  ;;  %v7940_v39 = vld [vmem:[#allocation4 + $0x12c] sm:$0xf0]  ;;  %v7936_v40 = vld [vmem:[#allocation4 + $0x114] sm:$0xf]  ;;  %v5889_v5 = vld [vmem:[#allocation4 + $0xb8] sm:$0xf0]  ;;  %v5856_v23 = vor.u32 %v7917_v15, %v5855_v14 }
  0x66   :  { %941 = vmatpush.bf16.msra.mxu3 %v5940_v44  ;;  %v7941_v44 = vld [vmem:[#allocation4 + $0x134] sm:$0xf0]  ;;  %v5944_v47 = vor.u32 %v7940_v39, %v5943_v38  ;;  %v5948_v48 = vor.u32 %v7936_v40, %v5945_v42  ;;  %v7913_v16 = vld [vmem:[#allocation4 + $0x5c] sm:$0xf]  ;;  %v5815_v19 = vld [vmem:[#allocation4 + $0x10] sm:$0xf] }
  0x67   :  { %v5952_v49 = vor.u32 %v7941_v44, %v5951_v43  ;;  %v7908_v20 = vld [vmem:[#allocation4 + $0x2c] sm:$0xf0]  ;;  %v7904_v21 = vld [vmem:[#allocation4 + $0x14] sm:$0xf]  ;;  %v5823_v25 = vld [vmem:[#allocation4 + $0x18] sm:$0xf] }
  0x68   :  { %900 = vmatpush.bf16.msra.mxu0 %v5896_v50  ;;  %914 = vmatpush.bf16.msra.mxu1 %v5900_v51  ;;  %v5911_v50 = vld [vmem:[#allocation4 + $0xd0] sm:$0xf]  ;;  %v7909_v26 = vld [vmem:[#allocation4 + $0x34] sm:$0xf0]  ;;  %v6165_v31 = vld [vmem:[#allocation4 + $0x440] sm:$0xf] }
  0x69   :  { %928 = vmatpush.bf16.msra.mxu2 %v5904_v52  ;;  %v7932_v51 = vld [vmem:[#allocation4 + $0xec] sm:$0xf0]  ;;  %v7928_v52 = vld [vmem:[#allocation4 + $0xd4] sm:$0xf]  ;;  %v8044_v32 = vld [vmem:[#allocation4 + $0x45c] sm:$0xf0]  ;;  %v5824_v40 = vor.u32 %v7909_v26, %v5823_v25 }
  0x6a   :  { %942 = vmatpush.bf16.msra.mxu3 %v5908_v56  ;;  %v7933_v56 = vld [vmem:[#allocation4 + $0xf4] sm:$0xf0]  ;;  %v5912_v59 = vor.u32 %v7932_v51, %v5911_v50  ;;  %v5916_v60 = vor.u32 %v7928_v52, %v5913_v54  ;;  %v8045_v38 = vld [vmem:[#allocation4 + $0x464] sm:$0xf0]  ;;  %v6175_v42 = vld [vmem:[#allocation4 + $0x468] sm:$0xf0]  ;;  %v6166_v44 = vor.u32 %v8044_v32, %v6165_v31 }
  0x6b   :  { %v5920_v61 = vor.u32 %v7933_v56, %v5919_v55  ;;  %v6133_v45 = vld [vmem:[#allocation4 + $0x400] sm:$0xf]  ;;  %v6135_v50 = vld [vmem:[#allocation4 + $0x420] sm:$0xf0]  ;;  %v6141_v51 = vld [vmem:[#allocation4 + $0x408] sm:$0xf] }
  0x6c   :  { %901 = vmatpush.bf16.msra.mxu0 %v5864_v62  ;;  %915 = vmatpush.bf16.msra.mxu1 %v5868_v28  ;;  %v5879_v62 = vld [vmem:[#allocation4 + $0x90] sm:$0xf]  ;;  %v8036_v46 = vld [vmem:[#allocation4 + $0x41c] sm:$0xf0]  ;;  %v8033_v54 = vld [vmem:[#allocation4 + $0x40c] sm:$0xf] }
  0x6d   :  { %929 = vmatpush.bf16.msra.mxu2 %v5872_v63  ;;  %v7924_v28 = vld [vmem:[#allocation4 + $0xac] sm:$0xf0]  ;;  %v7920_v63 = vld [vmem:[#allocation4 + $0x94] sm:$0xf]  ;;  %v6143_v55 = vld [vmem:[#allocation4 + $0x428] sm:$0xf0]  ;;  %v6134_v56 = vor.u32 %v8036_v46, %v6133_v45 }
  0x6e   :  { %943 = vmatpush.bf16.msra.mxu3 %v5876_v3  ;;  %v7925_v3 = vld [vmem:[#allocation4 + $0xb4] sm:$0xf0]  ;;  %v5880_v6 = vor.u32 %v7924_v28, %v5879_v62  ;;  %v5884_v7 = vor.u32 %v7920_v63, %v5881_v1  ;;  %v6146_v62 = vor.u32 %v8033_v54, %v6143_v55  ;;  %v6103_v28 = vld [vmem:[#allocation4 + $0x3e0] sm:$0xf0]  ;;  %v6109_v63 = vld [vmem:[#allocation4 + $0x3c8] sm:$0xf] }
  0x6f   :  { %v5888_v8 = vor.u32 %v7925_v3, %v5887_v2  ;;  %v8025_v1 = vld [vmem:[#allocation4 + $0x3cc] sm:$0xf]  ;;  %v8000_v32 = vld [vmem:[#allocation4 + $0x304] sm:$0xf]  ;;  %v6189_v45 = vld [vmem:[#allocation4 + $0x458] sm:$0xf] }
  0x70   :  { %902 = vmatpush.bf16.msra.mxu0 %v5832_v9  ;;  %916 = vmatpush.bf16.msra.mxu1 %v5836_v12  ;;  %v5847_v9 = vld [vmem:[#allocation4 + $0x50] sm:$0xf]  ;;  %v5892_v12 = vor.u32 %v7921_v4, %v5889_v5  ;;  %v6111_v2 = vld [vmem:[#allocation4 + $0x3e8] sm:$0xf0]  ;;  %v8047_v46 = vld [vmem:[#allocation4 + $0x474] sm:$0xf0] }
  0x71   :  { %930 = vmatpush.bf16.msra.mxu2 %v5840_v13  ;;  %v5849_v13 = vld [vmem:[#allocation4 + $0x70] sm:$0xf0]  ;;  %v5848_v18 = vor.u32 %v7916_v10, %v5847_v9  ;;  %v6114_v9 = vor.u32 %v8025_v1, %v6111_v2  ;;  %v6071_v10 = vld [vmem:[#allocation4 + $0x3a0] sm:$0xf0]  ;;  %v6079_v14 = vld [vmem:[#allocation4 + $0x3a8] sm:$0xf0]  ;;  %v6190_v55 = vor.u32 %v8047_v46, %v6189_v45 }
  0x72   :  { %944 = vmatpush.bf16.msra.mxu3 %v5844_v17  ;;  %v5857_v17 = vld [vmem:[#allocation4 + $0x78] sm:$0xf0]  ;;  %v5852_v22 = vor.u32 %v7912_v11, %v5849_v13  ;;  %v6077_v11 = vld [vmem:[#allocation4 + $0x388] sm:$0xf]  ;;  %v8017_v13 = vld [vmem:[#allocation4 + $0x38c] sm:$0xf] }
  0x73   :  { %v5860_v27 = vor.u32 %v7913_v16, %v5857_v17  ;;  %v6037_v17 = vld [vmem:[#allocation4 + $0x340] sm:$0xf]  ;;  %v6047_v25 = vld [vmem:[#allocation4 + $0x368] sm:$0xf0]  ;;  %v8007_v46 = vld [vmem:[#allocation4 + $0x334] sm:$0xf0] }
  0x74   :  { %903 = vmatpush.bf16.msra.mxu0 %v5800_v24  ;;  %917 = vmatpush.bf16.msra.mxu1 %v5804_v29  ;;  %v5817_v24 = vld [vmem:[#allocation4 + $0x30] sm:$0xf0]  ;;  %v7905_v29 = vld [vmem:[#allocation4 + $0x1c] sm:$0xf]  ;;  %vm1924_vm1 = vsmask.f32 7424 }
  0x75   :  { %931 = vmatpush.bf16.msra.mxu2 %v5808_v30  ;;  %v5825_v30 = vld [vmem:[#allocation4 + $0x38] sm:$0xf0]  ;;  %v5820_v39 = vor.u32 %v7904_v21, %v5817_v24  ;;  %v6039_v21 = vld [vmem:[#allocation4 + $0x360] sm:$0xf0]  ;;  %v8009_v24 = vld [vmem:[#allocation4 + $0x34c] sm:$0xf] }
  0x76   :  { %945 = vmatpush.bf16.msra.mxu3 %v5812_v33  ;;  %v8040_v33 = vld [vmem:[#allocation4 + $0x444] sm:$0xf]  ;;  %v5828_v43 = vor.u32 %v7905_v29, %v5825_v30  ;;  %v8004_v29 = vld [vmem:[#allocation4 + $0x31c] sm:$0xf0]  ;;  %vm3653_vm3 = vcmask 683008   ;;  %vm3841_vm4 = vcmask 687104  }
  0x77   :  { %5989 = vmatmul.msk.bf16.vlgmr.msra.gmra.mxu0 %vm532_vm0, %v8880_v35  ;;  %5990 = vmatmul.msk.bf16.vlgmr.msra.gmra.mxu1 %vm532_vm0, %v8880_v35  ;;  %vm4597_vm5 = vcmask 1046528   ;;  %vm5025_vm6 = vcmask 650240   ;;  %vm5103_vm7 = vcmask 654336   ;;  %vm5249_vm8 = vsmask.f32 6400 }
  0x78   :  { %954 = vmatpush.bf16.msrb.mxu0 %v5976_v34  ;;  %968 = vmatpush.bf16.msrb.mxu1 %v5980_v36  ;;  %v5816_v34 = vor.u32 %v7908_v20, %v5815_v19  ;;  %v6167_v36 = vld [vmem:[#allocation4 + $0x460] sm:$0xf0]  ;;  %v6082_v20 = vor.u32 %v8017_v13, %v6079_v14  ;;  %vm5331_vm9 = vcmask 1045504   ;;  %vm5461_vm10 = vcmask 1043456  }
  0x79   :  { %982 = vmatpush.bf16.msrb.mxu2 %v5984_v37  ;;  %5992 = vmatmul.msk.bf16.vlgmr.msra.gmra.mxu3 %vm532_vm0, %v8880_v35  ;;  %v6173_v37 = vld [vmem:[#allocation4 + $0x448] sm:$0xf]  ;;  %v8008_v19 = vld [vmem:[#allocation4 + $0x344] sm:$0xf]  ;;  %vm5457_vm11 = vcmask 982016   ;;  %vm5550_vm12 = vcmask 80896  }
  0x7a   :  { %996 = vmatpush.bf16.msrb.mxu3 %v5988_v41  ;;  %5991 = vmatmul.msk.bf16.vlgmr.msra.gmra.mxu2 %vm532_vm0, %v8880_v35  ;;  %v8041_v41 = vld [vmem:[#allocation4 + $0x44c] sm:$0xf]  ;;  %v6042_v30 = vor.u32 %v8008_v19, %v6039_v21  ;;  %v6093_v19 = vld [vmem:[#allocation4 + $0x398] sm:$0xf]  ;;  %v8019_v21 = vld [vmem:[#allocation4 + $0x39c] sm:$0xf] }
  0x7b   :  { %v6178_v52 = vor.u32 %v8041_v41, %v6175_v42  ;;  %v8046_v41 = vld [vmem:[#allocation4 + $0x46c] sm:$0xf0]  ;;  %v8042_v42 = vld [vmem:[#allocation4 + $0x454] sm:$0xf] }
  0x7c   :  { %955 = vmatpush.bf16.msrb.mxu0 %v5944_v47  ;;  %969 = vmatpush.bf16.msrb.mxu1 %v5948_v48  ;;  %v6170_v47 = vor.u32 %v8040_v33, %v6167_v36  ;;  %v6174_v48 = vor.u32 %v8045_v38, %v6173_v37  ;;  %v6007_v33 = vld [vmem:[#allocation4 + $0x320] sm:$0xf0]  ;;  %v6050_v36 = vor.u32 %v8009_v24, %v6047_v25  ;;  %v8005_v37 = vld [vmem:[#allocation4 + $0x324] sm:$0xf0]  ;;  %v8001_v38 = vld [vmem:[#allocation4 + $0x30c] sm:$0xf] }
  0x7d   :  { %983 = vmatpush.bf16.msrb.mxu2 %v5952_v49  ;;  %v8032_v49 = vld [vmem:[#allocation4 + $0x404] sm:$0xf] }
  0x7e   :  { %997 = vmatpush.bf16.msrb.mxu3 %v5956_v53  ;;  %v8037_v53 = vld [vmem:[#allocation4 + $0x424] sm:$0xf0]  ;;  %v6138_v57 = vor.u32 %v8032_v49, %v6135_v50  ;;  %v8043_v49 = vld [vmem:[#allocation4 + $0x45c] sm:$0xf] }
  0x7f   :  { %v6142_v58 = vor.u32 %v8037_v53, %v6141_v51  ;;  %v6191_v50 = vld [vmem:[#allocation4 + $0x478] sm:$0xf0]  ;;  %v8901_v53 = vld [vmem:[%s9557_s0 + $0x18] sm:$0xff] }
  0x80   :  { %956 = vmatpush.bf16.msrb.mxu0 %v5912_v59  ;;  %970 = vmatpush.bf16.msrb.mxu1 %v5916_v60  ;;  %v6101_v59 = vld [vmem:[#allocation4 + $0x3c0] sm:$0xf] }
  0x81   :  { %984 = vmatpush.bf16.msrb.mxu2 %v5920_v61  ;;  %v8028_v60 = vld [vmem:[#allocation4 + $0x3dc] sm:$0xf0]  ;;  %v8024_v61 = vld [vmem:[#allocation4 + $0x3c4] sm:$0xf] }
  0x82   :  { %998 = vmatpush.bf16.msrb.mxu3 %v5924_v0  ;;  %v8029_v0 = vld [vmem:[#allocation4 + $0x3e4] sm:$0xf0]  ;;  %v6102_v3 = vor.u32 %v8028_v60, %v6101_v59  ;;  %v6106_v4 = vor.u32 %v8024_v61, %v6103_v28  ;;  %v6194_v59 = vor.u32 %v8043_v49, %v6191_v50  ;;  %v6151_v60 = vld [vmem:[#allocation4 + $0x430] sm:$0xf0]  ;;  %v6157_v61 = vld [vmem:[#allocation4 + $0x418] sm:$0xf] }
  0x83   :  { %v6110_v5 = vor.u32 %v8029_v0, %v6109_v63  ;;  %v8035_v28 = vld [vmem:[#allocation4 + $0x41c] sm:$0xf]  ;;  %v6371_v49 = vld [vmem:[#allocation4 + $0x5c0] sm:$0xf] }
  0x84   :  { %957 = vmatpush.bf16.msrb.mxu0 %v5880_v6  ;;  %971 = vmatpush.bf16.msrb.mxu1 %v5884_v7  ;;  %v6069_v6 = vld [vmem:[#allocation4 + $0x380] sm:$0xf]  ;;  %v6159_v63 = vld [vmem:[#allocation4 + $0x438] sm:$0xf0] }
  0x85   :  { %985 = vmatpush.bf16.msrb.mxu2 %v5888_v8  ;;  %v8020_v7 = vld [vmem:[#allocation4 + $0x39c] sm:$0xf0]  ;;  %v8016_v8 = vld [vmem:[#allocation4 + $0x384] sm:$0xf] }
  0x86   :  { %999 = vmatpush.bf16.msrb.mxu3 %v5892_v12  ;;  %v8021_v12 = vld [vmem:[#allocation4 + $0x3a4] sm:$0xf0]  ;;  %v6070_v15 = vor.u32 %v8020_v7, %v6069_v6  ;;  %v6162_v6 = vor.u32 %v8035_v28, %v6159_v63  ;;  %v6119_v7 = vld [vmem:[#allocation4 + $0x3f0] sm:$0xf0]  ;;  %v8093_v50 = vld [vmem:[#allocation4 + $0x5dc] sm:$0xf0] }
  0x87   :  { %v6078_v16 = vor.u32 %v8021_v12, %v6077_v11  ;;  %v6127_v11 = vld [vmem:[#allocation4 + $0x3f8] sm:$0xf0] }
  0x88   :  { %958 = vmatpush.bf16.msrb.mxu0 %v5848_v18  ;;  %972 = vmatpush.bf16.msrb.mxu1 %v5852_v22  ;;  %v8012_v18 = vld [vmem:[#allocation4 + $0x35c] sm:$0xf0]  ;;  %v6045_v22 = vld [vmem:[#allocation4 + $0x348] sm:$0xf] }
  0x89   :  { %986 = vmatpush.bf16.msrb.mxu2 %v5856_v23  ;;  %v8013_v23 = vld [vmem:[#allocation4 + $0x364] sm:$0xf0]  ;;  %v6038_v26 = vor.u32 %v8012_v18, %v6037_v17  ;;  %v6087_v18 = vld [vmem:[#allocation4 + $0x3b0] sm:$0xf0] }
  0x8a   :  { %1000 = vmatpush.bf16.msrb.mxu3 %v5860_v27  ;;  %v6005_v27 = vld [vmem:[#allocation4 + $0x300] sm:$0xf]  ;;  %v6046_v31 = vor.u32 %v8013_v23, %v6045_v22  ;;  %v6095_v22 = vld [vmem:[#allocation4 + $0x3b8] sm:$0xf0] }
  0x8c   :  { %959 = vmatpush.bf16.msrb.mxu0 %v5816_v34  ;;  %973 = vmatpush.bf16.msrb.mxu1 %v5820_v39  ;;  %v6013_v34 = vld [vmem:[#allocation4 + $0x308] sm:$0xf]  ;;  %v6015_v39 = vld [vmem:[#allocation4 + $0x328] sm:$0xf0] }
  0x8d   :  { %987 = vmatpush.bf16.msrb.mxu2 %v5824_v40  ;;  %v6181_v40 = vld [vmem:[#allocation4 + $0x450] sm:$0xf]  ;;  %v6018_v51 = vor.u32 %v8001_v38, %v6015_v39 }
  0x8e   :  { %1001 = vmatpush.bf16.msrb.mxu3 %v5828_v43  ;;  %v6006_v43 = vor.u32 %v8004_v29, %v6005_v27  ;;  %v8014_v27 = vld [vmem:[#allocation4 + $0x36c] sm:$0xf0]  ;;  %v8010_v29 = vld [vmem:[#allocation4 + $0x354] sm:$0xf] }
  0x8f   :  { %5993 = vmatmul.msk.bf16.vlgmr.msrb.gmra.mxu0 %vm532_vm0, %v8880_v35  ;;  %5994 = vmatmul.msk.bf16.vlgmr.msrb.gmra.mxu1 %vm532_vm0, %v8880_v35  ;;  %v6021_v38 = vld [vmem:[#allocation4 + $0x310] sm:$0xf] }
  0x90   :  { %1310 = vmatpush.bf16.msra.mxu0 %v6166_v44  ;;  %1324 = vmatpush.bf16.msra.mxu1 %v6170_v47  ;;  %v6183_v44 = vld [vmem:[#allocation4 + $0x470] sm:$0xf0]  ;;  %v6010_v47 = vor.u32 %v8000_v32, %v6007_v33  ;;  %v6061_v32 = vld [vmem:[#allocation4 + $0x358] sm:$0xf]  ;;  %v8006_v39 = vld [vmem:[#allocation4 + $0x32c] sm:$0xf0] }
  0x91   :  { %1338 = vmatpush.bf16.msra.mxu2 %v6174_v48  ;;  %5996 = vmatmul.msk.bf16.vlgmr.msrb.gmra.mxu3 %vm532_vm0, %v8880_v35  ;;  %v6014_v48 = vor.u32 %v8005_v37, %v6013_v34  ;;  %v6186_v54 = vor.u32 %v8042_v42, %v6183_v44  ;;  %v8015_v33 = vld [vmem:[#allocation4 + $0x374] sm:$0xf0]  ;;  %v8011_v34 = vld [vmem:[#allocation4 + $0x35c] sm:$0xf]  ;;  %v8002_v42 = vld [vmem:[#allocation4 + $0x314] sm:$0xf] }
  0x92   :  { %1352 = vmatpush.bf16.msra.mxu3 %v6178_v52  ;;  %5995 = vmatmul.msk.bf16.vlgmr.msrb.gmra.mxu2 %vm532_vm0, %v8880_v35  ;;  %v6074_v35 = vor.u32 %v8016_v8, %v6071_v10  ;;  %v6182_v52 = vor.u32 %v8046_v41, %v6181_v40  ;;  %v6125_v8 = vld [vmem:[#allocation4 + $0x3d8] sm:$0xf]  ;;  %v8027_v10 = vld [vmem:[#allocation4 + $0x3dc] sm:$0xf]  ;;  %v6062_v41 = vor.u32 %v8015_v33, %v6061_v32  ;;  %v6285_v32 = vld [vmem:[#allocation4 + $0x528] sm:$0xf0] }
  0x93   :  { %v6130_v17 = vor.u32 %v8027_v10, %v6127_v11  ;;  %v6029_v44 = vld [vmem:[#allocation4 + $0x318] sm:$0xf] }
  0x94   :  { %1311 = vmatpush.bf16.msra.mxu0 %v6134_v56  ;;  %1325 = vmatpush.bf16.msra.mxu1 %v6138_v57  ;;  %v6149_v56 = vld [vmem:[#allocation4 + $0x410] sm:$0xf] }
  0x95   :  { %1339 = vmatpush.bf16.msra.mxu2 %v6142_v58  ;;  %v8038_v57 = vld [vmem:[#allocation4 + $0x42c] sm:$0xf0]  ;;  %v8034_v58 = vld [vmem:[#allocation4 + $0x414] sm:$0xf] }
  0x96   :  { %1353 = vmatpush.bf16.msra.mxu3 %v6146_v62  ;;  %v8039_v62 = vld [vmem:[#allocation4 + $0x434] sm:$0xf0]  ;;  %v6150_v0 = vor.u32 %v8038_v57, %v6149_v56  ;;  %v6154_v1 = vor.u32 %v8034_v58, %v6151_v60  ;;  %v8094_v56 = vld [vmem:[#allocation4 + $0x5e4] sm:$0xf0]  ;;  %v6030_v58 = vor.u32 %v8007_v46, %v6029_v44  ;;  %v6381_v60 = vld [vmem:[#allocation4 + $0x5e8] sm:$0xf0] }
  0x97   :  { %v6158_v2 = vor.u32 %v8039_v62, %v6157_v61  ;;  %v6372_v62 = vor.u32 %v8093_v50, %v6371_v49  ;;  %v6253_v44 = vld [vmem:[#allocation4 + $0x4e8] sm:$0xf0]  ;;  %v6211_v46 = vld [vmem:[#allocation4 + $0x480] sm:$0xf]  ;;  %v8049_v50 = vld [vmem:[#allocation4 + $0x484] sm:$0xf] }
  0x98   :  { %1312 = vmatpush.bf16.msra.mxu0 %v6102_v3  ;;  %1326 = vmatpush.bf16.msra.mxu1 %v6106_v4  ;;  %v6117_v3 = vld [vmem:[#allocation4 + $0x3d0] sm:$0xf] }
  0x99   :  { %1340 = vmatpush.bf16.msra.mxu2 %v6110_v5  ;;  %v8030_v4 = vld [vmem:[#allocation4 + $0x3ec] sm:$0xf0]  ;;  %v8026_v5 = vld [vmem:[#allocation4 + $0x3d4] sm:$0xf] }
  0x9a   :  { %1354 = vmatpush.bf16.msra.mxu3 %v6114_v9  ;;  %v8031_v9 = vld [vmem:[#allocation4 + $0x3f4] sm:$0xf0]  ;;  %v6118_v12 = vor.u32 %v8030_v4, %v6117_v3  ;;  %v6122_v13 = vor.u32 %v8026_v5, %v6119_v7  ;;  %v6341_v4 = vld [vmem:[#allocation4 + $0x5a0] sm:$0xf0]  ;;  %v6347_v5 = vld [vmem:[#allocation4 + $0x588] sm:$0xf] }
  0x9b   :  { %v6126_v14 = vor.u32 %v8031_v9, %v6125_v8  ;;  %v8082_v7 = vld [vmem:[#allocation4 + $0x58c] sm:$0xf] }
  0x9c   :  { %1313 = vmatpush.bf16.msra.mxu0 %v6070_v15  ;;  %1327 = vmatpush.bf16.msra.mxu1 %v6074_v35  ;;  %v6085_v15 = vld [vmem:[#allocation4 + $0x390] sm:$0xf]  ;;  %v6349_v8 = vld [vmem:[#allocation4 + $0x5a8] sm:$0xf0] }
  0x9d   :  { %1341 = vmatpush.bf16.msra.mxu2 %v6078_v16  ;;  %v8022_v35 = vld [vmem:[#allocation4 + $0x3ac] sm:$0xf0]  ;;  %v8018_v16 = vld [vmem:[#allocation4 + $0x394] sm:$0xf] }
  0x9e   :  { %1355 = vmatpush.bf16.msra.mxu3 %v6082_v20  ;;  %v8023_v20 = vld [vmem:[#allocation4 + $0x3b4] sm:$0xf0]  ;;  %v6086_v23 = vor.u32 %v8022_v35, %v6085_v15  ;;  %v6090_v24 = vor.u32 %v8018_v16, %v6087_v18  ;;  %v6352_v15 = vor.u32 %v8082_v7, %v6349_v8  ;;  %v6309_v35 = vld [vmem:[#allocation4 + $0x560] sm:$0xf0]  ;;  %v6315_v16 = vld [vmem:[#allocation4 + $0x548] sm:$0xf] }
  0x9f   :  { %v6094_v25 = vor.u32 %v8023_v20, %v6093_v19  ;;  %v8074_v18 = vld [vmem:[#allocation4 + $0x54c] sm:$0xf] }
  0xa0   :  { %1314 = vmatpush.bf16.msra.mxu0 %v6038_v26  ;;  %1328 = vmatpush.bf16.msra.mxu1 %v6042_v30  ;;  %v6053_v26 = vld [vmem:[#allocation4 + $0x350] sm:$0xf]  ;;  %v6098_v30 = vor.u32 %v8019_v21, %v6095_v22  ;;  %v6317_v19 = vld [vmem:[#allocation4 + $0x568] sm:$0xf0] }
  0xa1   :  { %1342 = vmatpush.bf16.msra.mxu2 %v6046_v31  ;;  %v6055_v31 = vld [vmem:[#allocation4 + $0x370] sm:$0xf0]  ;;  %v6054_v37 = vor.u32 %v8014_v27, %v6053_v26  ;;  %v6320_v26 = vor.u32 %v8074_v18, %v6317_v19  ;;  %v6277_v27 = vld [vmem:[#allocation4 + $0x520] sm:$0xf0] }
  0xa2   :  { %1356 = vmatpush.bf16.msra.mxu3 %v6050_v36  ;;  %v6063_v36 = vld [vmem:[#allocation4 + $0x378] sm:$0xf0]  ;;  %v6058_v40 = vor.u32 %v8010_v29, %v6055_v31  ;;  %v6283_v29 = vld [vmem:[#allocation4 + $0x508] sm:$0xf]  ;;  %v8066_v31 = vld [vmem:[#allocation4 + $0x50c] sm:$0xf] }
  0xa3   :  { %v6066_v45 = vor.u32 %v8011_v34, %v6063_v36  ;;  %v6243_v36 = vld [vmem:[#allocation4 + $0x4c0] sm:$0xf] }
  0xa4   :  { %1315 = vmatpush.bf16.msra.mxu0 %v6006_v43  ;;  %1329 = vmatpush.bf16.msra.mxu1 %v6010_v47  ;;  %v6023_v43 = vld [vmem:[#allocation4 + $0x330] sm:$0xf0]  ;;  %v8003_v47 = vld [vmem:[#allocation4 + $0x31c] sm:$0xf] }
  0xa5   :  { %1343 = vmatpush.bf16.msra.mxu2 %v6014_v48  ;;  %v6031_v48 = vld [vmem:[#allocation4 + $0x338] sm:$0xf0]  ;;  %v6026_v57 = vor.u32 %v8002_v42, %v6023_v43  ;;  %v8062_v42 = vld [vmem:[#allocation4 + $0x4e4] sm:$0xf0]  ;;  %v8058_v43 = vld [vmem:[#allocation4 + $0x4cc] sm:$0xf] }
  0xa6   :  { %1357 = vmatpush.bf16.msra.mxu3 %v6018_v51  ;;  %v8089_v51 = vld [vmem:[#allocation4 + $0x5c4] sm:$0xf]  ;;  %v6034_v61 = vor.u32 %v8003_v47, %v6031_v48  ;;  %v8053_v47 = vld [vmem:[#allocation4 + $0x49c] sm:$0xf0] }
  0xa7   :  { %6195 = vmatmul.msk.bf16.vlgmr.msra.gmra.mxu0 %vm532_vm0, %v8901_v53  ;;  %6196 = vmatmul.msk.bf16.vlgmr.msra.gmra.mxu1 %vm532_vm0, %v8901_v53 }
  0xa8   :  { %1366 = vmatpush.bf16.msrb.mxu0 %v6182_v52  ;;  %1380 = vmatpush.bf16.msrb.mxu1 %v6186_v54  ;;  %v6022_v52 = vor.u32 %v8006_v39, %v6021_v38  ;;  %v6373_v54 = vld [vmem:[#allocation4 + $0x5e0] sm:$0xf0]  ;;  %v6288_v39 = vor.u32 %v8066_v31, %v6285_v32  ;;  %v6333_v31 = vld [vmem:[#allocation4 + $0x578] sm:$0xf0] }
  0xa9   :  { %1394 = vmatpush.bf16.msrb.mxu2 %v6190_v55  ;;  %6198 = vmatmul.msk.bf16.vlgmr.msra.gmra.mxu3 %vm532_vm0, %v8901_v53  ;;  %v6379_v55 = vld [vmem:[#allocation4 + $0x5c8] sm:$0xf]  ;;  %v6376_v28 = vor.u32 %v8089_v51, %v6373_v54  ;;  %v8057_v38 = vld [vmem:[#allocation4 + $0x4c4] sm:$0xf]  ;;  %v6256_v54 = vor.u32 %v8058_v43, %v6253_v44  ;;  %v8068_v43 = vld [vmem:[#allocation4 + $0x51c] sm:$0xf] }
  0xaa   :  { %1408 = vmatpush.bf16.msrb.mxu3 %v6194_v59  ;;  %6197 = vmatmul.msk.bf16.vlgmr.msra.gmra.mxu2 %vm532_vm0, %v8901_v53  ;;  %v8090_v59 = vld [vmem:[#allocation4 + $0x5cc] sm:$0xf]  ;;  %v6380_v63 = vor.u32 %v8094_v56, %v6379_v55  ;;  %v6213_v51 = vld [vmem:[#allocation4 + $0x4a0] sm:$0xf0]  ;;  %v8054_v55 = vld [vmem:[#allocation4 + $0x4a4] sm:$0xf0] }
  0xab   :  { %v6384_v3 = vor.u32 %v8090_v59, %v6381_v60  ;;  %v8050_v56 = vld [vmem:[#allocation4 + $0x48c] sm:$0xf]  ;;  %v8095_v59 = vld [vmem:[#allocation4 + $0x5ec] sm:$0xf0]  ;;  %v8091_v60 = vld [vmem:[#allocation4 + $0x5d4] sm:$0xf] }
  0xac   :  { %1367 = vmatpush.bf16.msrb.mxu0 %v6150_v0  ;;  %1381 = vmatpush.bf16.msrb.mxu1 %v6154_v1  ;;  %v6339_v0 = vld [vmem:[#allocation4 + $0x580] sm:$0xf]  ;;  %v6301_v44 = vld [vmem:[#allocation4 + $0x538] sm:$0xf0] }
  0xad   :  { %1395 = vmatpush.bf16.msrb.mxu2 %v6158_v2  ;;  %v8085_v1 = vld [vmem:[#allocation4 + $0x59c] sm:$0xf0]  ;;  %v8081_v2 = vld [vmem:[#allocation4 + $0x584] sm:$0xf] }
  0xae   :  { %1409 = vmatpush.bf16.msrb.mxu3 %v6162_v6  ;;  %v8086_v6 = vld [vmem:[#allocation4 + $0x5a4] sm:$0xf0]  ;;  %v6340_v9 = vor.u32 %v8085_v1, %v6339_v0  ;;  %v6344_v10 = vor.u32 %v8081_v2, %v6341_v4  ;;  %v6216_v0 = vor.u32 %v8049_v50, %v6213_v51  ;;  %v8092_v2 = vld [vmem:[#allocation4 + $0x5dc] sm:$0xf]  ;;  %v8063_v50 = vld [vmem:[#allocation4 + $0x4ec] sm:$0xf0] }
  0xaf   :  { %v6348_v11 = vor.u32 %v8086_v6, %v6347_v5  ;;  %v8922_v6 = vld [vmem:[%s9557_s0 + $0x24] sm:$0xff]  ;;  %v8059_v51 = vld [vmem:[#allocation4 + $0x4d4] sm:$0xf] }
  0xb0   :  { %1368 = vmatpush.bf16.msrb.mxu0 %v6118_v12  ;;  %1382 = vmatpush.bf16.msrb.mxu1 %v6122_v13  ;;  %v6307_v12 = vld [vmem:[#allocation4 + $0x540] sm:$0xf] }
  0xb1   :  { %1396 = vmatpush.bf16.msrb.mxu2 %v6126_v14  ;;  %v8077_v13 = vld [vmem:[#allocation4 + $0x55c] sm:$0xf0]  ;;  %v8073_v14 = vld [vmem:[#allocation4 + $0x544] sm:$0xf] }
  0xb2   :  { %1410 = vmatpush.bf16.msrb.mxu3 %v6130_v17  ;;  %v8078_v17 = vld [vmem:[#allocation4 + $0x564] sm:$0xf0]  ;;  %v6308_v20 = vor.u32 %v8077_v13, %v6307_v12  ;;  %v6312_v21 = vor.u32 %v8073_v14, %v6309_v35  ;;  %v6357_v13 = vld [vmem:[#allocation4 + $0x5b0] sm:$0xf0]  ;;  %v6363_v14 = vld [vmem:[#allocation4 + $0x598] sm:$0xf] }
  0xb3   :  { %v6316_v22 = vor.u32 %v8078_v17, %v6315_v16  ;;  %v8084_v35 = vld [vmem:[#allocation4 + $0x59c] sm:$0xf] }
  0xb4   :  { %1369 = vmatpush.bf16.msrb.mxu0 %v6086_v23  ;;  %1383 = vmatpush.bf16.msrb.mxu1 %v6090_v24  ;;  %v6275_v23 = vld [vmem:[#allocation4 + $0x500] sm:$0xf]  ;;  %v6365_v16 = vld [vmem:[#allocation4 + $0x5b8] sm:$0xf0] }
  0xb5   :  { %1397 = vmatpush.bf16.msrb.mxu2 %v6094_v25  ;;  %v8069_v24 = vld [vmem:[#allocation4 + $0x51c] sm:$0xf0]  ;;  %v8065_v25 = vld [vmem:[#allocation4 + $0x504] sm:$0xf] }
  0xb6   :  { %1411 = vmatpush.bf16.msrb.mxu3 %v6098_v30  ;;  %v8070_v30 = vld [vmem:[#allocation4 + $0x524] sm:$0xf0]  ;;  %v6276_v33 = vor.u32 %v8069_v24, %v6275_v23  ;;  %v8079_v23 = vld [vmem:[#allocation4 + $0x56c] sm:$0xf0]  ;;  %v8075_v24 = vld [vmem:[#allocation4 + $0x554] sm:$0xf] }
  0xb7   :  { %v6284_v34 = vor.u32 %v8070_v30, %v6283_v29  ;;  %v8080_v29 = vld [vmem:[#allocation4 + $0x574] sm:$0xf0]  ;;  %v8076_v30 = vld [vmem:[#allocation4 + $0x55c] sm:$0xf] }
  0xb8   :  { %1370 = vmatpush.bf16.msrb.mxu0 %v6054_v37  ;;  %1384 = vmatpush.bf16.msrb.mxu1 %v6058_v40  ;;  %v8061_v37 = vld [vmem:[#allocation4 + $0x4dc] sm:$0xf0]  ;;  %v6245_v40 = vld [vmem:[#allocation4 + $0x4e0] sm:$0xf0] }
  0xb9   :  { %1398 = vmatpush.bf16.msrb.mxu2 %v6062_v41  ;;  %v6251_v41 = vld [vmem:[#allocation4 + $0x4c8] sm:$0xf]  ;;  %v6248_v48 = vor.u32 %v8057_v38, %v6245_v40  ;;  %v6336_v38 = vor.u32 %v8076_v30, %v6333_v31  ;;  %v6299_v40 = vld [vmem:[#allocation4 + $0x518] sm:$0xf]  ;;  %v8130_v30 = vld [vmem:[#allocation4 + $0x704] sm:$0xf] }
  0xba   :  { %1412 = vmatpush.bf16.msrb.mxu3 %v6066_v45  ;;  %v6244_v45 = vor.u32 %v8061_v37, %v6243_v36  ;;  %v6252_v49 = vor.u32 %v8062_v42, %v6251_v41  ;;  %v8071_v36 = vld [vmem:[#allocation4 + $0x52c] sm:$0xf0]  ;;  %v8067_v37 = vld [vmem:[#allocation4 + $0x514] sm:$0xf]  ;;  %v8072_v41 = vld [vmem:[#allocation4 + $0x534] sm:$0xf0] }
  0xbc   :  { %1371 = vmatpush.bf16.msrb.mxu0 %v6022_v52  ;;  %1385 = vmatpush.bf16.msrb.mxu1 %v6026_v57  ;;  %v6219_v52 = vld [vmem:[#allocation4 + $0x488] sm:$0xf]  ;;  %v6221_v57 = vld [vmem:[#allocation4 + $0x4a8] sm:$0xf0] }
  0xbd   :  { %1399 = vmatpush.bf16.msrb.mxu2 %v6030_v58  ;;  %v6387_v58 = vld [vmem:[#allocation4 + $0x5d0] sm:$0xf]  ;;  %v6220_v1 = vor.u32 %v8054_v55, %v6219_v52  ;;  %v6224_v4 = vor.u32 %v8050_v56, %v6221_v57  ;;  %v6261_v55 = vld [vmem:[#allocation4 + $0x4f0] sm:$0xf0]  ;;  %v6267_v56 = vld [vmem:[#allocation4 + $0x4d8] sm:$0xf] }
  0xbe   :  { %1413 = vmatpush.bf16.msrb.mxu3 %v6034_v61  ;;  %v6212_v61 = vor.u32 %v8053_v47, %v6211_v46  ;;  %v6388_v5 = vor.u32 %v8095_v59, %v6387_v58  ;;  %v8064_v57 = vld [vmem:[#allocation4 + $0x4f4] sm:$0xf0]  ;;  %v8060_v59 = vld [vmem:[#allocation4 + $0x4dc] sm:$0xf] }
  0xbf   :  { %6199 = vmatmul.msk.bf16.vlgmr.msrb.gmra.mxu0 %vm532_vm0, %v8901_v53  ;;  %6200 = vmatmul.msk.bf16.vlgmr.msrb.gmra.mxu1 %vm532_vm0, %v8901_v53 }
  0xc0   :  { %1738 = vmatpush.bf16.msra.mxu0 %v6372_v62  ;;  %1752 = vmatpush.bf16.msra.mxu1 %v6376_v28  ;;  %v6389_v62 = vld [vmem:[#allocation4 + $0x5f0] sm:$0xf0]  ;;  %v6395_v28 = vld [vmem:[#allocation4 + $0x5d8] sm:$0xf] }
  0xc1   :  { %1766 = vmatpush.bf16.msra.mxu2 %v6380_v63  ;;  %6202 = vmatmul.msk.bf16.vlgmr.msrb.gmra.mxu3 %vm532_vm0, %v8901_v53  ;;  %v8096_v63 = vld [vmem:[#allocation4 + $0x5f4] sm:$0xf0]  ;;  %v6392_v7 = vor.u32 %v8091_v60, %v6389_v62  ;;  %v6269_v60 = vld [vmem:[#allocation4 + $0x4f8] sm:$0xf0]  ;;  %v6227_v62 = vld [vmem:[#allocation4 + $0x490] sm:$0xf] }
  0xc2   :  { %1780 = vmatpush.bf16.msra.mxu3 %v6384_v3  ;;  %6201 = vmatmul.msk.bf16.vlgmr.msrb.gmra.mxu2 %vm532_vm0, %v8901_v53  ;;  %v6280_v53 = vor.u32 %v8065_v25, %v6277_v27  ;;  %v6397_v3 = vld [vmem:[#allocation4 + $0x5f8] sm:$0xf0]  ;;  %v6396_v8 = vor.u32 %v8096_v63, %v6395_v28  ;;  %v6368_v25 = vor.u32 %v8084_v35, %v6365_v16  ;;  %v6331_v27 = vld [vmem:[#allocation4 + $0x558] sm:$0xf]  ;;  %v8055_v28 = vld [vmem:[#allocation4 + $0x4ac] sm:$0xf0] }
  0xc3   :  { %v6400_v12 = vor.u32 %v8092_v2, %v6397_v3  ;;  %v6264_v63 = vor.u32 %v8059_v51, %v6261_v55  ;;  %v6229_v2 = vld [vmem:[#allocation4 + $0x4b0] sm:$0xf0]  ;;  %v6235_v3 = vld [vmem:[#allocation4 + $0x498] sm:$0xf]  ;;  %v1866_v51 = vld [vmem:[%s9557_s0 + $0x8] sm:$0x1] }
  0xc4   :  { %1739 = vmatpush.bf16.msra.mxu0 %v6340_v9  ;;  %1753 = vmatpush.bf16.msra.mxu1 %v6344_v10  ;;  %v6355_v9 = vld [vmem:[#allocation4 + $0x590] sm:$0xf]  ;;  %v8924_v17 = vpop.f32.mrf.mxu0  ;;  %v8926_v19 = vpop.f32.mrf.mxu1  ;;  %v6521_v55 = vld [vmem:[#allocation4 + $0x6e8] sm:$0xf0] }
  0xc5   :  { %1767 = vmatpush.bf16.msra.mxu2 %v6348_v11  ;;  %v8087_v10 = vld [vmem:[#allocation4 + $0x5ac] sm:$0xf0]  ;;  %v8083_v11 = vld [vmem:[#allocation4 + $0x594] sm:$0xf] }
  0xc6   :  { %1781 = vmatpush.bf16.msra.mxu3 %v6352_v15  ;;  %v8088_v15 = vld [vmem:[#allocation4 + $0x5b4] sm:$0xf0]  ;;  %v6356_v18 = vor.u32 %v8087_v10, %v6355_v9  ;;  %v6575_v9 = vld [vmem:[#allocation4 + $0x740] sm:$0xf] }
  0xc7   :  { %v8142_v10 = vld [vmem:[#allocation4 + $0x75c] sm:$0xf0] }
  0xc8   :  { %1740 = vmatpush.bf16.msra.mxu0 %v6308_v20  ;;  %1754 = vmatpush.bf16.msra.mxu1 %v6312_v21  ;;  %v6360_v20 = vor.u32 %v8083_v11, %v6357_v13  ;;  %v6364_v21 = vor.u32 %v8088_v15, %v6363_v14  ;;  %v8138_v11 = vld [vmem:[#allocation4 + $0x744] sm:$0xf]  ;;  %v6583_v14 = vld [vmem:[#allocation4 + $0x748] sm:$0xf] }
  0xc9   :  { %1768 = vmatpush.bf16.msra.mxu2 %v6316_v22  ;;  %v6323_v22 = vld [vmem:[#allocation4 + $0x550] sm:$0xf]  ;;  %v6577_v13 = vld [vmem:[#allocation4 + $0x760] sm:$0xf0]  ;;  %v8143_v15 = vld [vmem:[#allocation4 + $0x764] sm:$0xf0] }
  0xca   :  { %1782 = vmatpush.bf16.msra.mxu3 %v6320_v26  ;;  %v6325_v26 = vld [vmem:[#allocation4 + $0x570] sm:$0xf0]  ;;  %v6324_v32 = vor.u32 %v8079_v23, %v6323_v22 }
  0xcc   :  { %1741 = vmatpush.bf16.msra.mxu0 %v6276_v33  ;;  %1755 = vmatpush.bf16.msra.mxu1 %v6280_v53  ;;  %v6328_v33 = vor.u32 %v8075_v24, %v6325_v26  ;;  %v6332_v53 = vor.u32 %v8080_v29, %v6331_v27  ;;  %v8940_v52 = vpop.f32.mrf.mxu0  ;;  %v8942_v58 = vpop.f32.mrf.mxu1  ;;  %v6576_v24 = vor.u32 %v8142_v10, %v6575_v9  ;;  %v6543_v27 = vld [vmem:[#allocation4 + $0x700] sm:$0xf] }
  0xcd   :  { %1769 = vmatpush.bf16.msra.mxu2 %v6284_v34  ;;  %v6291_v34 = vld [vmem:[#allocation4 + $0x510] sm:$0xf]  ;;  %v8936_v42 = vpop.f32.mrf.mxu2  ;;  %v6584_v26 = vor.u32 %v8143_v15, %v6583_v14  ;;  %v8134_v29 = vld [vmem:[#allocation4 + $0x71c] sm:$0xf0]  ;;  %v8106_v15 = vld [vmem:[#allocation4 + $0x644] sm:$0xf] }
  0xce   :  { %1783 = vmatpush.bf16.msra.mxu3 %v6288_v39  ;;  %v6293_v39 = vld [vmem:[#allocation4 + $0x530] sm:$0xf0]  ;;  %v6292_v46 = vor.u32 %v8071_v36, %v6291_v34  ;;  %v8135_v34 = vld [vmem:[#allocation4 + $0x724] sm:$0xf0] }
  0xcf   :  { %v6296_v47 = vor.u32 %v8067_v37, %v6293_v39  ;;  %v8131_v37 = vld [vmem:[#allocation4 + $0x70c] sm:$0xf]  ;;  %v6544_v39 = vor.u32 %v8134_v29, %v6543_v27  ;;  %v6415_v27 = vld [vmem:[#allocation4 + $0x600] sm:$0xf] }
  0xd0   :  { %1742 = vmatpush.bf16.msra.mxu0 %v6244_v45  ;;  %1756 = vmatpush.bf16.msra.mxu1 %v6248_v48  ;;  %v8938_v45 = vpop.f32.mrf.mxu3  ;;  %v6300_v48 = vor.u32 %v8072_v41, %v6299_v40  ;;  %v6511_v40 = vld [vmem:[#allocation4 + $0x6c0] sm:$0xf] }
  0xd1   :  { %1770 = vmatpush.bf16.msra.mxu2 %v6252_v49  ;;  %v6259_v49 = vld [vmem:[#allocation4 + $0x4d0] sm:$0xf] }
  0xd2   :  { %1784 = vmatpush.bf16.msra.mxu3 %v6256_v54  ;;  %v6304_v54 = vor.u32 %v8068_v43, %v6301_v44  ;;  %v8126_v44 = vld [vmem:[#allocation4 + $0x6dc] sm:$0xf0] }
  0xd4   :  { %1743 = vmatpush.bf16.msra.mxu0 %v6212_v61  ;;  %1757 = vmatpush.bf16.msra.mxu1 %v6216_v0  ;;  %v6260_v61 = vor.u32 %v8063_v50, %v6259_v49  ;;  %v6268_v0 = vor.u32 %v8064_v57, %v6267_v56  ;;  %v6519_v49 = vld [vmem:[#allocation4 + $0x6c8] sm:$0xf]  ;;  %v6512_v56 = vor.u32 %v8126_v44, %v6511_v40 }
  0xd5   :  { %1771 = vmatpush.bf16.msra.mxu2 %v6220_v1  ;;  %v8051_v1 = vld [vmem:[#allocation4 + $0x494] sm:$0xf]  ;;  %v8944_v35 = vpop.f32.mrf.mxu2  ;;  %v8127_v50 = vld [vmem:[#allocation4 + $0x6e4] sm:$0xf0] }
  0xd6   :  { %1785 = vmatpush.bf16.msra.mxu3 %v6224_v4  ;;  %v6272_v4 = vor.u32 %v8060_v59, %v6269_v60  ;;  %v6232_v16 = vor.u32 %v8051_v1, %v6229_v2  ;;  %v6479_v59 = vld [vmem:[#allocation4 + $0x680] sm:$0xf]  ;;  %v1921_v1 = vunpack.c.l.b16 %v1866_v51  ;;  %v6481_v2 = vld [vmem:[#allocation4 + $0x6a0] sm:$0xf0]  ;;  %v8103_v44 = vld [vmem:[#allocation4 + $0x624] sm:$0xf0] }
  0xd7   :  { %6401 = vmatmul.msk.bf16.vlgmr.msra.gmra.mxu0 %vm532_vm0, %v8922_v6  ;;  %6402 = vmatmul.msk.bf16.vlgmr.msra.gmra.mxu1 %vm532_vm0, %v8922_v6  ;;  %v8140_v51 = vld [vmem:[#allocation4 + $0x754] sm:$0xf] }
  0xd8   :  { %1794 = vmatpush.bf16.msrb.mxu0 %v6388_v5  ;;  %1808 = vmatpush.bf16.msrb.mxu1 %v6392_v7  ;;  %v8056_v5 = vld [vmem:[#allocation4 + $0x4b4] sm:$0xf0]  ;;  %v8052_v7 = vld [vmem:[#allocation4 + $0x49c] sm:$0xf]  ;;  %v8946_v22 = vpop.f32.mrf.mxu3 }
  0xd9   :  { %1822 = vmatpush.bf16.msrb.mxu2 %v6396_v8  ;;  %6404 = vmatmul.msk.bf16.vlgmr.msra.gmra.mxu3 %vm532_vm0, %v8922_v6  ;;  %v6237_v8 = vld [vmem:[#allocation4 + $0x4b8] sm:$0xf0] }
  0xda   :  { %1836 = vmatpush.bf16.msrb.mxu3 %v6400_v12  ;;  %6403 = vmatmul.msk.bf16.vlgmr.msra.gmra.mxu2 %vm532_vm0, %v8922_v6  ;;  %v6228_v12 = vor.u32 %v8055_v28, %v6227_v62  ;;  %v6240_v23 = vor.u32 %v8052_v7, %v6237_v8  ;;  %v8118_v28 = vld [vmem:[#allocation4 + $0x69c] sm:$0xf0]  ;;  %v6489_v7 = vld [vmem:[#allocation4 + $0x6a8] sm:$0xf0] }
  0xdb   :  { %v6480_v9 = vor.u32 %v8118_v28, %v6479_v59  ;;  %v8145_v59 = vld [vmem:[#allocation4 + $0x774] sm:$0xf0]  ;;  %v8141_v28 = vld [vmem:[#allocation4 + $0x75c] sm:$0xf] }
  0xdc   :  { %1795 = vmatpush.bf16.msrb.mxu0 %v6356_v18  ;;  %1809 = vmatpush.bf16.msrb.mxu1 %v6360_v20  ;;  %v6236_v18 = vor.u32 %v8056_v5, %v6235_v3  ;;  %v8139_v20 = vld [vmem:[#allocation4 + $0x74c] sm:$0xf]  ;;  %v8948_v31 = vpop.f32.mrf.mxu0  ;;  %v8950_v36 = vpop.f32.mrf.mxu1  ;;  %v6487_v3 = vld [vmem:[#allocation4 + $0x688] sm:$0xf] }
  0xdd   :  { %1823 = vmatpush.bf16.msrb.mxu2 %v6364_v21  ;;  %v6585_v21 = vld [vmem:[#allocation4 + $0x768] sm:$0xf0] }
  0xde   :  { %1837 = vmatpush.bf16.msrb.mxu3 %v6368_v25  ;;  %v6580_v25 = vor.u32 %v8138_v11, %v6577_v13  ;;  %v8115_v5 = vld [vmem:[#allocation4 + $0x68c] sm:$0xf]  ;;  %v6447_v11 = vld [vmem:[#allocation4 + $0x640] sm:$0xf] }
  0xe0   :  { %1796 = vmatpush.bf16.msrb.mxu0 %v6324_v32  ;;  %1810 = vmatpush.bf16.msrb.mxu1 %v6328_v33  ;;  %v6588_v32 = vor.u32 %v8139_v20, %v6585_v21  ;;  %v6545_v33 = vld [vmem:[#allocation4 + $0x720] sm:$0xf0]  ;;  %v6492_v21 = vor.u32 %v8115_v5, %v6489_v7 }
  0xe1   :  { %1824 = vmatpush.bf16.msrb.mxu2 %v6332_v53  ;;  %v6551_v53 = vld [vmem:[#allocation4 + $0x708] sm:$0xf]  ;;  %v6548_v41 = vor.u32 %v8130_v30, %v6545_v33  ;;  %v8098_v33 = vld [vmem:[#allocation4 + $0x604] sm:$0xf] }
  0xe2   :  { %1838 = vmatpush.bf16.msrb.mxu3 %v6336_v38  ;;  %v6553_v38 = vld [vmem:[#allocation4 + $0x728] sm:$0xf0]  ;;  %v6552_v43 = vor.u32 %v8135_v34, %v6551_v53  ;;  %v6417_v53 = vld [vmem:[#allocation4 + $0x620] sm:$0xf0] }
  0xe4   :  { %1797 = vmatpush.bf16.msrb.mxu0 %v6292_v46  ;;  %1811 = vmatpush.bf16.msrb.mxu1 %v6296_v47  ;;  %v8122_v46 = vld [vmem:[#allocation4 + $0x6c4] sm:$0xf]  ;;  %v8965_v62 = vpop.f32.mrf.mxu3  ;;  %v8972_v8 = vpop.f32.mrf.mxu0 }
  0xe5   :  { %1825 = vmatpush.bf16.msrb.mxu2 %v6300_v48  ;;  %v6513_v47 = vld [vmem:[#allocation4 + $0x6e0] sm:$0xf0]  ;;  %v6556_v48 = vor.u32 %v8131_v37, %v6553_v38  ;;  %v8963_v57 = vpop.f32.mrf.mxu2  ;;  %v8974_v10 = vpop.f32.mrf.mxu1  ;;  %v6423_v37 = vld [vmem:[#allocation4 + $0x608] sm:$0xf] }
  0xe6   :  { %1839 = vmatpush.bf16.msrb.mxu3 %v6304_v54  ;;  %v8123_v54 = vld [vmem:[#allocation4 + $0x6cc] sm:$0xf]  ;;  %v6516_v60 = vor.u32 %v8122_v46, %v6513_v47 }
  0xe7   :  { %v8099_v46 = vld [vmem:[#allocation4 + $0x60c] sm:$0xf] }
  0xe8   :  { %1798 = vmatpush.bf16.msrb.mxu0 %v6260_v61  ;;  %1812 = vmatpush.bf16.msrb.mxu1 %v6264_v63  ;;  %v6520_v61 = vor.u32 %v8127_v50, %v6519_v49  ;;  %v8114_v63 = vld [vmem:[#allocation4 + $0x684] sm:$0xf]  ;;  %v6425_v47 = vld [vmem:[#allocation4 + $0x628] sm:$0xf0]  ;;  %v6591_v49 = vld [vmem:[#allocation4 + $0x750] sm:$0xf] }
  0xe9   :  { %1826 = vmatpush.bf16.msrb.mxu2 %v6268_v0  ;;  %v8970_v0 = vld [vmem:[%s9557_s0] sm:$0xff]  ;;  %v6484_v13 = vor.u32 %v8114_v63, %v6481_v2  ;;  %v8144_v50 = vld [vmem:[#allocation4 + $0x76c] sm:$0xf0]  ;;  %v6428_v2 = vor.u32 %v8099_v46, %v6425_v47 }
  0xea   :  { %1840 = vmatpush.bf16.msrb.mxu3 %v6272_v4  ;;  %v8119_v4 = vld [vmem:[#allocation4 + $0x6a4] sm:$0xf0]  ;;  %v1928_v20 = vshll.u32 %v8970_v0, 16  ;;  %v1926_v38 = vshrl.u32 %v8970_v0, 16  ;;  %v6601_v63 = vld [vmem:[#allocation4 + $0x778] sm:$0xf0] }
  0xeb   :  { %v6488_v14 = vor.u32 %v8119_v4, %v6487_v3  ;;  %v6592_v3 = vor.u32 %v8144_v50, %v6591_v49  ;;  %v6495_v49 = vld [vmem:[#allocation4 + $0x690] sm:$0xf] }
  0xec   :  { %1799 = vmatpush.bf16.msrb.mxu0 %v6228_v12  ;;  %1813 = vmatpush.bf16.msrb.mxu1 %v6232_v16  ;;  %v8110_v12 = vld [vmem:[#allocation4 + $0x65c] sm:$0xf0]  ;;  %v6449_v16 = vld [vmem:[#allocation4 + $0x660] sm:$0xf0]  ;;  %v8120_v50 = vld [vmem:[#allocation4 + $0x6ac] sm:$0xf0] }
  0xed   :  { %1827 = vmatpush.bf16.msrb.mxu2 %v6236_v18  ;;  %v1923_v18 = vpack.c.b16 %v1921_v1, %v1921_v1  ;;  %v6448_v29 = vor.u32 %v8110_v12, %v6447_v11  ;;  %v6452_v30 = vor.u32 %v8106_v15, %v6449_v16  ;;  %v6559_v12 = vld [vmem:[#allocation4 + $0x710] sm:$0xf]  ;;  %v6604_v15 = vor.u32 %v8141_v28, %v6601_v63  ;;  %v6561_v16 = vld [vmem:[#allocation4 + $0x730] sm:$0xf0] }
  0xee   :  { %1841 = vmatpush.bf16.msrb.mxu3 %v6240_v23  ;;  %v6455_v23 = vld [vmem:[#allocation4 + $0x648] sm:$0xf] }
  0xef   :  { %6405 = vmatmul.msk.bf16.vlgmr.msrb.gmra.mxu0 %vm532_vm0, %v8922_v6  ;;  %6406 = vmatmul.msk.bf16.vlgmr.msrb.gmra.mxu1 %vm532_vm0, %v8922_v6  ;;  %v1933_v40 = vshll.u32 %v1923_v18, 16  ;;  %v6567_v18 = vld [vmem:[#allocation4 + $0x718] sm:$0xf] }
  0xf0   :  { %2182 = vmatpush.bf16.msra.mxu0 %v6576_v24  ;;  %2196 = vmatpush.bf16.msra.mxu1 %v6580_v25  ;;  %v8111_v24 = vld [vmem:[#allocation4 + $0x664] sm:$0xf0]  ;;  %v8107_v25 = vld [vmem:[#allocation4 + $0x64c] sm:$0xf] }
  0xf1   :  { %2210 = vmatpush.bf16.msra.mxu2 %v6584_v26  ;;  %6408 = vmatmul.msk.bf16.vlgmr.msrb.gmra.mxu3 %vm532_vm0, %v8922_v6  ;;  %v6457_v26 = vld [vmem:[#allocation4 + $0x668] sm:$0xf0]  ;;  %v6456_v34 = vor.u32 %v8111_v24, %v6455_v23  ;;  %v6569_v23 = vld [vmem:[#allocation4 + $0x738] sm:$0xf0] }
  0xf2   :  { %2224 = vmatpush.bf16.msra.mxu3 %v6588_v32  ;;  %6407 = vmatmul.msk.bf16.vlgmr.msrb.gmra.mxu2 %vm532_vm0, %v8922_v6  ;;  %v6524_v6 = vor.u32 %v8123_v54, %v6521_v55  ;;  %v8102_v32 = vld [vmem:[#allocation4 + $0x61c] sm:$0xf0]  ;;  %v6593_v55 = vld [vmem:[#allocation4 + $0x770] sm:$0xf0] }
  0xf3   :  { %v6416_v54 = vor.u32 %v8102_v32, %v6415_v27  ;;  %v6596_v7 = vor.u32 %v8140_v51, %v6593_v55  ;;  %v8128_v27 = vld [vmem:[#allocation4 + $0x6ec] sm:$0xf0]  ;;  %v8116_v51 = vld [vmem:[#allocation4 + $0x694] sm:$0xf]  ;;  %v6503_v55 = vld [vmem:[#allocation4 + $0x698] sm:$0xf] }
  0xf4   :  { %2183 = vmatpush.bf16.msra.mxu0 %v6544_v39  ;;  %2197 = vmatpush.bf16.msra.mxu1 %v6548_v41  ;;  %v1930_v39 = vrot.slane %v1928_v20, 1  ;;  %v6460_v41 = vor.u32 %v8107_v25, %v6457_v26  ;;  %v905_v0 = vpop.f32.mrf.mxu0  ;;  %v919_v5 = vpop.f32.mrf.mxu1  ;;  %v8137_v20 = vld [vmem:[#allocation4 + $0x734] sm:$0xf0]  ;;  %v6527_v26 = vld [vmem:[#allocation4 + $0x6d0] sm:$0xf] }
  0xf5   :  { %2211 = vmatpush.bf16.msra.mxu2 %v6552_v43  ;;  %v8978_v43 = vpop.f32.mrf.mxu2  ;;  %v8983_v4 = vadd.f32 %v905_v0, %v8924_v17  ;;  %v8986_v11 = vadd.f32 %v919_v5, %v8926_v19  ;;  %v6568_v25 = vor.u32 %v8137_v20, %v6567_v18  ;;  %v6463_v0 = vld [vmem:[#allocation4 + $0x650] sm:$0xf]  ;;  %v6465_v5 = vld [vmem:[#allocation4 + $0x670] sm:$0xf0] }
  0xf6   :  { %2225 = vmatpush.bf16.msra.mxu3 %v6556_v48  ;;  %v8980_v48 = vpop.f32.mrf.mxu3  ;;  %v1931_v1 = vor.u32 %v1930_v39, %v1926_v38  ;;  %v8125_v39 = vld [vmem:[#allocation4 + $0x6dc] sm:$0xf] }
  0xf7   :  { %9570 = vst [vmem:[#allocation26_spill] sm:$0xff] %v8980_v48 }
  0xf8   :  { %2184 = vmatpush.bf16.msra.mxu0 %v6512_v56  ;;  %2198 = vmatpush.bf16.msra.mxu1 %v6516_v60  ;;  %v6599_v56 = vld [vmem:[#allocation4 + $0x758] sm:$0xf]  ;;  %v6420_v60 = vor.u32 %v8098_v33, %v6417_v53  ;;  %v6529_v33 = vld [vmem:[#allocation4 + $0x6f0] sm:$0xf0] }
  0xf9   :  { %2212 = vmatpush.bf16.msra.mxu2 %v6520_v61  ;;  %v6424_v61 = vor.u32 %v8103_v44, %v6423_v37  ;;  %v6535_v53 = vld [vmem:[#allocation4 + $0x6d8] sm:$0xf]  ;;  %v6528_v44 = vor.u32 %v8128_v27, %v6527_v26  ;;  %v8101_v26 = vld [vmem:[#allocation4 + $0x61c] sm:$0xf] }
  0xfa   :  { %2226 = vmatpush.bf16.msra.mxu3 %v6524_v6  ;;  %v1935_v6 = vrot.slane %v1933_v40, 1  ;;  %v6537_v40 = vld [vmem:[#allocation4 + $0x6f8] sm:$0xf0] }
  0xfb   :  { %v6441_v27 = vld [vmem:[#allocation4 + $0x638] sm:$0xf0] }
  0xfc   :  { %2185 = vmatpush.bf16.msra.mxu0 %v6480_v9  ;;  %2199 = vmatpush.bf16.msra.mxu1 %v6484_v13  ;;  %v6600_v9 = vor.u32 %v8145_v59, %v6599_v56  ;;  %v8136_v13 = vld [vmem:[#allocation4 + $0x72c] sm:$0xf0]  ;;  %v8989_v17 = vsel %vm1924_vm1, %v1931_v1, %v1935_v6  ;;  %v8121_v56 = vld [vmem:[#allocation4 + $0x6b4] sm:$0xf0]  ;;  %v8117_v59 = vld [vmem:[#allocation4 + $0x69c] sm:$0xf] }
  0xfd   :  { %2213 = vmatpush.bf16.msra.mxu2 %v6488_v14  ;;  %v8132_v14 = vld [vmem:[#allocation4 + $0x714] sm:$0xf]  ;;  %v6560_v24 = vor.u32 %v8136_v13, %v6559_v12  ;;  %v933_v32 = vpop.f32.mrf.mxu2  ;;  %v6504_v63 = vor.u32 %v8121_v56, %v6503_v55  ;;  %v8112_v1 = vld [vmem:[#allocation4 + $0x66c] sm:$0xf0]  ;;  %v8109_v12 = vld [vmem:[#allocation4 + $0x65c] sm:$0xf] }
  0xfe   :  { %2227 = vmatpush.bf16.msra.mxu3 %v6492_v21  ;;  %v8133_v21 = vld [vmem:[#allocation4 + $0x71c] sm:$0xf]  ;;  %v6564_v19 = vor.u32 %v8132_v14, %v6561_v16  ;;  %v8998_v37 = vadd.f32 %v933_v32, %v8936_v42  ;;  %v947_v38 = vpop.f32.mrf.mxu3  ;;  %v6540_v42 = vor.u32 %v8125_v39, %v6537_v40  ;;  %v8108_v6 = vld [vmem:[#allocation4 + $0x654] sm:$0xf]  ;;  %v6464_v14 = vor.u32 %v8112_v1, %v6463_v0  ;;  %v8104_v16 = vld [vmem:[#allocation4 + $0x62c] sm:$0xf0] }
  0xff   :  { %v6473_v13 = vld [vmem:[#allocation4 + $0x678] sm:$0xf0]  ;;  %v6468_v18 = vor.u32 %v8108_v6, %v6465_v5  ;;  %v8187_v32 = vld [vmem:[#allocation4 + $0x8c4] sm:$0xf]  ;;  %v8192_v39 = vld [vmem:[#allocation4 + $0x8e4] sm:$0xf0] }
 0x100   :  { %2186 = vmatpush.bf16.msra.mxu0 %v6448_v29  ;;  %2200 = vmatpush.bf16.msra.mxu1 %v6452_v30  ;;  %v8124_v29 = vld [vmem:[#allocation4 + $0x6d4] sm:$0xf]  ;;  %v6572_v30 = vor.u32 %v8133_v21, %v6569_v23  ;;  %v6752_v1 = vld [vmem:[#allocation4 + $0x8a0] sm:$0xf0]  ;;  %v6758_v6 = vld [vmem:[#allocation4 + $0x888] sm:$0xf] }
 0x101   :  { %2214 = vmatpush.bf16.msra.mxu2 %v6456_v34  ;;  %v8129_v34 = vld [vmem:[#allocation4 + $0x6f4] sm:$0xf0]  ;;  %v6532_v46 = vor.u32 %v8124_v29, %v6529_v33  ;;  %v8100_v21 = vld [vmem:[#allocation4 + $0x614] sm:$0xf]  ;;  %v6782_v29 = vld [vmem:[#allocation4 + $0x8c0] sm:$0xf] }
 0x102   :  { %2228 = vmatpush.bf16.msra.mxu3 %v6460_v41  ;;  %v9003_v41 = vadd.f32 %v947_v38, %v8938_v45  ;;  %v6536_v47 = vor.u32 %v8129_v34, %v6535_v53  ;;  %v9005_v45 = vpop.f32.mrf.mxu0  ;;  %v6433_v23 = vld [vmem:[#allocation4 + $0x630] sm:$0xf0]  ;;  %v6784_v34 = vld [vmem:[#allocation4 + $0x8e0] sm:$0xf0]  ;;  %v6790_v38 = vld [vmem:[#allocation4 + $0x8c8] sm:$0xf] }
 0x103   :  { %v6787_v56 = vor.u32 %v8187_v32, %v6784_v34  ;;  %v8180_v5 = vld [vmem:[#allocation4 + $0x88c] sm:$0xf]  ;;  %v8167_v34 = vld [vmem:[#allocation4 + $0x81c] sm:$0xf0] }
 0x104   :  { %2187 = vmatpush.bf16.msra.mxu0 %v6416_v54  ;;  %2201 = vmatpush.bf16.msra.mxu1 %v6420_v60  ;;  %v6497_v54 = vld [vmem:[#allocation4 + $0x6b0] sm:$0xf0]  ;;  %v6505_v60 = vld [vmem:[#allocation4 + $0x6b8] sm:$0xf0] }
 0x105   :  { %2215 = vmatpush.bf16.msra.mxu2 %v6424_v61  ;;  %v6496_v61 = vor.u32 %v8120_v50, %v6495_v49  ;;  %v6500_v28 = vor.u32 %v8116_v51, %v6497_v54  ;;  %v9009_v33 = vpop.f32.mrf.mxu2  ;;  %v6792_v49 = vld [vmem:[#allocation4 + $0x8e8] sm:$0xf0]  ;;  %v6444_v51 = vor.u32 %v8101_v26, %v6441_v27 }
 0x106   :  { %2229 = vmatpush.bf16.msra.mxu3 %v6428_v2  ;;  %v9007_v2 = vpop.f32.mrf.mxu1  ;;  %v9011_v40 = vpop.f32.mrf.mxu3  ;;  %v6728_v26 = vld [vmem:[#allocation4 + $0x868] sm:$0xf0] }
 0x107   :  { %6605 = vmatmul.msk.bf16.vlgmr.msra.gmra.mxu0 %vm532_vm0, %v8989_v17  ;;  %6606 = vmatmul.msk.bf16.vlgmr.msra.gmra.mxu1 %vm532_vm0, %v8989_v17 }
 0x108   :  { %2238 = vmatpush.bf16.msrb.mxu0 %v6592_v3  ;;  %2252 = vmatpush.bf16.msrb.mxu1 %v6596_v7  ;;  %v6508_v3 = vor.u32 %v8117_v59, %v6505_v60  ;;  %v6471_v7 = vld [vmem:[#allocation4 + $0x658] sm:$0xf]  ;;  %v6791_v59 = vor.u32 %v8192_v39, %v6790_v38  ;;  %v8163_v38 = vld [vmem:[#allocation4 + $0x804] sm:$0xf] }
 0x109   :  { %2266 = vmatpush.bf16.msrb.mxu2 %v6600_v9  ;;  %6608 = vmatmul.msk.bf16.vlgmr.msra.gmra.mxu3 %vm532_vm0, %v8989_v17  ;;  %v8113_v9 = vld [vmem:[#allocation4 + $0x674] sm:$0xf0] }
 0x10a   :  { %2280 = vmatpush.bf16.msrb.mxu3 %v6604_v15  ;;  %6607 = vmatmul.msk.bf16.vlgmr.msra.gmra.mxu2 %vm532_vm0, %v8989_v17  ;;  %v6431_v15 = vld [vmem:[#allocation4 + $0x610] sm:$0xf]  ;;  %v6472_v20 = vor.u32 %v8113_v9, %v6471_v7  ;;  %v6760_v7 = vld [vmem:[#allocation4 + $0x8a8] sm:$0xf0]  ;;  %v6718_v9 = vld [vmem:[#allocation4 + $0x840] sm:$0xf] }
 0x10b   :  { %v6432_v53 = vor.u32 %v8104_v16, %v6431_v15  ;;  %v6720_v15 = vld [vmem:[#allocation4 + $0x860] sm:$0xf0]  ;;  %v6763_v16 = vor.u32 %v8180_v5, %v6760_v7  ;;  %v8160_v5 = vld [vmem:[#allocation4 + $0x7e4] sm:$0xf0]  ;;  %v8156_v7 = vld [vmem:[#allocation4 + $0x7cc] sm:$0xf] }
 0x10c   :  { %2239 = vmatpush.bf16.msrb.mxu0 %v6560_v24  ;;  %2253 = vmatpush.bf16.msrb.mxu1 %v6564_v19  ;;  %v6439_v24 = vld [vmem:[#allocation4 + $0x618] sm:$0xf]  ;;  %v6476_v19 = vor.u32 %v8109_v12, %v6473_v13  ;;  %v961_v50 = vpop.f32.mrf.mxu0  ;;  %v8175_v13 = vld [vmem:[#allocation4 + $0x85c] sm:$0xf0] }
 0x10d   :  { %2267 = vmatpush.bf16.msrb.mxu2 %v6568_v25  ;;  %v8105_v25 = vld [vmem:[#allocation4 + $0x634] sm:$0xf0]  ;;  %v9014_v54 = vadd.f32 %v961_v50, %v8948_v31 }
 0x10e   :  { %2281 = vmatpush.bf16.msrb.mxu3 %v6572_v30  ;;  %v8191_v30 = vld [vmem:[#allocation4 + $0x8dc] sm:$0xf0]  ;;  %v975_v55 = vpop.f32.mrf.mxu1 }
 0x10f   :  { %v9017_v60 = vadd.f32 %v975_v55, %v8950_v36 }
 0x110   :  { %2240 = vmatpush.bf16.msrb.mxu0 %v6528_v44  ;;  %2254 = vmatpush.bf16.msrb.mxu1 %v6532_v46  ;;  %v6436_v44 = vor.u32 %v8100_v21, %v6433_v23  ;;  %v6440_v46 = vor.u32 %v8105_v25, %v6439_v24  ;;  %v8176_v21 = vld [vmem:[#allocation4 + $0x864] sm:$0xf0]  ;;  %v6615_v23 = vld [vmem:[%s9557_s0 + $0x14] sm:$0x1]  ;;  %v8172_v25 = vld [vmem:[#allocation4 + $0x84c] sm:$0xf] }
 0x111   :  { %2268 = vmatpush.bf16.msrb.mxu2 %v6536_v47  ;;  %v8188_v47 = vld [vmem:[#allocation4 + $0x8cc] sm:$0xf]  ;;  %v2365_v39 = vunpack.c.l.b16 %v6615_v23 }
 0x112   :  { %2282 = vmatpush.bf16.msrb.mxu3 %v6540_v42  ;;  %v6783_v42 = vor.u32 %v8191_v30, %v6782_v29  ;;  %v6795_v0 = vor.u32 %v8188_v47, %v6792_v49  ;;  %v6719_v29 = vor.u32 %v8175_v13, %v6718_v9  ;;  %v6686_v30 = vld [vmem:[#allocation4 + $0x800] sm:$0xf]  ;;  %v8164_v47 = vld [vmem:[#allocation4 + $0x80c] sm:$0xf] }
 0x113   :  { %v6696_v49 = vld [vmem:[#allocation4 + $0x828] sm:$0xf0]  ;;  %v6687_v50 = vor.u32 %v8167_v34, %v6686_v30  ;;  %v6622_v9 = vld [vmem:[#allocation4 + $0x780] sm:$0xf]  ;;  %v6798_v30 = vld [vmem:[#allocation4 + $0x8d0] sm:$0xf] }
 0x114   :  { %2241 = vmatpush.bf16.msrb.mxu0 %v6496_v61  ;;  %2255 = vmatpush.bf16.msrb.mxu1 %v6500_v28  ;;  %v6750_v61 = vld [vmem:[#allocation4 + $0x880] sm:$0xf]  ;;  %v9041_v55 = vpop.f32.mrf.mxu0 }
 0x115   :  { %2269 = vmatpush.bf16.msrb.mxu2 %v6504_v63  ;;  %v8183_v28 = vld [vmem:[#allocation4 + $0x89c] sm:$0xf0]  ;;  %v8179_v63 = vld [vmem:[#allocation4 + $0x884] sm:$0xf] }
 0x116   :  { %2283 = vmatpush.bf16.msrb.mxu3 %v6508_v3  ;;  %v8184_v3 = vld [vmem:[#allocation4 + $0x8a4] sm:$0xf0]  ;;  %v6751_v31 = vor.u32 %v8183_v28, %v6750_v61  ;;  %v6755_v36 = vor.u32 %v8179_v63, %v6752_v1  ;;  %v8155_v61 = vld [vmem:[#allocation4 + $0x7c4] sm:$0xf]  ;;  %v2367_v63 = vpack.c.b16 %v2365_v39, %v2365_v39  ;;  %v9044_v1 = vpop.f32.mrf.mxu1  ;;  %v8151_v13 = vld [vmem:[#allocation4 + $0x79c] sm:$0xf0] }
 0x117   :  { %v6759_v12 = vor.u32 %v8184_v3, %v6758_v6  ;;  %v6656_v28 = vld [vmem:[#allocation4 + $0x7e0] sm:$0xf0]  ;;  %v6699_v6 = vor.u32 %v8164_v47, %v6696_v49  ;;  %v6662_v3 = vld [vmem:[#allocation4 + $0x7c8] sm:$0xf]  ;;  %v6800_v39 = vld [vmem:[#allocation4 + $0x8f0] sm:$0xf0] }
 0x118   :  { %2242 = vmatpush.bf16.msrb.mxu0 %v6464_v14  ;;  %2256 = vmatpush.bf16.msrb.mxu1 %v6468_v18  ;;  %v8171_v14 = vld [vmem:[#allocation4 + $0x844] sm:$0xf]  ;;  %v989_v18 = vpop.f32.mrf.mxu2  ;;  %v2376_v23 = vshll.u32 %v2367_v63, 16  ;;  %v8190_v47 = vld [vmem:[#allocation4 + $0x8dc] sm:$0xf] }
 0x119   :  { %2270 = vmatpush.bf16.msrb.mxu2 %v6472_v20  ;;  %v6726_v20 = vld [vmem:[#allocation4 + $0x848] sm:$0xf]  ;;  %v9029_v24 = vadd.f32 %v989_v18, %v8963_v57  ;;  %v6723_v32 = vor.u32 %v8171_v14, %v6720_v15  ;;  %v8147_v14 = vld [vmem:[#allocation4 + $0x784] sm:$0xf]  ;;  %v6808_v49 = vld [vmem:[#allocation4 + $0x8f8] sm:$0xf0] }
 0x11a   :  { %2284 = vmatpush.bf16.msrb.mxu3 %v6476_v19  ;;  %v1003_v19 = vpop.f32.mrf.mxu3  ;;  %v9039_v57 = vld [vmem:[%s9557_s0 + $0xc] sm:$0xff]  ;;  %v6624_v15 = vld [vmem:[#allocation4 + $0x7a0] sm:$0xf0] }
 0x11b   :  { %v9034_v27 = vadd.f32 %v1003_v19, %v8965_v62  ;;  %v8168_v62 = vld [vmem:[#allocation4 + $0x824] sm:$0xf0] }
 0x11c   :  { %2243 = vmatpush.bf16.msrb.mxu0 %v6432_v53  ;;  %2257 = vmatpush.bf16.msrb.mxu1 %v6436_v44  ;;  %v6727_v53 = vor.u32 %v8176_v21, %v6726_v20  ;;  %v6688_v44 = vld [vmem:[#allocation4 + $0x820] sm:$0xf0]  ;;  %v6630_v18 = vld [vmem:[#allocation4 + $0x788] sm:$0xf]  ;;  %v2369_v20 = vshrl.u32 %v9039_v57, 16 }
 0x11d   :  { %2271 = vmatpush.bf16.msrb.mxu2 %v6440_v46  ;;  %v6694_v46 = vld [vmem:[#allocation4 + $0x808] sm:$0xf] }
 0x11e   :  { %2285 = vmatpush.bf16.msrb.mxu3 %v6444_v51  ;;  %v6654_v51 = vld [vmem:[#allocation4 + $0x7c0] sm:$0xf] }
 0x11f   :  { %6609 = vmatmul.msk.bf16.vlgmr.msrb.gmra.mxu0 %vm532_vm0, %v8989_v17  ;;  %6610 = vmatmul.msk.bf16.vlgmr.msrb.gmra.mxu1 %vm532_vm0, %v8989_v17 }
 0x120   :  { %2625 = vmatpush.bf16.msra.mxu0 %v6783_v42  ;;  %2639 = vmatpush.bf16.msra.mxu1 %v6787_v56  ;;  %v8159_v42 = vld [vmem:[#allocation4 + $0x7dc] sm:$0xf0]  ;;  %v6691_v56 = vor.u32 %v8163_v38, %v6688_v44  ;;  %v9047_v34 = vpop.f32.mrf.mxu2  ;;  %v6623_v38 = vor.u32 %v8151_v13, %v6622_v9  ;;  %v8194_v44 = vld [vmem:[#allocation4 + $0x8f4] sm:$0xf0]  ;;  %v6768_v9 = vld [vmem:[#allocation4 + $0x8b0] sm:$0xf0] }
 0x121   :  { %2653 = vmatpush.bf16.msra.mxu2 %v6791_v59  ;;  %6612 = vmatmul.msk.bf16.vlgmr.msrb.gmra.mxu3 %vm532_vm0, %v8989_v17  ;;  %v6695_v59 = vor.u32 %v8168_v62, %v6694_v46 }
 0x122   :  { %2667 = vmatpush.bf16.msra.mxu3 %v6795_v0  ;;  %6611 = vmatmul.msk.bf16.vlgmr.msrb.gmra.mxu2 %vm532_vm0, %v8989_v17  ;;  %v6731_v17 = vor.u32 %v8172_v25, %v6728_v26  ;;  %v2371_v0 = vshll.u32 %v9039_v57, 16  ;;  %v8152_v25 = vld [vmem:[#allocation4 + $0x7a4] sm:$0xf0]  ;;  %v8148_v26 = vld [vmem:[#allocation4 + $0x78c] sm:$0xf]  ;;  %v9049_v46 = vpop.f32.mrf.mxu3  ;;  %v6627_v57 = vor.u32 %v8147_v14, %v6624_v15 }
 0x123   :  { %9571 = vst [vmem:[#allocation27_spill] sm:$0xff] %v9049_v46  ;;  %v6631_v62 = vor.u32 %v8152_v25, %v6630_v18  ;;  %v6776_v14 = vld [vmem:[#allocation4 + $0x8b8] sm:$0xf0]  ;;  %v6734_v18 = vld [vmem:[#allocation4 + $0x850] sm:$0xf] }
 0x124   :  { %2626 = vmatpush.bf16.msra.mxu0 %v6751_v31  ;;  %2640 = vmatpush.bf16.msra.mxu1 %v6755_v36  ;;  %v6664_v31 = vld [vmem:[#allocation4 + $0x7e8] sm:$0xf0]  ;;  %v6655_v36 = vor.u32 %v8159_v42, %v6654_v51  ;;  %v2373_v21 = vrot.slane %v2371_v0, 1  ;;  %v2378_v42 = vrot.slane %v2376_v23, 1  ;;  %v6736_v25 = vld [vmem:[#allocation4 + $0x870] sm:$0xf0] }
 0x125   :  { %2654 = vmatpush.bf16.msra.mxu2 %v6759_v12  ;;  %v6659_v12 = vor.u32 %v8155_v61, %v6656_v28  ;;  %v6667_v19 = vor.u32 %v8156_v7, %v6664_v31  ;;  %v1331_v28 = vpop.f32.mrf.mxu1  ;;  %v8181_v7 = vld [vmem:[#allocation4 + $0x894] sm:$0xf]  ;;  %v6811_v31 = vor.u32 %v8190_v47, %v6808_v49  ;;  %v8169_v47 = vld [vmem:[#allocation4 + $0x82c] sm:$0xf0] }
 0x126   :  { %2668 = vmatpush.bf16.msra.mxu3 %v6763_v16  ;;  %v6663_v16 = vor.u32 %v8160_v5, %v6662_v3  ;;  %v2374_v51 = vor.u32 %v2373_v21, %v2369_v20  ;;  %v6766_v3 = vld [vmem:[#allocation4 + $0x890] sm:$0xf]  ;;  %v8173_v21 = vld [vmem:[#allocation4 + $0x854] sm:$0xf] }
 0x127   :  { %v8185_v5 = vld [vmem:[#allocation4 + $0x8ac] sm:$0xf0]  ;;  %v8165_v49 = vld [vmem:[#allocation4 + $0x814] sm:$0xf] }
 0x128   :  { %2627 = vmatpush.bf16.msra.mxu0 %v6719_v29  ;;  %2641 = vmatpush.bf16.msra.mxu1 %v6723_v32  ;;  %v6632_v29 = vld [vmem:[#allocation4 + $0x7a8] sm:$0xf0]  ;;  %v8193_v32 = vld [vmem:[#allocation4 + $0x8ec] sm:$0xf0]  ;;  %v9058_v13 = vsel %vm1924_vm1, %v2374_v51, %v2378_v42  ;;  %v6767_v15 = vor.u32 %v8185_v5, %v6766_v3  ;;  %v6710_v51 = vld [vmem:[#allocation4 + $0x818] sm:$0xf] }
 0x129   :  { %2655 = vmatpush.bf16.msra.mxu2 %v6727_v53  ;;  %v8189_v53 = vld [vmem:[#allocation4 + $0x8d4] sm:$0xf]  ;;  %v8177_v20 = vld [vmem:[#allocation4 + $0x86c] sm:$0xf0]  ;;  %v8170_v42 = vld [vmem:[#allocation4 + $0x834] sm:$0xf0] }
 0x12a   :  { %2669 = vmatpush.bf16.msra.mxu3 %v6731_v17  ;;  %v6806_v17 = vld [vmem:[#allocation4 + $0x8d8] sm:$0xf]  ;;  %v6803_v63 = vor.u32 %v8189_v53, %v6800_v39  ;;  %v8174_v53 = vld [vmem:[#allocation4 + $0x85c] sm:$0xf]  ;;  %v6670_v3 = vld [vmem:[#allocation4 + $0x7d0] sm:$0xf] }
 0x12b   :  { %v6807_v0 = vor.u32 %v8194_v44, %v6806_v17  ;;  %v6735_v17 = vor.u32 %v8177_v20, %v6734_v18  ;;  %v6739_v44 = vor.u32 %v8173_v21, %v6736_v25  ;;  %v8161_v5 = vld [vmem:[#allocation4 + $0x7ec] sm:$0xf0]  ;;  %v6646_v25 = vld [vmem:[#allocation4 + $0x798] sm:$0xf] }
 0x12c   :  { %2628 = vmatpush.bf16.msra.mxu0 %v6687_v50  ;;  %2642 = vmatpush.bf16.msra.mxu1 %v6691_v56  ;;  %v1317_v50 = vpop.f32.mrf.mxu0  ;;  %v6635_v56 = vor.u32 %v8148_v26, %v6632_v29  ;;  %v6742_v26 = vld [vmem:[#allocation4 + $0x858] sm:$0xf]  ;;  %v8153_v18 = vld [vmem:[#allocation4 + $0x7ac] sm:$0xf0] }
 0x12d   :  { %2656 = vmatpush.bf16.msra.mxu2 %v6695_v59  ;;  %v6799_v59 = vor.u32 %v8193_v32, %v6798_v30  ;;  %v9052_v61 = vadd.f32 %v1317_v50, %v8983_v4  ;;  %v8182_v4 = vld [vmem:[#allocation4 + $0x89c] sm:$0xf]  ;;  %v8178_v29 = vld [vmem:[#allocation4 + $0x874] sm:$0xf0]  ;;  %v1359_v32 = vpop.f32.mrf.mxu3  ;;  %v6704_v50 = vld [vmem:[#allocation4 + $0x830] sm:$0xf0] }
 0x12e   :  { %2670 = vmatpush.bf16.msra.mxu3 %v6699_v6  ;;  %v9055_v6 = vadd.f32 %v1331_v28, %v8986_v11  ;;  %v6771_v11 = vor.u32 %v8181_v7, %v6768_v9  ;;  %v6779_v23 = vor.u32 %v8182_v4, %v6776_v14  ;;  %v9072_v39 = vadd.f32 %v1359_v32, %v9003_v41  ;;  %v8157_v7 = vld [vmem:[#allocation4 + $0x7d4] sm:$0xf]  ;;  %v8162_v4 = vld [vmem:[#allocation4 + $0x7f4] sm:$0xf0]  ;;  %v8158_v14 = vld [vmem:[#allocation4 + $0x7dc] sm:$0xf] }
 0x12f   :  { %v8150_v32 = vld [vmem:[#allocation4 + $0x79c] sm:$0xf] }
 0x130   :  { %2629 = vmatpush.bf16.msra.mxu0 %v6655_v36  ;;  %2643 = vmatpush.bf16.msra.mxu1 %v6659_v12  ;;  %v6774_v36 = vld [vmem:[#allocation4 + $0x898] sm:$0xf] }
 0x131   :  { %2657 = vmatpush.bf16.msra.mxu2 %v6663_v16  ;;  %v8186_v12 = vld [vmem:[#allocation4 + $0x8b4] sm:$0xf0] }
 0x132   :  { %2671 = vmatpush.bf16.msra.mxu3 %v6667_v19  ;;  %v6775_v16 = vor.u32 %v8186_v12, %v6774_v36  ;;  %v1345_v19 = vpop.f32.mrf.mxu2  ;;  %v6672_v36 = vld [vmem:[#allocation4 + $0x7f0] sm:$0xf0]  ;;  %v6678_v12 = vld [vmem:[#allocation4 + $0x7d8] sm:$0xf] }
 0x133   :  { %v9067_v30 = vadd.f32 %v1345_v19, %v8998_v37  ;;  %v6675_v20 = vor.u32 %v8157_v7, %v6672_v36  ;;  %v6679_v21 = vor.u32 %v8162_v4, %v6678_v12  ;;  %v6640_v19 = vld [vmem:[#allocation4 + $0x7b0] sm:$0xf0]  ;;  %v6957_v12 = vld [vmem:[#allocation4 + $0xa00] sm:$0xf] }
 0x134   :  { %2630 = vmatpush.bf16.msra.mxu0 %v6623_v38  ;;  %2644 = vmatpush.bf16.msra.mxu1 %v6627_v57  ;;  %v6744_v38 = vld [vmem:[#allocation4 + $0x878] sm:$0xf0]  ;;  %v6743_v57 = vor.u32 %v8178_v29, %v6742_v26  ;;  %v9074_v41 = vpop.f32.mrf.mxu0  ;;  %v8154_v29 = vld [vmem:[#allocation4 + $0x7b4] sm:$0xf0]  ;;  %v8232_v4 = vld [vmem:[#allocation4 + $0xa1c] sm:$0xf0] }
 0x135   :  { %2658 = vmatpush.bf16.msra.mxu2 %v6631_v62  ;;  %v6702_v62 = vld [vmem:[#allocation4 + $0x810] sm:$0xf]  ;;  %v6747_v37 = vor.u32 %v8174_v53, %v6744_v38  ;;  %v6648_v53 = vld [vmem:[#allocation4 + $0x7b8] sm:$0xf0]  ;;  %v6989_v38 = vld [vmem:[#allocation4 + $0xa40] sm:$0xf] }
 0x136   :  { %2672 = vmatpush.bf16.msra.mxu3 %v6635_v56  ;;  %v8166_v56 = vld [vmem:[#allocation4 + $0x81c] sm:$0xf]  ;;  %v6703_v28 = vor.u32 %v8169_v47, %v6702_v62  ;;  %v6991_v47 = vld [vmem:[#allocation4 + $0xa60] sm:$0xf0] }
 0x137   :  { %6812 = vmatmul.msk.bf16.vlgmr.msra.gmra.mxu0 %vm532_vm0, %v9058_v13  ;;  %6813 = vmatmul.msk.bf16.vlgmr.msra.gmra.mxu1 %vm532_vm0, %v9058_v13 }
 0x138   :  { %2681 = vmatpush.bf16.msrb.mxu0 %v6799_v59  ;;  %2695 = vmatpush.bf16.msrb.mxu1 %v6803_v63  ;;  %v6712_v59 = vld [vmem:[#allocation4 + $0x838] sm:$0xf0]  ;;  %v6707_v63 = vor.u32 %v8165_v49, %v6704_v50  ;;  %v6997_v49 = vld [vmem:[#allocation4 + $0xa48] sm:$0xf]  ;;  %v9080_v50 = vpop.f32.mrf.mxu3 }
 0x139   :  { %2709 = vmatpush.bf16.msrb.mxu2 %v6807_v0  ;;  %6815 = vmatmul.msk.bf16.vlgmr.msra.gmra.mxu3 %vm532_vm0, %v9058_v13  ;;  %v6711_v0 = vor.u32 %v8170_v42, %v6710_v51  ;;  %v6715_v9 = vor.u32 %v8166_v56, %v6712_v59  ;;  %v6647_v42 = vor.u32 %v8154_v29, %v6646_v25  ;;  %v8237_v56 = vld [vmem:[#allocation4 + $0xa4c] sm:$0xf]  ;;  %v8224_v25 = vld [vmem:[#allocation4 + $0x9dc] sm:$0xf0]  ;;  %v6927_v29 = vld [vmem:[#allocation4 + $0x9e0] sm:$0xf0] }
 0x13a   :  { %2723 = vmatpush.bf16.msrb.mxu3 %v6811_v31  ;;  %6814 = vmatmul.msk.bf16.vlgmr.msra.gmra.mxu2 %vm532_vm0, %v9058_v13  ;;  %v9076_v31 = vpop.f32.mrf.mxu1  ;;  %v6999_v59 = vld [vmem:[#allocation4 + $0xa68] sm:$0xf0] }
 0x13c   :  { %2682 = vmatpush.bf16.msrb.mxu0 %v6767_v15  ;;  %2696 = vmatpush.bf16.msrb.mxu1 %v6771_v11  ;;  %v6680_v15 = vld [vmem:[#allocation4 + $0x7f8] sm:$0xf0]  ;;  %v6671_v11 = vor.u32 %v8161_v5, %v6670_v3 }
 0x13d   :  { %2710 = vmatpush.bf16.msrb.mxu2 %v6775_v16  ;;  %v6638_v16 = vld [vmem:[#allocation4 + $0x790] sm:$0xf]  ;;  %v6683_v26 = vor.u32 %v8158_v14, %v6680_v15  ;;  %v8228_v14 = vld [vmem:[#allocation4 + $0xa04] sm:$0xf]  ;;  %v7002_v15 = vor.u32 %v8237_v56, %v6999_v59  ;;  %v6893_v56 = vld [vmem:[#allocation4 + $0x980] sm:$0xf] }
 0x13e   :  { %2724 = vmatpush.bf16.msrb.mxu3 %v6779_v23  ;;  %v8149_v23 = vld [vmem:[#allocation4 + $0x794] sm:$0xf]  ;;  %v6639_v62 = vor.u32 %v8153_v18, %v6638_v16  ;;  %v6965_v16 = vld [vmem:[#allocation4 + $0xa08] sm:$0xf] }
 0x13f   :  { %v6643_v51 = vor.u32 %v8149_v23, %v6640_v19  ;;  %v8233_v18 = vld [vmem:[#allocation4 + $0xa24] sm:$0xf0]  ;;  %v6925_v23 = vld [vmem:[#allocation4 + $0x9c0] sm:$0xf] }
 0x140   :  { %2683 = vmatpush.bf16.msrb.mxu0 %v6735_v17  ;;  %2697 = vmatpush.bf16.msrb.mxu1 %v6739_v44  ;;  %v8240_v17 = vld [vmem:[#allocation4 + $0xa5c] sm:$0xf0]  ;;  %v8236_v44 = vld [vmem:[#allocation4 + $0xa44] sm:$0xf]  ;;  %v6966_v19 = vor.u32 %v8233_v18, %v6965_v16 }
 0x141   :  { %2711 = vmatpush.bf16.msrb.mxu2 %v6743_v57  ;;  %v9078_v57 = vpop.f32.mrf.mxu2  ;;  %v6994_v7 = vor.u32 %v8236_v44, %v6991_v47  ;;  %v6822_v44 = vld [vmem:[%s9557_s0 + $0x20] sm:$0x1] }
 0x142   :  { %2725 = vmatpush.bf16.msrb.mxu3 %v6747_v37  ;;  %v8241_v37 = vld [vmem:[#allocation4 + $0xa64] sm:$0xf0]  ;;  %v1387_v5 = vpop.f32.mrf.mxu1 }
 0x143   :  { %v9086_v36 = vadd.f32 %v1387_v5, %v9017_v60  ;;  %v2808_v5 = vunpack.c.l.b16 %v6822_v44 }
 0x144   :  { %2684 = vmatpush.bf16.msrb.mxu0 %v6703_v28  ;;  %2698 = vmatpush.bf16.msrb.mxu1 %v6707_v63  ;;  %v1373_v28 = vpop.f32.mrf.mxu0  ;;  %v6651_v63 = vor.u32 %v8150_v32, %v6648_v53  ;;  %v1415_v47 = vpop.f32.mrf.mxu3 }
 0x145   :  { %2712 = vmatpush.bf16.msrb.mxu2 %v6711_v0  ;;  %v6990_v0 = vor.u32 %v8240_v17, %v6989_v38  ;;  %v9083_v3 = vadd.f32 %v1373_v28, %v9014_v54  ;;  %v6958_v54 = vor.u32 %v8232_v4, %v6957_v12  ;;  %v6933_v38 = vld [vmem:[#allocation4 + $0x9c8] sm:$0xf]  ;;  %v8213_v12 = vld [vmem:[#allocation4 + $0x98c] sm:$0xf] }
 0x146   :  { %2726 = vmatpush.bf16.msrb.mxu3 %v6715_v9  ;;  %v6998_v9 = vor.u32 %v8241_v37, %v6997_v49  ;;  %v8225_v17 = vld [vmem:[#allocation4 + $0x9e4] sm:$0xf0]  ;;  %v8221_v49 = vld [vmem:[#allocation4 + $0x9cc] sm:$0xf] }
 0x147   :  { %v6935_v37 = vld [vmem:[#allocation4 + $0x9e8] sm:$0xf0]  ;;  %v6934_v28 = vor.u32 %v8225_v17, %v6933_v38  ;;  %v6829_v38 = vld [vmem:[#allocation4 + $0x900] sm:$0xf] }
 0x148   :  { %2685 = vmatpush.bf16.msrb.mxu0 %v6671_v11  ;;  %2699 = vmatpush.bf16.msrb.mxu1 %v6675_v20  ;;  %v6959_v11 = vld [vmem:[#allocation4 + $0xa20] sm:$0xf0]  ;;  %v8229_v20 = vld [vmem:[#allocation4 + $0xa0c] sm:$0xf] }
 0x149   :  { %2713 = vmatpush.bf16.msrb.mxu2 %v6679_v21  ;;  %v6967_v21 = vld [vmem:[#allocation4 + $0xa28] sm:$0xf0]  ;;  %v6962_v60 = vor.u32 %v8228_v14, %v6959_v11  ;;  %v1401_v53 = vpop.f32.mrf.mxu2  ;;  %v8208_v11 = vld [vmem:[#allocation4 + $0x95c] sm:$0xf0] }
 0x14a   :  { %2727 = vmatpush.bf16.msrb.mxu3 %v6683_v26  ;;  %v8220_v26 = vld [vmem:[#allocation4 + $0x9c4] sm:$0xf]  ;;  %v6970_v32 = vor.u32 %v8229_v20, %v6967_v21  ;;  %v6903_v4 = vld [vmem:[#allocation4 + $0x9a8] sm:$0xf0] }
 0x14b   :  { %v6930_v59 = vor.u32 %v8220_v26, %v6927_v29  ;;  %v8204_v21 = vld [vmem:[#allocation4 + $0x944] sm:$0xf]  ;;  %v6869_v26 = vld [vmem:[#allocation4 + $0x948] sm:$0xf] }
 0x14c   :  { %2686 = vmatpush.bf16.msrb.mxu0 %v6639_v62  ;;  %2700 = vmatpush.bf16.msrb.mxu1 %v6643_v51  ;;  %v9098_v62 = vadd.f32 %v1401_v53, %v9029_v24  ;;  %v9103_v51 = vadd.f32 %v1415_v47, %v9034_v27  ;;  %v9108_v24 = vld [vmem:[%s9557_s0 + $0x18] sm:$0xff]  ;;  %v8217_v27 = vld [vmem:[#allocation4 + $0x9a4] sm:$0xf0]  ;;  %v9110_v16 = vpop.f32.mrf.mxu0  ;;  %v6871_v53 = vld [vmem:[#allocation4 + $0x968] sm:$0xf0] }
 0x14d   :  { %2714 = vmatpush.bf16.msrb.mxu2 %v6647_v42  ;;  %v6926_v42 = vor.u32 %v8224_v25, %v6925_v23  ;;  %9572 = vst [vmem:[#allocation28_spill] sm:$0xff] %v9110_v16  ;;  %v2810_v23 = vpack.c.b16 %v2808_v5, %v2808_v5  ;;  %v6906_v25 = vor.u32 %v8213_v12, %v6903_v4  ;;  %v8209_v29 = vld [vmem:[#allocation4 + $0x964] sm:$0xf0]  ;;  %v8200_v47 = vld [vmem:[#allocation4 + $0x91c] sm:$0xf0] }
 0x14e   :  { %2728 = vmatpush.bf16.msrb.mxu3 %v6651_v63  ;;  %v8216_v63 = vld [vmem:[#allocation4 + $0x99c] sm:$0xf0]  ;;  %v8201_v5 = vld [vmem:[#allocation4 + $0x924] sm:$0xf0]  ;;  %v8238_v12 = vld [vmem:[#allocation4 + $0xa54] sm:$0xf] }
 0x14f   :  { %6816 = vmatmul.msk.bf16.vlgmr.msrb.gmra.mxu0 %vm532_vm0, %v9058_v13  ;;  %6817 = vmatmul.msk.bf16.vlgmr.msrb.gmra.mxu1 %vm532_vm0, %v9058_v13  ;;  %v6894_v14 = vor.u32 %v8216_v63, %v6893_v56  ;;  %v6837_v56 = vld [vmem:[#allocation4 + $0x908] sm:$0xf]  ;;  %v2819_v63 = vshll.u32 %v2810_v23, 16  ;;  %v7015_v23 = vld [vmem:[#allocation4 + $0xa78] sm:$0xf0] }
 0x150   :  { %3068 = vmatpush.bf16.msra.mxu0 %v6990_v0  ;;  %3082 = vmatpush.bf16.msra.mxu1 %v6994_v7  ;;  %v8212_v0 = vld [vmem:[#allocation4 + $0x984] sm:$0xf] }
 0x151   :  { %3096 = vmatpush.bf16.msra.mxu2 %v6998_v9  ;;  %6819 = vmatmul.msk.bf16.vlgmr.msrb.gmra.mxu3 %vm532_vm0, %v9058_v13  ;;  %v6895_v7 = vld [vmem:[#allocation4 + $0x9a0] sm:$0xf0]  ;;  %v6901_v9 = vld [vmem:[#allocation4 + $0x988] sm:$0xf]  ;;  %v9116_v4 = vpop.f32.mrf.mxu2 }
 0x152   :  { %3110 = vmatpush.bf16.msra.mxu3 %v7002_v15  ;;  %6818 = vmatmul.msk.bf16.vlgmr.msrb.gmra.mxu2 %vm532_vm0, %v9058_v13  ;;  %v6938_v13 = vor.u32 %v8221_v49, %v6935_v37  ;;  %v6861_v15 = vld [vmem:[#allocation4 + $0x940] sm:$0xf]  ;;  %v6898_v18 = vor.u32 %v8212_v0, %v6895_v7  ;;  %v6902_v20 = vor.u32 %v8217_v27, %v6901_v9  ;;  %v8196_v49 = vld [vmem:[#allocation4 + $0x904] sm:$0xf]  ;;  %v6839_v7 = vld [vmem:[#allocation4 + $0x928] sm:$0xf0] }
 0x153   :  { %v6862_v17 = vor.u32 %v8208_v11, %v6861_v15  ;;  %v6831_v37 = vld [vmem:[#allocation4 + $0x920] sm:$0xf0]  ;;  %v7005_v9 = vld [vmem:[#allocation4 + $0xa50] sm:$0xf]  ;;  %9574 = vst [vmem:[#allocation30_spill] sm:$0xff] %v9116_v4 }
 0x154   :  { %3069 = vmatpush.bf16.msra.mxu0 %v6958_v54  ;;  %3083 = vmatpush.bf16.msra.mxu1 %v6962_v60  ;;  %v6863_v54 = vld [vmem:[#allocation4 + $0x960] sm:$0xf0]  ;;  %v2814_v60 = vshll.u32 %v9108_v24, 16  ;;  %v8242_v27 = vld [vmem:[#allocation4 + $0xa6c] sm:$0xf0] }
 0x155   :  { %3097 = vmatpush.bf16.msra.mxu2 %v6966_v19  ;;  %v9113_v19 = vpop.f32.mrf.mxu1  ;;  %v6866_v44 = vor.u32 %v8204_v21, %v6863_v54  ;;  %v7007_v15 = vld [vmem:[#allocation4 + $0xa70] sm:$0xf0]  ;;  %v7013_v11 = vld [vmem:[#allocation4 + $0xa58] sm:$0xf]  ;;  %v6838_v21 = vor.u32 %v8201_v5, %v6837_v56  ;;  %v8239_v54 = vld [vmem:[#allocation4 + $0xa5c] sm:$0xf] }
 0x156   :  { %3111 = vmatpush.bf16.msra.mxu3 %v6970_v32  ;;  %9573 = vst [vmem:[#allocation29_spill] sm:$0xff] %v9113_v19  ;;  %v8205_v32 = vld [vmem:[#allocation4 + $0x94c] sm:$0xf]  ;;  %v6975_v56 = vld [vmem:[#allocation4 + $0xa30] sm:$0xf0] }
 0x157   :  { %v6874_v0 = vor.u32 %v8205_v32, %v6871_v53  ;;  %v7006_v32 = vor.u32 %v8242_v27, %v7005_v9  ;;  %v8226_v9 = vld [vmem:[#allocation4 + $0x9ec] sm:$0xf0]  ;;  %v8222_v27 = vld [vmem:[#allocation4 + $0x9d4] sm:$0xf]  ;;  %v7164_v4 = vld [vmem:[#allocation4 + $0xb80] sm:$0xf] }
 0x158   :  { %3070 = vmatpush.bf16.msra.mxu0 %v6926_v42  ;;  %3084 = vmatpush.bf16.msra.mxu1 %v6930_v59  ;;  %v6870_v42 = vor.u32 %v8209_v29, %v6869_v26  ;;  %v2812_v59 = vshrl.u32 %v9108_v24, 16  ;;  %v6834_v24 = vor.u32 %v8196_v49, %v6831_v37  ;;  %v2821_v26 = vrot.slane %v2819_v63, 1  ;;  %v8234_v49 = vld [vmem:[#allocation4 + $0xa2c] sm:$0xf0]  ;;  %v8230_v37 = vld [vmem:[#allocation4 + $0xa14] sm:$0xf] }
 0x159   :  { %3098 = vmatpush.bf16.msra.mxu2 %v6934_v28  ;;  %v2816_v28 = vrot.slane %v2814_v60, 1  ;;  %v1745_v60 = vpop.f32.mrf.mxu0  ;;  %v7212_v19 = vld [vmem:[#allocation4 + $0xbd0] sm:$0xf] }
 0x15a   :  { %3112 = vmatpush.bf16.msra.mxu3 %v6938_v13  ;;  %v8197_v13 = vld [vmem:[#allocation4 + $0x90c] sm:$0xf]  ;;  %v9121_v53 = vadd.f32 %v1745_v60, %v9052_v61  ;;  %v8231_v61 = vld [vmem:[#allocation4 + $0xa1c] sm:$0xf] }
 0x15b   :  { %v6842_v29 = vor.u32 %v8197_v13, %v6839_v7  ;;  %v6941_v7 = vld [vmem:[#allocation4 + $0x9d0] sm:$0xf] }
 0x15c   :  { %3071 = vmatpush.bf16.msra.mxu0 %v6894_v14  ;;  %3085 = vmatpush.bf16.msra.mxu1 %v6898_v18  ;;  %v6830_v14 = vor.u32 %v8200_v47, %v6829_v38  ;;  %v8243_v18 = vld [vmem:[#allocation4 + $0xa74] sm:$0xf0] }
 0x15d   :  { %3099 = vmatpush.bf16.msra.mxu2 %v6902_v20  ;;  %v9118_v20 = vpop.f32.mrf.mxu3  ;;  %v1759_v38 = vpop.f32.mrf.mxu1  ;;  %v7014_v47 = vor.u32 %v8243_v18, %v7013_v11  ;;  %v6949_v11 = vld [vmem:[#allocation4 + $0x9d8] sm:$0xf] }
 0x15e   :  { %3113 = vmatpush.bf16.msra.mxu3 %v6906_v25  ;;  %9575 = vst [vmem:[#allocation31_spill] sm:$0xff] %v9118_v20  ;;  %v2817_v25 = vor.u32 %v2816_v28, %v2812_v59  ;;  %v9124_v20 = vadd.f32 %v1759_v38, %v9055_v6  ;;  %v6981_v59 = vld [vmem:[#allocation4 + $0xa18] sm:$0xf]  ;;  %v6978_v6 = vor.u32 %v8230_v37, %v6975_v56  ;;  %v8218_v38 = vld [vmem:[#allocation4 + $0x9ac] sm:$0xf0] }
 0x15f   :  { %v8235_v28 = vld [vmem:[#allocation4 + $0xa34] sm:$0xf0]  ;;  %v8215_v37 = vld [vmem:[#allocation4 + $0x99c] sm:$0xf] }
 0x160   :  { %3072 = vmatpush.bf16.msra.mxu0 %v6862_v17  ;;  %3086 = vmatpush.bf16.msra.mxu1 %v6866_v44  ;;  %v7010_v17 = vor.u32 %v8238_v12, %v7007_v15  ;;  %v6973_v44 = vld [vmem:[#allocation4 + $0xa10] sm:$0xf]  ;;  %v9127_v63 = vsel %vm1924_vm1, %v2817_v25, %v2821_v26  ;;  %v6982_v13 = vor.u32 %v8235_v28, %v6981_v59  ;;  %v6943_v15 = vld [vmem:[#allocation4 + $0x9f0] sm:$0xf0]  ;;  %v8227_v18 = vld [vmem:[#allocation4 + $0x9f4] sm:$0xf0] }
 0x161   :  { %3100 = vmatpush.bf16.msra.mxu2 %v6870_v42  ;;  %v7018_v42 = vor.u32 %v8239_v54, %v7015_v23  ;;  %v6974_v5 = vor.u32 %v8234_v49, %v6973_v44  ;;  %v8223_v54 = vld [vmem:[#allocation4 + $0x9dc] sm:$0xf]  ;;  %v6942_v25 = vor.u32 %v8226_v9, %v6941_v7  ;;  %v6946_v26 = vor.u32 %v8222_v27, %v6943_v15  ;;  %v6917_v44 = vld [vmem:[#allocation4 + $0x998] sm:$0xf]  ;;  %v6879_v7 = vld [vmem:[#allocation4 + $0x970] sm:$0xf0] }
 0x162   :  { %3114 = vmatpush.bf16.msra.mxu3 %v6874_v0  ;;  %v6983_v0 = vld [vmem:[#allocation4 + $0xa38] sm:$0xf0]  ;;  %v8219_v49 = vld [vmem:[#allocation4 + $0x9b4] sm:$0xf0] }
 0x163   :  { %v6986_v12 = vor.u32 %v8231_v61, %v6983_v0  ;;  %v6951_v23 = vld [vmem:[#allocation4 + $0x9f8] sm:$0xf0]  ;;  %v6918_v28 = vor.u32 %v8219_v49, %v6917_v44  ;;  %v6877_v61 = vld [vmem:[#allocation4 + $0x950] sm:$0xf]  ;;  %v6885_v9 = vld [vmem:[#allocation4 + $0x958] sm:$0xf] }
 0x164   :  { %3073 = vmatpush.bf16.msra.mxu0 %v6830_v14  ;;  %3087 = vmatpush.bf16.msra.mxu1 %v6834_v24  ;;  %v1773_v14 = vpop.f32.mrf.mxu2  ;;  %v8210_v0 = vld [vmem:[#allocation4 + $0x96c] sm:$0xf0]  ;;  %v8211_v27 = vld [vmem:[#allocation4 + $0x974] sm:$0xf0]  ;;  %v8285_v44 = vld [vmem:[#allocation4 + $0xbc4] sm:$0xf] }
 0x165   :  { %3101 = vmatpush.bf16.msra.mxu2 %v6838_v21  ;;  %v9136_v24 = vadd.f32 %v1773_v14, %v9067_v30  ;;  %v1787_v21 = vpop.f32.mrf.mxu3  ;;  %v6954_v30 = vor.u32 %v8223_v54, %v6951_v23  ;;  %v6887_v14 = vld [vmem:[#allocation4 + $0x978] sm:$0xf0]  ;;  %v6878_v15 = vor.u32 %v8210_v0, %v6877_v61  ;;  %v6886_v54 = vor.u32 %v8211_v27, %v6885_v9  ;;  %v8198_v23 = vld [vmem:[#allocation4 + $0x914] sm:$0xf] }
 0x166   :  { %3115 = vmatpush.bf16.msra.mxu3 %v6842_v29  ;;  %v9141_v60 = vadd.f32 %v1787_v21, %v9072_v39  ;;  %v6950_v29 = vor.u32 %v8227_v18, %v6949_v11  ;;  %v9143_v39 = vpop.f32.mrf.mxu0  ;;  %v6845_v11 = vld [vmem:[#allocation4 + $0x910] sm:$0xf] }
 0x167   :  { %7019 = vmatmul.msk.bf16.vlgmr.msra.gmra.mxu0 %vm532_vm0, %v9127_v63  ;;  %7020 = vmatmul.msk.bf16.vlgmr.msra.gmra.mxu1 %vm532_vm0, %v9127_v63  ;;  %v8202_v18 = vld [vmem:[#allocation4 + $0x92c] sm:$0xf0] }
 0x168   :  { %3124 = vmatpush.bf16.msrb.mxu0 %v7006_v32  ;;  %3138 = vmatpush.bf16.msrb.mxu1 %v7010_v17  ;;  %v6909_v32 = vld [vmem:[#allocation4 + $0x990] sm:$0xf]  ;;  %v8214_v17 = vld [vmem:[#allocation4 + $0x994] sm:$0xf] }
 0x169   :  { %3152 = vmatpush.bf16.msrb.mxu2 %v7014_v47  ;;  %7022 = vmatmul.msk.bf16.vlgmr.msra.gmra.mxu3 %vm532_vm0, %v9127_v63  ;;  %v6911_v47 = vld [vmem:[#allocation4 + $0x9b0] sm:$0xf0]  ;;  %v6910_v56 = vor.u32 %v8218_v38, %v6909_v32  ;;  %v8203_v32 = vld [vmem:[#allocation4 + $0x934] sm:$0xf0]  ;;  %v8199_v38 = vld [vmem:[#allocation4 + $0x91c] sm:$0xf] }
 0x16a   :  { %3166 = vmatpush.bf16.msrb.mxu3 %v7018_v42  ;;  %7021 = vmatmul.msk.bf16.vlgmr.msra.gmra.mxu2 %vm532_vm0, %v9127_v63  ;;  %v6919_v42 = vld [vmem:[#allocation4 + $0x9b8] sm:$0xf0]  ;;  %v6914_v59 = vor.u32 %v8214_v17, %v6911_v47  ;;  %v8289_v47 = vld [vmem:[#allocation4 + $0xbdc] sm:$0xf0] }
 0x16b   :  { %v6855_v17 = vld [vmem:[#allocation4 + $0x938] sm:$0xf0] }
 0x16c   :  { %3125 = vmatpush.bf16.msrb.mxu0 %v6974_v5  ;;  %3139 = vmatpush.bf16.msrb.mxu1 %v6978_v6  ;;  %v8206_v5 = vld [vmem:[#allocation4 + $0x954] sm:$0xf]  ;;  %v9145_v6 = vpop.f32.mrf.mxu1  ;;  %v9147_v49 = vpop.f32.mrf.mxu2  ;;  %v6858_v9 = vor.u32 %v8199_v38, %v6855_v17  ;;  %v7174_v38 = vld [vmem:[#allocation4 + $0xba8] sm:$0xf0]  ;;  %v7132_v17 = vld [vmem:[#allocation4 + $0xb40] sm:$0xf] }
 0x16d   :  { %3153 = vmatpush.bf16.msrb.mxu2 %v6982_v13  ;;  %v6922_v13 = vor.u32 %v8215_v37, %v6919_v42  ;;  %v6882_v21 = vor.u32 %v8206_v5, %v6879_v7  ;;  %v6846_v37 = vor.u32 %v8202_v18, %v6845_v11  ;;  %v7198_v42 = vld [vmem:[#allocation4 + $0xbe0] sm:$0xf0]  ;;  %v8286_v5 = vld [vmem:[#allocation4 + $0xbcc] sm:$0xf] }
 0x16e   :  { %3167 = vmatpush.bf16.msrb.mxu3 %v6986_v12  ;;  %v8207_v12 = vld [vmem:[#allocation4 + $0x95c] sm:$0xf]  ;;  %v1801_v7 = vpop.f32.mrf.mxu0 }
 0x170   :  { %3126 = vmatpush.bf16.msrb.mxu0 %v6942_v25  ;;  %3140 = vmatpush.bf16.msrb.mxu1 %v6946_v26  ;;  %v6847_v25 = vld [vmem:[#allocation4 + $0x930] sm:$0xf0]  ;;  %v6853_v26 = vld [vmem:[#allocation4 + $0x918] sm:$0xf] }
 0x171   :  { %3154 = vmatpush.bf16.msrb.mxu2 %v6950_v29  ;;  %v6890_v29 = vor.u32 %v8207_v12, %v6887_v14  ;;  %v6850_v61 = vor.u32 %v8198_v23, %v6847_v25  ;;  %v6854_v0 = vor.u32 %v8203_v32, %v6853_v26  ;;  %v9152_v12 = vadd.f32 %v1801_v7, %v9083_v3  ;;  %v7166_v25 = vld [vmem:[#allocation4 + $0xba0] sm:$0xf0]  ;;  %v7172_v26 = vld [vmem:[#allocation4 + $0xb88] sm:$0xf]  ;;  %v7142_v7 = vld [vmem:[#allocation4 + $0xb68] sm:$0xf0] }
 0x172   :  { %3168 = vmatpush.bf16.msrb.mxu3 %v6954_v30  ;;  %v7196_v30 = vld [vmem:[#allocation4 + $0xbc0] sm:$0xf]  ;;  %v8282_v32 = vld [vmem:[#allocation4 + $0xba4] sm:$0xf0] }
 0x173   :  { %v7197_v27 = vor.u32 %v8289_v47, %v7196_v30  ;;  %v7173_v30 = vor.u32 %v8282_v32, %v7172_v26  ;;  %v8273_v47 = vld [vmem:[#allocation4 + $0xb5c] sm:$0xf0]  ;;  %v7108_v26 = vld [vmem:[#allocation4 + $0xb08] sm:$0xf]  ;;  %v8262_v32 = vld [vmem:[#allocation4 + $0xb0c] sm:$0xf] }
 0x174   :  { %3127 = vmatpush.bf16.msrb.mxu0 %v6910_v56  ;;  %3141 = vmatpush.bf16.msrb.mxu1 %v6914_v59  ;;  %v7204_v56 = vld [vmem:[#allocation4 + $0xbc8] sm:$0xf]  ;;  %v1815_v14 = vpop.f32.mrf.mxu1 }
 0x175   :  { %3155 = vmatpush.bf16.msrb.mxu2 %v6918_v28  ;;  %v8290_v59 = vld [vmem:[#allocation4 + $0xbe4] sm:$0xf0]  ;;  %v9149_v28 = vpop.f32.mrf.mxu3  ;;  %v9155_v18 = vadd.f32 %v1815_v14, %v9086_v36  ;;  %v7100_v14 = vld [vmem:[#allocation4 + $0xb00] sm:$0xf] }
 0x176   :  { %3169 = vmatpush.bf16.msrb.mxu3 %v6922_v13  ;;  %v7206_v13 = vld [vmem:[#allocation4 + $0xbe8] sm:$0xf0]  ;;  %v7205_v11 = vor.u32 %v8290_v59, %v7204_v56  ;;  %v1829_v56 = vpop.f32.mrf.mxu2  ;;  %v7140_v59 = vld [vmem:[#allocation4 + $0xb48] sm:$0xf] }
 0x177   :  { %v7209_v23 = vor.u32 %v8286_v5, %v7206_v13  ;;  %v8270_v13 = vld [vmem:[#allocation4 + $0xb4c] sm:$0xf] }
 0x178   :  { %3128 = vmatpush.bf16.msrb.mxu0 %v6878_v15  ;;  %3142 = vmatpush.bf16.msrb.mxu1 %v6882_v21  ;;  %v7201_v15 = vor.u32 %v8285_v44, %v7198_v42  ;;  %v8281_v21 = vld [vmem:[#allocation4 + $0xb9c] sm:$0xf0]  ;;  %v8269_v44 = vld [vmem:[#allocation4 + $0xb44] sm:$0xf] }
 0x179   :  { %3156 = vmatpush.bf16.msrb.mxu2 %v6886_v54  ;;  %v8277_v54 = vld [vmem:[#allocation4 + $0xb84] sm:$0xf]  ;;  %v7165_v3 = vor.u32 %v8281_v21, %v7164_v4  ;;  %v7029_v4 = vld [vmem:[%s9557_s0 + $0x2c] sm:$0x1]  ;;  %v8265_v21 = vld [vmem:[#allocation4 + $0xb1c] sm:$0xf0] }
 0x17a   :  { %3170 = vmatpush.bf16.msrb.mxu3 %v6890_v29  ;;  %v8278_v29 = vld [vmem:[#allocation4 + $0xb8c] sm:$0xf]  ;;  %v7169_v36 = vor.u32 %v8277_v54, %v7166_v25  ;;  %v7134_v42 = vld [vmem:[#allocation4 + $0xb60] sm:$0xf0] }
 0x17b   :  { %v8261_v54 = vld [vmem:[#allocation4 + $0xb04] sm:$0xf] }
 0x17c   :  { %3129 = vmatpush.bf16.msrb.mxu0 %v6846_v37  ;;  %3143 = vmatpush.bf16.msrb.mxu1 %v6850_v61  ;;  %v7177_v37 = vor.u32 %v8278_v29, %v7174_v38  ;;  %v8274_v61 = vld [vmem:[#allocation4 + $0xb64] sm:$0xf0]  ;;  %v7102_v25 = vld [vmem:[#allocation4 + $0xb20] sm:$0xf0]  ;;  %v7110_v29 = vld [vmem:[#allocation4 + $0xb28] sm:$0xf0]  ;;  %v7101_v38 = vor.u32 %v8265_v21, %v7100_v14 }
 0x17d   :  { %3157 = vmatpush.bf16.msrb.mxu2 %v6854_v0  ;;  %v9167_v0 = vadd.f32 %v1829_v56, %v9098_v62  ;;  %v1843_v5 = vpop.f32.mrf.mxu3  ;;  %v9177_v62 = vld [vmem:[%s9557_s0 + $0x24] sm:$0xff] }
 0x17e   :  { %3171 = vmatpush.bf16.msrb.mxu3 %v6858_v9  ;;  %v9172_v9 = vadd.f32 %v1843_v5, %v9103_v51  ;;  %v8266_v51 = vld [vmem:[#allocation4 + $0xb24] sm:$0xf0]  ;;  %v8245_v21 = vld [vmem:[#allocation4 + $0xa84] sm:$0xf] }
 0x17f   :  { %7023 = vmatmul.msk.bf16.vlgmr.msrb.gmra.mxu0 %vm532_vm0, %v9127_v63  ;;  %7024 = vmatmul.msk.bf16.vlgmr.msrb.gmra.mxu1 %vm532_vm0, %v9127_v63  ;;  %v8258_v5 = vld [vmem:[#allocation4 + $0xae4] sm:$0xf0] }
 0x180   :  { %3511 = vmatpush.bf16.msra.mxu0 %v7197_v27  ;;  %3525 = vmatpush.bf16.msra.mxu1 %v7201_v15  ;;  %v7133_v27 = vor.u32 %v8273_v47, %v7132_v17  ;;  %v7137_v15 = vor.u32 %v8269_v44, %v7134_v42  ;;  %v8257_v17 = vld [vmem:[#allocation4 + $0xadc] sm:$0xf0]  ;;  %v7109_v47 = vor.u32 %v8266_v51, %v7108_v26  ;;  %v8253_v44 = vld [vmem:[#allocation4 + $0xac4] sm:$0xf] }
 0x181   :  { %3539 = vmatpush.bf16.msra.mxu2 %v7205_v11  ;;  %7026 = vmatmul.msk.bf16.vlgmr.msrb.gmra.mxu3 %vm532_vm0, %v9127_v63  ;;  %v7141_v11 = vor.u32 %v8274_v61, %v7140_v59  ;;  %v7070_v42 = vld [vmem:[#allocation4 + $0xae0] sm:$0xf0]  ;;  %v9182_v59 = vpop.f32.mrf.mxu1  ;;  %v7113_v61 = vor.u32 %v8262_v32, %v7110_v29  ;;  %v8250_v29 = vld [vmem:[#allocation4 + $0xaa4] sm:$0xf0] }
 0x182   :  { %3553 = vmatpush.bf16.msra.mxu3 %v7209_v23  ;;  %7025 = vmatmul.msk.bf16.vlgmr.msrb.gmra.mxu2 %vm532_vm0, %v9127_v63  ;;  %v3251_v23 = vunpack.c.l.b16 %v7029_v4  ;;  %v7145_v63 = vor.u32 %v8270_v13, %v7142_v7  ;;  %9577 = vst [vmem:[#allocation33_spill] sm:$0xff] %v9182_v59  ;;  %v7076_v4 = vld [vmem:[#allocation4 + $0xac8] sm:$0xf]  ;;  %v8254_v13 = vld [vmem:[#allocation4 + $0xacc] sm:$0xf] }
 0x183   :  { %v7078_v7 = vld [vmem:[#allocation4 + $0xae8] sm:$0xf0] }
 0x184   :  { %3512 = vmatpush.bf16.msra.mxu0 %v7165_v3  ;;  %3526 = vmatpush.bf16.msra.mxu1 %v7169_v36  ;;  %v7068_v3 = vld [vmem:[#allocation4 + $0xac0] sm:$0xf]  ;;  %v9179_v36 = vpop.f32.mrf.mxu0  ;;  %v3253_v56 = vpack.c.b16 %v3251_v23, %v3251_v23  ;;  %v7077_v23 = vor.u32 %v8258_v5, %v7076_v4  ;;  %v7081_v32 = vor.u32 %v8254_v13, %v7078_v7  ;;  %v8246_v59 = vld [vmem:[#allocation4 + $0xa8c] sm:$0xf] }
 0x185   :  { %3540 = vmatpush.bf16.msra.mxu2 %v7173_v30  ;;  %9576 = vst [vmem:[#allocation32_spill] sm:$0xff] %v9179_v36  ;;  %v7105_v30 = vor.u32 %v8261_v54, %v7102_v25  ;;  %v7069_v14 = vor.u32 %v8257_v17, %v7068_v3  ;;  %v7038_v54 = vld [vmem:[#allocation4 + $0xaa0] sm:$0xf0]  ;;  %v7044_v25 = vld [vmem:[#allocation4 + $0xa88] sm:$0xf]  ;;  %v9185_v17 = vpop.f32.mrf.mxu2  ;;  %v9187_v4 = vpop.f32.mrf.mxu3 }
 0x186   :  { %3554 = vmatpush.bf16.msra.mxu3 %v7177_v37  ;;  %v3257_v37 = vshll.u32 %v9177_v62, 16  ;;  %v3262_v51 = vshll.u32 %v3253_v56, 16  ;;  %v7046_v36 = vld [vmem:[#allocation4 + $0xaa8] sm:$0xf0]  ;;  %v8287_v3 = vld [vmem:[#allocation4 + $0xbd4] sm:$0xf]  ;;  %v7045_v56 = vor.u32 %v8250_v29, %v7044_v25 }
 0x187   :  { %9578 = vst [vmem:[#allocation34_spill] sm:$0xff] %v9185_v17  ;;  %v7049_v16 = vor.u32 %v8246_v59, %v7046_v36  ;;  %v7182_v25 = vld [vmem:[#allocation4 + $0xbb0] sm:$0xf0]  ;;  %v7190_v36 = vld [vmem:[#allocation4 + $0xbb8] sm:$0xf0] }
 0x188   :  { %3513 = vmatpush.bf16.msra.mxu0 %v7133_v27  ;;  %3527 = vmatpush.bf16.msra.mxu1 %v7137_v15  ;;  %v7036_v27 = vld [vmem:[#allocation4 + $0xa80] sm:$0xf]  ;;  %v7073_v15 = vor.u32 %v8253_v44, %v7070_v42  ;;  %v3259_v26 = vrot.slane %v3257_v37, 1  ;;  %v8292_v42 = vld [vmem:[#allocation4 + $0xbf4] sm:$0xf0]  ;;  %9579 = vst [vmem:[#allocation35_spill] sm:$0xff] %v9187_v4 }
 0x189   :  { %3541 = vmatpush.bf16.msra.mxu2 %v7141_v11  ;;  %v8249_v11 = vld [vmem:[#allocation4 + $0xa9c] sm:$0xf0]  ;;  %v8288_v37 = vld [vmem:[#allocation4 + $0xbdc] sm:$0xf]  ;;  %v3264_v7 = vrot.slane %v3262_v51, 1 }
 0x18a   :  { %3555 = vmatpush.bf16.msra.mxu3 %v7145_v63  ;;  %v3255_v63 = vshrl.u32 %v9177_v62, 16  ;;  %v7037_v44 = vor.u32 %v8249_v11, %v7036_v27  ;;  %v7041_v62 = vor.u32 %v8245_v21, %v7038_v54  ;;  %v2203_v27 = vpop.f32.mrf.mxu1  ;;  %v8283_v21 = vld [vmem:[#allocation4 + $0xbac] sm:$0xf0]  ;;  %v8279_v54 = vld [vmem:[#allocation4 + $0xb94] sm:$0xf] }
 0x18b   :  { %v9193_v4 = vadd.f32 %v2203_v27, %v9124_v20  ;;  %v7185_v20 = vor.u32 %v8279_v54, %v7182_v25  ;;  %v8275_v29 = vld [vmem:[#allocation4 + $0xb6c] sm:$0xf0]  ;;  %v8263_v27 = vld [vmem:[#allocation4 + $0xb14] sm:$0xf]  ;;  %v8264_v54 = vld [vmem:[#allocation4 + $0xb1c] sm:$0xf] }
 0x18c   :  { %3514 = vmatpush.bf16.msra.mxu0 %v7101_v38  ;;  %3528 = vmatpush.bf16.msra.mxu1 %v7105_v30  ;;  %v8291_v38 = vld [vmem:[#allocation4 + $0xbec] sm:$0xf0]  ;;  %v7214_v30 = vld [vmem:[#allocation4 + $0xbf0] sm:$0xf0]  ;;  %v2189_v5 = vpop.f32.mrf.mxu0  ;;  %v3260_v13 = vor.u32 %v3259_v26, %v3255_v63  ;;  %v7188_v63 = vld [vmem:[#allocation4 + $0xb98] sm:$0xf] }
 0x18d   :  { %3542 = vmatpush.bf16.msra.mxu2 %v7109_v47  ;;  %v7220_v47 = vld [vmem:[#allocation4 + $0xbd8] sm:$0xf]  ;;  %v7213_v46 = vor.u32 %v8291_v38, %v7212_v19  ;;  %v7217_v11 = vor.u32 %v8287_v3, %v7214_v30  ;;  %v8271_v38 = vld [vmem:[#allocation4 + $0xb54] sm:$0xf] }
 0x18e   :  { %3556 = vmatpush.bf16.msra.mxu3 %v7113_v61  ;;  %v7222_v61 = vld [vmem:[#allocation4 + $0xbf8] sm:$0xf0]  ;;  %v7221_v17 = vor.u32 %v8292_v42, %v7220_v47  ;;  %v8284_v26 = vld [vmem:[#allocation4 + $0xbb4] sm:$0xf0]  ;;  %v9196_v19 = vsel %vm1924_vm1, %v3260_v13, %v3264_v7  ;;  %v7150_v30 = vld [vmem:[#allocation4 + $0xb70] sm:$0xf0] }
 0x18f   :  { %v7189_v51 = vor.u32 %v8284_v26, %v7188_v63  ;;  %v7156_v47 = vld [vmem:[#allocation4 + $0xb58] sm:$0xf]  ;;  %v7116_v13 = vld [vmem:[#allocation4 + $0xb10] sm:$0xf] }
 0x190   :  { %3515 = vmatpush.bf16.msra.mxu0 %v7069_v14  ;;  %3529 = vmatpush.bf16.msra.mxu1 %v7073_v15  ;;  %v9190_v14 = vadd.f32 %v2189_v5, %v9121_v53  ;;  %v7180_v15 = vld [vmem:[#allocation4 + $0xb90] sm:$0xf]  ;;  %v8280_v53 = vld [vmem:[#allocation4 + $0xb9c] sm:$0xf]  ;;  %v8276_v42 = vld [vmem:[#allocation4 + $0xb74] sm:$0xf0] }
 0x191   :  { %3543 = vmatpush.bf16.msra.mxu2 %v7077_v23  ;;  %v7225_v23 = vor.u32 %v8288_v37, %v7222_v61  ;;  %v7181_v59 = vor.u32 %v8283_v21, %v7180_v15  ;;  %v7193_v3 = vor.u32 %v8280_v53, %v7190_v36  ;;  %v7153_v61 = vor.u32 %v8271_v38, %v7150_v30  ;;  %v8267_v7 = vld [vmem:[#allocation4 + $0xb2c] sm:$0xf0]  ;;  %v7124_v15 = vld [vmem:[#allocation4 + $0xb18] sm:$0xf] }
 0x192   :  { %3557 = vmatpush.bf16.msra.mxu3 %v7081_v32  ;;  %v7148_v32 = vld [vmem:[#allocation4 + $0xb50] sm:$0xf]  ;;  %v7157_v5 = vor.u32 %v8276_v42, %v7156_v47  ;;  %v8268_v21 = vld [vmem:[#allocation4 + $0xb34] sm:$0xf0]  ;;  %v7117_v25 = vor.u32 %v8267_v7, %v7116_v13  ;;  %v8248_v7 = vld [vmem:[#allocation4 + $0xa9c] sm:$0xf] }
 0x193   :  { %v7149_v37 = vor.u32 %v8275_v29, %v7148_v32  ;;  %v7125_v26 = vor.u32 %v8268_v21, %v7124_v15  ;;  %v7084_v53 = vld [vmem:[#allocation4 + $0xad0] sm:$0xf]  ;;  %v7086_v32 = vld [vmem:[#allocation4 + $0xaf0] sm:$0xf0]  ;;  %v7092_v29 = vld [vmem:[#allocation4 + $0xad8] sm:$0xf] }
 0x194   :  { %3516 = vmatpush.bf16.msra.mxu0 %v7037_v44  ;;  %3530 = vmatpush.bf16.msra.mxu1 %v7041_v62  ;;  %v2217_v44 = vpop.f32.mrf.mxu2  ;;  %v7158_v62 = vld [vmem:[#allocation4 + $0xb78] sm:$0xf0]  ;;  %v8259_v36 = vld [vmem:[#allocation4 + $0xaec] sm:$0xf0]  ;;  %v8260_v38 = vld [vmem:[#allocation4 + $0xaf4] sm:$0xf0] }
 0x195   :  { %3544 = vmatpush.bf16.msra.mxu2 %v7045_v56  ;;  %v7085_v30 = vor.u32 %v8259_v36, %v7084_v53  ;;  %v7093_v42 = vor.u32 %v8260_v38, %v7092_v29  ;;  %v8252_v13 = vld [vmem:[#allocation4 + $0xab4] sm:$0xf0] }
 0x196   :  { %3558 = vmatpush.bf16.msra.mxu3 %v7049_v16  ;;  %v2231_v16 = vpop.f32.mrf.mxu3 }
 0x197   :  { %7226 = vmatmul.msk.bf16.vlgmr.msra.gmra.mxu0 %vm532_vm0, %v9196_v19  ;;  %7227 = vmatmul.msk.bf16.vlgmr.msra.gmra.mxu1 %vm532_vm0, %v9196_v19  ;;  %v9210_v56 = vadd.f32 %v2231_v16, %v9141_v60  ;;  %v9212_v60 = vpop.f32.mrf.mxu0  ;;  %v7052_v16 = vld [vmem:[#allocation4 + $0xa90] sm:$0xf] }
 0x198   :  { %3567 = vmatpush.bf16.msrb.mxu0 %v7213_v46  ;;  %3581 = vmatpush.bf16.msrb.mxu1 %v7217_v11  ;;  %v9205_v46 = vadd.f32 %v2217_v44, %v9136_v24  ;;  %v7118_v11 = vld [vmem:[#allocation4 + $0xb30] sm:$0xf0]  ;;  %v7094_v44 = vld [vmem:[#allocation4 + $0xaf8] sm:$0xf0] }
 0x199   :  { %3595 = vmatpush.bf16.msrb.mxu2 %v7221_v17  ;;  %v8272_v17 = vld [vmem:[#allocation4 + $0xb5c] sm:$0xf]  ;;  %7229 = vmatmul.msk.bf16.vlgmr.msra.gmra.mxu3 %vm532_vm0, %v9196_v19  ;;  %v7121_v63 = vor.u32 %v8263_v27, %v7118_v11 }
 0x19a   :  { %3609 = vmatpush.bf16.msrb.mxu3 %v7225_v23  ;;  %7228 = vmatmul.msk.bf16.vlgmr.msra.gmra.mxu2 %vm532_vm0, %v9196_v19  ;;  %v7161_v24 = vor.u32 %v8272_v17, %v7158_v62  ;;  %v7126_v23 = vld [vmem:[#allocation4 + $0xb38] sm:$0xf0]  ;;  %v8251_v17 = vld [vmem:[#allocation4 + $0xaac] sm:$0xf0]  ;;  %v8247_v62 = vld [vmem:[#allocation4 + $0xa94] sm:$0xf] }
 0x19b   :  { %v7062_v27 = vld [vmem:[#allocation4 + $0xab8] sm:$0xf0]  ;;  %v7053_v11 = vor.u32 %v8251_v17, %v7052_v16 }
 0x19c   :  { %3568 = vmatpush.bf16.msrb.mxu0 %v7181_v59  ;;  %3582 = vmatpush.bf16.msrb.mxu1 %v7185_v20  ;;  %v8255_v59 = vld [vmem:[#allocation4 + $0xad4] sm:$0xf]  ;;  %v9214_v20 = vpop.f32.mrf.mxu1 }
 0x19d   :  { %3596 = vmatpush.bf16.msrb.mxu2 %v7189_v51  ;;  %v7129_v51 = vor.u32 %v8264_v54, %v7126_v23  ;;  %v7089_v47 = vor.u32 %v8255_v59, %v7086_v32 }
 0x19e   :  { %3610 = vmatpush.bf16.msrb.mxu3 %v7193_v3  ;;  %v8256_v3 = vld [vmem:[#allocation4 + $0xadc] sm:$0xf]  ;;  %v9218_v15 = vpop.f32.mrf.mxu3 }
 0x19f   :  { %v2245_v23 = vpop.f32.mrf.mxu0 }
 0x1a0   :  { %3569 = vmatpush.bf16.msrb.mxu0 %v7149_v37  ;;  %3583 = vmatpush.bf16.msrb.mxu1 %v7153_v61  ;;  %v7097_v37 = vor.u32 %v8256_v3, %v7094_v44  ;;  %v7054_v61 = vld [vmem:[#allocation4 + $0xab0] sm:$0xf0] }
 0x1a1   :  { %3597 = vmatpush.bf16.msrb.mxu2 %v7157_v5  ;;  %v7060_v5 = vld [vmem:[#allocation4 + $0xa98] sm:$0xf]  ;;  %v7057_v21 = vor.u32 %v8247_v62, %v7054_v61 }
 0x1a2   :  { %3611 = vmatpush.bf16.msrb.mxu3 %v7161_v24  ;;  %v9216_v24 = vpop.f32.mrf.mxu2  ;;  %v7061_v54 = vor.u32 %v8252_v13, %v7060_v5 }
 0x1a4   :  { %3570 = vmatpush.bf16.msrb.mxu0 %v7117_v25  ;;  %3584 = vmatpush.bf16.msrb.mxu1 %v7121_v63  ;;  %v7065_v25 = vor.u32 %v8248_v7, %v7062_v27  ;;  %v2296_v63 = vadd.f32 %v2245_v23, %v9152_v12 }
 0x1a5   :  { %3598 = vmatpush.bf16.msrb.mxu2 %v7125_v26  ;;  %v2259_v26 = vpop.f32.mrf.mxu1 }
 0x1a6   :  { %3612 = vmatpush.bf16.msrb.mxu3 %v7129_v51  ;;  %v2297_v53 = vadd.f32 %v2259_v26, %v9155_v18  ;;  %v2287_v18 = vpop.f32.mrf.mxu3 }
 0x1a7   :  { %v2299_v59 = vadd.f32 %v2287_v18, %v9172_v9  ;;  %v9232_v51 = vpop.f32.mrf.mxu0  ;;  %v3725_v18 = vld [vmem:[#allocation8 + $0x158] sm:$0x33] }
 0x1a8   :  { %3571 = vmatpush.bf16.msrb.mxu0 %v7085_v30  ;;  %3585 = vmatpush.bf16.msrb.mxu1 %v7089_v47  ;;  %9580 = vst [vmem:[#allocation36_spill] sm:$0xff] %v9232_v51 }
 0x1a9   :  { %3599 = vmatpush.bf16.msrb.mxu2 %v7093_v42 }
 0x1aa   :  { %3613 = vmatpush.bf16.msrb.mxu3 %v7097_v37  ;;  %v2273_v36 = vpop.f32.mrf.mxu2 }
 0x1ab   :  { %v2298_v12 = vadd.f32 %v2273_v36, %v9167_v0 }
 0x1ac   :  { %3572 = vmatpush.bf16.msrb.mxu0 %v7053_v11  ;;  %3586 = vmatpush.bf16.msrb.mxu1 %v7057_v21 }
 0x1ad   :  { %3600 = vmatpush.bf16.msrb.mxu2 %v7061_v54  ;;  %v9234_v32 = vpop.f32.mrf.mxu1 }
 0x1ae   :  { %3614 = vmatpush.bf16.msrb.mxu3 %v7065_v25  ;;  %9581 = vst [vmem:[#allocation37_spill] sm:$0xff] %v9234_v32  ;;  %v9238_v38 = vpop.f32.mrf.mxu3 }
 0x1af   :  { %7230 = vmatmul.msk.bf16.vlgmr.msrb.gmra.mxu0 %vm532_vm0, %v9196_v19  ;;  %7231 = vmatmul.msk.bf16.vlgmr.msrb.gmra.mxu1 %vm532_vm0, %v9196_v19  ;;  %9583 = vst [vmem:[#allocation39_spill] sm:$0xff] %v9238_v38 }
 0x1b0   :  { %7232 = vmatmul.msk.bf16.vlgmr.msrb.gmra.mxu2 %vm532_vm0, %v9196_v19 }
 0x1b1   :  { %7233 = vmatmul.msk.bf16.vlgmr.msrb.gmra.mxu3 %vm532_vm0, %v9196_v19 }
 0x1b2   :  { %v9236_v29 = vpop.f32.mrf.mxu2 }
 0x1b3   :  { %9582 = vst [vmem:[#allocation38_spill] sm:$0xff] %v9236_v29 }
 0x1b4   :  { %v9240_v3 = vpop.f32.mrf.mxu0 }
 0x1b5   :  { %v9242_v44 = vpop.f32.mrf.mxu1 }
 0x1bc   :  { %v9246_v19 = vpop.f32.mrf.mxu3  ;;  %v9248_v0 = vpop.f32.mrf.mxu0 }
 0x1bd   :  { %v9244_v30 = vpop.f32.mrf.mxu2  ;;  %v9250_v47 = vpop.f32.mrf.mxu1 }
 0x1c4   :  { %v9254_v42 = vpop.f32.mrf.mxu3 }
 0x1c5   :  { %v9252_v9 = vpop.f32.mrf.mxu2 }
 0x1cc   :  { %v2688_v16 = vpop.f32.mrf.mxu0  ;;  %v2702_v62 = vpop.f32.mrf.mxu1 }
 0x1cd   :  { %v9256_v17 = vadd.f32 %v2688_v16, %v2296_v63  ;;  %v9258_v37 = vadd.f32 %v2702_v62, %v2297_v53  ;;  %v3795_v62 = vunpack.c.l.b16 %v3725_v18 }
 0x1cf   :  { %9584 = vst [vmem:[#allocation40_spill] sm:$0xff] %v9256_v17  ;;  %v8332_v17 = vld [vmem:[#allocation8 + $0x13c] sm:$0xf] }
 0x1d0   :  { %9585 = vst [vmem:[#allocation41_spill] sm:$0xff] %v9258_v37  ;;  %v7306_v37 = vld [vmem:[#allocation8 + $0x140] sm:$0xf0] }
 0x1d4   :  { %v2730_v13 = vpop.f32.mrf.mxu3  ;;  %v9264_v27 = vpop.f32.mrf.mxu0 }
 0x1d5   :  { %v2716_v61 = vpop.f32.mrf.mxu2  ;;  %v9262_v7 = vadd.f32 %v2730_v13, %v2299_v59  ;;  %9588 = vst [vmem:[#allocation44_spill] sm:$0xff] %v9264_v27  ;;  %v9266_v11 = vpop.f32.mrf.mxu1  ;;  %v3796_v13 = vunpack.c.h.b16 %v3725_v18  ;;  %v3819_v27 = vpack.c.b16 %v3795_v62, %v3795_v62  ;;  %v8331_v62 = vld [vmem:[#allocation8 + $0x134] sm:$0xf] }
 0x1d6   :  { %v9260_v5 = vadd.f32 %v2716_v61, %v2298_v12  ;;  %9589 = vst [vmem:[#allocation45_spill] sm:$0xff] %v9266_v11  ;;  %v3724_v12 = vld [vmem:[#allocation8 + $0x150] sm:$0x33] }
 0x1d7   :  { %9587 = vst [vmem:[#allocation43_spill] sm:$0xff] %v9262_v7  ;;  %v3793_v59 = vunpack.c.l.b16 %v3724_v12  ;;  %v3794_v16 = vunpack.c.h.b16 %v3724_v12  ;;  %v3820_v38 = vpack.c.b16 %v3796_v13, %v3796_v13  ;;  %v3853_v51 = vsel %vm3845_vm2, %v3819_v27, 0  ;;  %v7314_v27 = vld [vmem:[#allocation8 + $0x148] sm:$0xf0] }
 0x1d8   :  { %9586 = vst [vmem:[#allocation42_spill] sm:$0xff] %v9260_v5  ;;  %3888 = vmatpush.bf16.msra.mxu2 %v3853_v51  ;;  %v7309_v5 = vor.u32 %v8331_v62, %v7306_v37  ;;  %v9569_v51 = vmov 0  }
 0x1d9   :  { %v3817_v11 = vpack.c.b16 %v3793_v59, %v3793_v59  ;;  %v3856_v18 = vsel %vm3845_vm2, %v3820_v38, 0  ;;  %v7304_v59 = vld [vmem:[#allocation8 + $0x130] sm:$0xf]  ;;  %3656 = vst.msk [vmem:[#allocation2 + $0x8] sm:$0xf] %vm3653_vm3, %v9569_v51 }
 0x1da   :  { %3902 = vmatpush.bf16.msra.mxu3 %v3856_v18  ;;  %v7288_v38 = vld [vmem:[#allocation8 + $0x110] sm:$0xf]  ;;  %v8329_v18 = vld [vmem:[#allocation8 + $0x11c] sm:$0xf0]  ;;  %3676 = vst.msk [vmem:[#allocation2 + $0x14] sm:$0xf] %vm3653_vm3, %v9569_v51  ;;  %v908_v51 = vadd.f32 %v9005_v45, %v8940_v52  ;;  %v950_v45 = vadd.f32 %v9011_v40, %v8946_v22 }
 0x1db   :  { %v3847_v32 = vsel %vm3845_vm2, %v3817_v11, 0  ;;  %v7312_v11 = vld [vmem:[#allocation8 + $0x138] sm:$0xf]  ;;  %v7289_v37 = vor.u32 %v8329_v18, %v7288_v38  ;;  %v7274_v18 = vld [vmem:[#allocation8 + $0x100] sm:$0xf0] }
 0x1dc   :  { %v9270_v54 = vpop.f32.mrf.mxu3  ;;  %3860 = vmatpush.bf16.msra.mxu0 %v3847_v32  ;;  %v7282_v52 = vld [vmem:[#allocation8 + $0x108] sm:$0xf0]  ;;  %v7258_v40 = vld [vmem:[#allocation8 + $0xe0] sm:$0xf0] }
 0x1dd   :  { %v9268_v21 = vpop.f32.mrf.mxu2  ;;  %9591 = vst [vmem:[#allocation47_spill] sm:$0xff] %v9270_v54 }
 0x1de   :  { %9590 = vst [vmem:[#allocation46_spill] sm:$0xff] %v9268_v21  ;;  %v3818_v21 = vpack.c.b16 %v3794_v16, %v3794_v16  ;;  %v8333_v16 = vld [vmem:[#allocation8 + $0x13c] sm:$0xf0] }
 0x1df   :  { %v7305_v13 = vor.u32 %v8333_v16, %v7304_v59  ;;  %v8327_v59 = vld [vmem:[#allocation8 + $0x114] sm:$0xf]  ;;  %v7290_v16 = vld [vmem:[#allocation8 + $0x120] sm:$0xf0] }
 0x1e0   :  { %v3850_v29 = vsel %vm3845_vm2, %v3818_v21, 0  ;;  %v8334_v21 = vld [vmem:[#allocation8 + $0x144] sm:$0xf0]  ;;  %v7293_v62 = vor.u32 %v8327_v59, %v7290_v16  ;;  %v7280_v59 = vld [vmem:[#allocation8 + $0xf8] sm:$0xf] }
 0x1e1   :  { %3874 = vmatpush.bf16.msra.mxu1 %v3850_v29  ;;  %3861 = vmatpush.bf16.msra.mxu0 %v7305_v13  ;;  %v7313_v32 = vor.u32 %v8334_v21, %v7312_v11  ;;  %v7317_v29 = vor.u32 %v8332_v17, %v7314_v27  ;;  %v7296_v13 = vld [vmem:[#allocation8 + $0x118] sm:$0xf]  ;;  %v8330_v17 = vld [vmem:[#allocation8 + $0x124] sm:$0xf0]  ;;  %v8328_v11 = vld [vmem:[#allocation8 + $0x11c] sm:$0xf] }
 0x1e2   :  { %v7297_v21 = vor.u32 %v8330_v17, %v7296_v13  ;;  %v7298_v27 = vld [vmem:[#allocation8 + $0x128] sm:$0xf0]  ;;  %v8326_v16 = vld [vmem:[#allocation8 + $0x104] sm:$0xf0] }
 0x1e3   :  { %3889 = vmatpush.bf16.msra.mxu2 %v7313_v32  ;;  %3903 = vmatpush.bf16.msra.mxu3 %v7317_v29  ;;  %v7281_v17 = vor.u32 %v8326_v16, %v7280_v59  ;;  %v8320_v59 = vld [vmem:[#allocation8 + $0xdc] sm:$0xf]  ;;  %v3699_v16 = vld [vmem:[#allocation8 + $0xa0] sm:$0x33] }
 0x1e4   :  { %v9272_v23 = vpop.f32.mrf.mxu0  ;;  %v9274_v25 = vpop.f32.mrf.mxu1 }
 0x1e5   :  { %3875 = vmatpush.bf16.msra.mxu1 %v7309_v5  ;;  %3862 = vmatpush.bf16.msra.mxu0 %v7289_v37  ;;  %v7272_v5 = vld [vmem:[#allocation8 + $0xf0] sm:$0xf]  ;;  %v922_v37 = vadd.f32 %v9007_v2, %v8942_v58  ;;  %v8321_v2 = vld [vmem:[#allocation8 + $0xdc] sm:$0xf0] }
 0x1e6   :  { %v7256_v58 = vld [vmem:[#allocation8 + $0xd0] sm:$0xf] }
 0x1e7   :  { %3890 = vmatpush.bf16.msra.mxu2 %v7297_v21  ;;  %v1428_v21 = vadd.f32 %v9074_v41, %v908_v51  ;;  %v7257_v22 = vor.u32 %v8321_v2, %v7256_v58  ;;  %v7264_v41 = vld [vmem:[#allocation8 + $0xd8] sm:$0xf]  ;;  %v8322_v51 = vld [vmem:[#allocation8 + $0xe4] sm:$0xf0]  ;;  %v8315_v2 = vld [vmem:[#allocation8 + $0xb4] sm:$0xf] }
 0x1e9   :  { %3876 = vmatpush.bf16.msra.mxu1 %v7293_v62  ;;  %v936_v62 = vadd.f32 %v9009_v33, %v8944_v35  ;;  %v8319_v35 = vld [vmem:[#allocation8 + $0xd4] sm:$0xf]  ;;  %v1431_v33 = vadd.f32 %v9080_v50, %v950_v45  ;;  %v7265_v50 = vor.u32 %v8322_v51, %v7264_v41  ;;  %v8317_v45 = vld [vmem:[#allocation8 + $0xbc] sm:$0xf0]  ;;  %v7250_v41 = vld [vmem:[#allocation8 + $0xc8] sm:$0xf0] }
 0x1eb   :  { %3891 = vmatpush.bf16.msra.mxu2 %v7281_v17  ;;  %v3982_v17 = vunpack.c.h.b16 %v3699_v16 }
 0x1ec   :  { %v9278_v26 = vpop.f32.mrf.mxu3  ;;  %v9280_v53 = vpop.f32.mrf.mxu0 }
 0x1ed   :  { %v9276_v63 = vpop.f32.mrf.mxu2  ;;  %v9282_v36 = vpop.f32.mrf.mxu1 }
 0x1ef   :  { %3892 = vmatpush.bf16.msra.mxu2 %v7265_v50 }
 0x1f4   :  { %v9286_v54 = vpop.f32.mrf.mxu3 }
 0x1f5   :  { %v9284_v61 = vpop.f32.mrf.mxu2 }
 0x1fc   :  { %v9291_v7 = vpop.f32.mrf.mxu0  ;;  %v9293_v12 = vpop.f32.mrf.mxu1 }
 0x1fd   :  { %9592 = vst [vmem:[#allocation48_spill] sm:$0xff] %v9291_v7  ;;  %v8323_v7 = vld [vmem:[#allocation8 + $0xf4] sm:$0xf] }
 0x1fe   :  { %9593 = vst [vmem:[#allocation49_spill] sm:$0xff] %v9293_v12  ;;  %v7277_v13 = vor.u32 %v8323_v7, %v7274_v18  ;;  %v1856_v7 = vadd.f32 %v9143_v39, %v1428_v21  ;;  %v7261_v18 = vor.u32 %v8319_v35, %v7258_v40  ;;  %v7266_v39 = vld [vmem:[#allocation8 + $0xe8] sm:$0xf0]  ;;  %v7242_v35 = vld [vmem:[#allocation8 + $0xc0] sm:$0xf0] }
 0x1ff   :  { %v8316_v40 = vld [vmem:[#allocation8 + $0xbc] sm:$0xf] }
 0x200   :  { %3877 = vmatpush.bf16.msra.mxu1 %v7277_v13  ;;  %v3981_v13 = vunpack.c.l.b16 %v3699_v16 }
 0x204   :  { %v9298_v12 = vpop.f32.mrf.mxu3  ;;  %v9306_v32 = vpop.f32.mrf.mxu0  ;;  %3878 = vmatpush.bf16.msra.mxu1 %v7261_v18 }
 0x205   :  { %v9296_v48 = vpop.f32.mrf.mxu2  ;;  %9595 = vst [vmem:[#allocation51_spill] sm:$0xff] %v9298_v12  ;;  %v7301_v12 = vor.u32 %v8328_v11, %v7298_v27  ;;  %v9308_v29 = vpop.f32.mrf.mxu1  ;;  %v8324_v11 = vld [vmem:[#allocation8 + $0xfc] sm:$0xf]  ;;  %v1429_v27 = vadd.f32 %v9076_v31, %v922_v37  ;;  %v9332_v37 = vadd.f32 %v9149_v28, %v1431_v33  ;;  %v2737_v28 = vadd.f32 %v9244_v30, %v9205_v46  ;;  %v7248_v33 = vld [vmem:[#allocation8 + $0xb8] sm:$0xf] }
 0x206   :  { %9594 = vst [vmem:[#allocation50_spill] sm:$0xff] %v9296_v48  ;;  %v8325_v48 = vld [vmem:[#allocation8 + $0xfc] sm:$0xf0]  ;;  %v7253_v30 = vor.u32 %v8316_v40, %v7250_v41  ;;  %v8308_v40 = vld [vmem:[#allocation8 + $0x6c] sm:$0xf0] }
 0x207   :  { %v7273_v38 = vor.u32 %v8325_v48, %v7272_v5  ;;  %3904 = vmatpush.bf16.msra.mxu3 %v7301_v12  ;;  %v7285_v48 = vor.u32 %v8324_v11, %v7282_v52  ;;  %v1430_v5 = vadd.f32 %v9078_v57, %v936_v62  ;;  %v7269_v62 = vor.u32 %v8320_v59, %v7266_v39  ;;  %v7240_v52 = vld [vmem:[#allocation8 + $0xb0] sm:$0xf]  ;;  %v8306_v41 = vld [vmem:[#allocation8 + $0x64] sm:$0xf] }
 0x208   :  { %v2736_v11 = vadd.f32 %v9242_v44, %v9193_v4  ;;  %v7241_v58 = vor.u32 %v8317_v45, %v7240_v52  ;;  %v2738_v4 = vadd.f32 %v9246_v19, %v9210_v56  ;;  %v8318_v44 = vld [vmem:[#allocation8 + $0xc4] sm:$0xf0]  ;;  %v3180_v16 = vadd.f32 %v9276_v63, %v2737_v28  ;;  %v7392_v52 = vld [vmem:[#allocation8 + $0x80] sm:$0xf]  ;;  %v8312_v45 = vld [vmem:[#allocation8 + $0x8c] sm:$0xf0] }
 0x209   :  { %3863 = vmatpush.bf16.msra.mxu0 %v7273_v38  ;;  %v9324_v38 = vadd.f32 %v9145_v6, %v1429_v27  ;;  %v9327_v31 = vadd.f32 %v9147_v49, %v1430_v5  ;;  %v3700_v6 = vld [vmem:[#allocation8 + $0xa8] sm:$0x33]  ;;  %v2735_v49 = vadd.f32 %v9240_v3, %v9190_v14  ;;  %v4006_v14 = vpack.c.b16 %v3982_v17, %v3982_v17  ;;  %v7394_v28 = vld [vmem:[#allocation8 + $0x90] sm:$0xf0] }
 0x20a   :  { %v3983_v21 = vunpack.c.l.b16 %v3700_v6  ;;  %v7245_v3 = vor.u32 %v8315_v2, %v7242_v35  ;;  %v7249_v46 = vor.u32 %v8318_v44, %v7248_v33  ;;  %v3181_v17 = vadd.f32 %v9278_v26, %v2738_v4  ;;  %v8313_v2 = vld [vmem:[#allocation8 + $0x94] sm:$0xf0]  ;;  %v7402_v35 = vld [vmem:[#allocation8 + $0x98] sm:$0xf0]  ;;  %v7376_v44 = vld [vmem:[#allocation8 + $0x60] sm:$0xf] }
 0x20b   :  { %3905 = vmatpush.bf16.msra.mxu3 %v7285_v48  ;;  %v3984_v48 = vunpack.c.h.b16 %v3700_v6  ;;  %v4036_v59 = vsel %vm3845_vm2, %v4006_v14, 0  ;;  %v3178_v39 = vadd.f32 %v9272_v23, %v2735_v49  ;;  %v8310_v23 = vld [vmem:[#allocation8 + $0x84] sm:$0xf]  ;;  %v2301_v33 = vadd.f32 %v9214_v20, %v9324_v38  ;;  %v9355_v14 = vld [vmem:[#allocation6] ss:$0 sm:$0xff] }
 0x20c   :  { %v9329_v57 = vpop.f32.mrf.mxu3  ;;  %v4007_v51 = vpack.c.b16 %v3983_v21, %v3983_v21  ;;  %3879 = vmatpush.bf16.msra.mxu1 %v7245_v3  ;;  %3893 = vmatpush.bf16.msra.mxu2 %v7249_v46  ;;  %v8309_v46 = vld [vmem:[#allocation8 + $0x74] sm:$0xf0] }
 0x20d   :  { %v9321_v12 = vpop.f32.mrf.mxu2  ;;  %3864 = vmatpush.bf16.msra.mxu0 %v7257_v22  ;;  %v4005_v22 = vpack.c.b16 %v3981_v13, %v3981_v13  ;;  %v4008_v18 = vpack.c.b16 %v3984_v48, %v3984_v48  ;;  %v3179_v13 = vadd.f32 %v9274_v25, %v2736_v11  ;;  %v7393_v48 = vor.u32 %v8312_v45, %v7392_v52  ;;  %v8311_v11 = vld [vmem:[#allocation8 + $0x8c] sm:$0xf]  ;;  %v8302_v52 = vld [vmem:[#allocation8 + $0x44] sm:$0xf] }
 0x20e   :  { %v4039_v56 = vsel %vm3845_vm2, %v4007_v51, 0  ;;  %v7397_v25 = vor.u32 %v8310_v23, %v7394_v28  ;;  %v7405_v4 = vor.u32 %v8311_v11, %v7402_v35  ;;  %v2744_v20 = vadd.f32 %v9250_v47, %v2301_v33  ;;  %v8300_v11 = vld [vmem:[#allocation8 + $0x2c] sm:$0xf0]  ;;  %v8298_v35 = vld [vmem:[#allocation8 + $0x24] sm:$0xf] }
 0x20f   :  { %3906 = vmatpush.bf16.msra.mxu3 %v7269_v62  ;;  %v4033_v50 = vsel %vm3845_vm2, %v4005_v22, 0  ;;  %v4042_v19 = vsel %vm3845_vm2, %v4008_v18, 0  ;;  %v2300_v62 = vadd.f32 %v9212_v60, %v1856_v7  ;;  %v7384_v18 = vld [vmem:[#allocation8 + $0x68] sm:$0xf] }
 0x210   :  { %4060 = vmatpush.bf16.msrb.mxu1 %v4036_v59  ;;  %4074 = vmatpush.bf16.msrb.mxu2 %v4039_v56  ;;  %v7386_v56 = vld [vmem:[#allocation8 + $0x78] sm:$0xf0]  ;;  %v3187_v47 = vadd.f32 %v9282_v36, %v2744_v20  ;;  %v7362_v36 = vld [vmem:[#allocation8 + $0x50] sm:$0xf0]  ;;  %v7328_v20 = vld [vmem:[#allocation8] sm:$0xf] }
 0x211   :  { %3865 = vmatpush.bf16.msra.mxu0 %v7241_v58  ;;  %v7400_v58 = vld [vmem:[#allocation8 + $0x88] sm:$0xf]  ;;  %v2743_v51 = vadd.f32 %v9248_v0, %v2300_v62 }
 0x212   :  { %v7401_v26 = vor.u32 %v8313_v2, %v7400_v58  ;;  %v8303_v2 = vld [vmem:[#allocation8 + $0x4c] sm:$0xf] }
 0x213   :  { %3907 = vmatpush.bf16.msra.mxu3 %v7253_v30  ;;  %v3186_v0 = vadd.f32 %v9280_v53, %v2743_v51  ;;  %v7354_v51 = vld [vmem:[#allocation8 + $0x38] sm:$0xf0] }
 0x214   :  { %v3518_v27 = vpop.f32.mrf.mxu0  ;;  %v3532_v5 = vpop.f32.mrf.mxu1  ;;  %4061 = vmatpush.bf16.msrb.mxu1 %v7397_v25  ;;  %4075 = vmatpush.bf16.msrb.mxu2 %v7401_v26  ;;  %v7344_v26 = vld [vmem:[#allocation8 + $0x20] sm:$0xf] }
 0x215   :  { %4046 = vmatpush.bf16.msrb.mxu0 %v4033_v50  ;;  %v3621_v49 = vadd.f32 %v3518_v27, %v3178_v39  ;;  %v3622_v60 = vadd.f32 %v3532_v5, %v3179_v13  ;;  %v2302_v27 = vadd.f32 %v9216_v24, %v9327_v31  ;;  %v2303_v5 = vadd.f32 %v9218_v15, %v9332_v37  ;;  %v7378_v31 = vld [vmem:[#allocation8 + $0x70] sm:$0xf0] }
 0x216   :  { %v7377_v24 = vor.u32 %v8308_v40, %v7376_v44  ;;  %v7381_v59 = vor.u32 %v8306_v41, %v7378_v31  ;;  %v7385_v39 = vor.u32 %v8309_v46, %v7384_v18  ;;  %v8299_v41 = vld [vmem:[#allocation8 + $0x2c] sm:$0xf]  ;;  %v8296_v31 = vld [vmem:[#allocation8 + $0xc] sm:$0xf0]  ;;  %v8294_v18 = vld [vmem:[#allocation8 + $0x4] sm:$0xf] }
 0x217   :  { %4088 = vmatpush.bf16.msrb.mxu3 %v4042_v19  ;;  %v2745_v38 = vadd.f32 %v9252_v9, %v2302_v27  ;;  %v2746_v30 = vadd.f32 %v9254_v42, %v2303_v5  ;;  %v7352_v5 = vld [vmem:[#allocation8 + $0x28] sm:$0xf]  ;;  %v7329_v46 = vor.u32 %v8296_v31, %v7328_v20 }
 0x218   :  { %4062 = vmatpush.bf16.msrb.mxu1 %v7381_v59  ;;  %4076 = vmatpush.bf16.msrb.mxu2 %v7385_v39  ;;  %v8295_v39 = vld [vmem:[#allocation8 + $0xc] sm:$0xf] }
 0x219   :  { %4047 = vmatpush.bf16.msrb.mxu0 %v7393_v48  ;;  %v3188_v9 = vadd.f32 %v9284_v61, %v2745_v38  ;;  %v3189_v62 = vadd.f32 %v9286_v54, %v2746_v30  ;;  %v8305_v61 = vld [vmem:[#allocation8 + $0x54] sm:$0xf0]  ;;  %v7365_v54 = vor.u32 %v8302_v52, %v7362_v36  ;;  %v7330_v30 = vld [vmem:[#allocation8 + $0x10] sm:$0xf0]  ;;  %v9598_v52 = vld [vmem:[#allocation28_spill] sm:$0xff] }
 0x21a   :  { %v7333_v59 = vor.u32 %v8294_v18, %v7330_v30  ;;  %v9604_v36 = vld [vmem:[#allocation50_spill] sm:$0xff]  ;;  %v9616_v18 = vld [vmem:[#allocation37_spill] sm:$0xff]  ;;  %v9617_v30 = vld [vmem:[#allocation39_spill] sm:$0xff] }
 0x21b   :  { %4089 = vmatpush.bf16.msrb.mxu3 %v7405_v4  ;;  %v7346_v4 = vld [vmem:[#allocation8 + $0x30] sm:$0xf0] }
 0x21c   :  { %v3560_v21 = vpop.f32.mrf.mxu3  ;;  %v3520_v15 = vpop.f32.mrf.mxu0  ;;  %4063 = vmatpush.bf16.msrb.mxu1 %v7365_v54  ;;  %v7349_v44 = vor.u32 %v8298_v35, %v7346_v4  ;;  %v9607_v54 = vld [vmem:[#allocation41_spill] sm:$0xff] }
 0x21d   :  { %v3546_v6 = vpop.f32.mrf.mxu2  ;;  %v3624_v7 = vadd.f32 %v3560_v21, %v3181_v17  ;;  %v3534_v37 = vpop.f32.mrf.mxu1  ;;  %4048 = vmatpush.bf16.msrb.mxu0 %v7377_v24  ;;  %v7360_v17 = vld [vmem:[#allocation8 + $0x40] sm:$0xf]  ;;  %v3629_v45 = vadd.f32 %v3520_v15, %v3186_v0  ;;  %v7368_v21 = vld [vmem:[#allocation8 + $0x48] sm:$0xf]  ;;  %v7357_v24 = vor.u32 %v8299_v41, %v7354_v51  ;;  %v8297_v15 = vld [vmem:[#allocation8 + $0x14] sm:$0xf0]  ;;  %v978_v0 = vadd.f32 %v9044_v1, %v8974_v10 }
 0x21e   :  { %v3623_v63 = vadd.f32 %v3546_v6, %v3180_v16  ;;  %v8307_v16 = vld [vmem:[#allocation8 + $0x6c] sm:$0xf]  ;;  %v8304_v6 = vld [vmem:[#allocation8 + $0x4c] sm:$0xf0]  ;;  %v3630_v23 = vadd.f32 %v3534_v37, %v3187_v47  ;;  %v7369_v58 = vor.u32 %v8305_v61, %v7368_v21  ;;  %v9605_v21 = vld [vmem:[#allocation31_spill] sm:$0xff] }
 0x21f   :  { %v3638_v3 = vmax.f32 %v3622_v60, %v3624_v7  ;;  %v7389_v19 = vor.u32 %v8307_v16, %v7386_v56  ;;  %v7361_v53 = vor.u32 %v8304_v6, %v7360_v17  ;;  %v7370_v60 = vld [vmem:[#allocation8 + $0x58] sm:$0xf0]  ;;  %v964_v56 = vadd.f32 %v9041_v55, %v8972_v8  ;;  %v9597_v17 = vld [vmem:[#allocation27_spill] sm:$0xff]  ;;  %v9601_v1 = vld [vmem:[#allocation40_spill] sm:$0xff] }
 0x220   :  { %v3637_v22 = vmax.f32 %v3621_v49, %v3623_v63  ;;  %v7373_v25 = vor.u32 %v8303_v2, %v7370_v60  ;;  %4077 = vmatpush.bf16.msrb.mxu2 %v7369_v58  ;;  %4064 = vmatpush.bf16.msrb.mxu1 %v7349_v44  ;;  %v7338_v16 = vld [vmem:[#allocation8 + $0x18] sm:$0xf0]  ;;  %v9608_v58 = vld [vmem:[#allocation49_spill] sm:$0xff]  ;;  %v9609_v60 = vld [vmem:[#allocation43_spill] sm:$0xff] }
 0x221   :  { %4090 = vmatpush.bf16.msrb.mxu3 %v7389_v19  ;;  %4049 = vmatpush.bf16.msrb.mxu0 %v7361_v53  ;;  %v992_v19 = vadd.f32 %v9047_v34, %v8978_v43  ;;  %v9600_v55 = vld [vmem:[#allocation30_spill] sm:$0xff]  ;;  %v3183_v2 = vadd.f32 %v9608_v58, %v9607_v54  ;;  %v9612_v4 = vld [vmem:[#allocation33_spill] sm:$0xff]  ;;  %v9614_v51 = vld [vmem:[#allocation36_spill] sm:$0xff] }
 0x222   :  { %v3641_v50 = vmax.f32 %v3637_v22, %v3638_v3  ;;  %v7345_v22 = vor.u32 %v8300_v11, %v7344_v26  ;;  %v8301_v3 = vld [vmem:[#allocation8 + $0x34] sm:$0xf0] }
 0x223   :  { %v7353_v40 = vor.u32 %v8301_v3, %v7352_v5  ;;  %v1434_v10 = vadd.f32 %v9600_v55, %v992_v19  ;;  %v9603_v53 = vld [vmem:[#allocation42_spill] sm:$0xff]  ;;  %v9613_v3 = vld [vmem:[#allocation35_spill] sm:$0xff] }
 0x224   :  { %v3647_v42 = vadd.f32 %v9355_v14, %v3641_v50  ;;  %v3562_v63 = vpop.f32.mrf.mxu3  ;;  %v7336_v50 = vld [vmem:[#allocation8 + $0x8] sm:$0xf]  ;;  %v3184_v43 = vadd.f32 %v9604_v36, %v9603_v53  ;;  %4065 = vmatpush.bf16.msrb.mxu1 %v7333_v59  ;;  %v9611_v11 = vld [vmem:[#allocation34_spill] sm:$0xff] }
 0x225   :  { %v3548_v13 = vpop.f32.mrf.mxu2  ;;  %v3632_v28 = vadd.f32 %v3562_v63, %v3189_v62  ;;  %4091 = vmatpush.bf16.msrb.mxu3 %v7373_v25  ;;  %4050 = vmatpush.bf16.msrb.mxu0 %v7345_v22  ;;  %v1862_v35 = vadd.f32 %v9611_v11, %v1434_v10  ;;  %v9618_v59 = vld [vmem:[#allocation44_spill] sm:$0xff] }
 0x226   :  { %v3631_v49 = vadd.f32 %v3548_v13, %v3188_v9  ;;  %v3649_v48 = vmax.f32 %v3647_v42, 0.0  ;;  %4078 = vmatpush.bf16.msrb.mxu2 %v7353_v40  ;;  %v7337_v9 = vor.u32 %v8297_v15, %v7336_v50  ;;  %v9596_v13 = vld [vmem:[#allocation26_spill] sm:$0xff] }
 0x227   :  { %v3640_v27 = vmax.f32 %v3630_v23, %v3632_v28  ;;  %v1006_v6 = vadd.f32 %v9597_v17, %v9596_v13  ;;  %v9599_v23 = vld [vmem:[#allocation29_spill] sm:$0xff] }
 0x228   :  { %v3639_v7 = vmax.f32 %v3629_v45, %v3631_v49  ;;  %v3651_v33 = vpack.c.bf16 %v3649_v48, %v3649_v48  ;;  %v1432_v45 = vadd.f32 %v9598_v52, %v964_v56  ;;  %v1433_v8 = vadd.f32 %v9599_v23, %v978_v0  ;;  %v9602_v49 = vld [vmem:[#allocation48_spill] sm:$0xff]  ;;  %v9620_v0 = vld [vmem:[#allocation45_spill] sm:$0xff] }
 0x229   :  { %4092 = vmatpush.bf16.msrb.mxu3 %v7357_v24  ;;  %4051 = vmatpush.bf16.msrb.mxu0 %v7329_v46  ;;  %v3182_v63 = vadd.f32 %v9602_v49, %v9601_v1  ;;  %v1435_v61 = vadd.f32 %v9605_v21, %v1006_v6  ;;  %v9606_v48 = vld [vmem:[#allocation32_spill] sm:$0xff] }
 0x22a   :  { %3654 = vst.msk [vmem:[#allocation2] sm:$0xf] %vm3653_vm3, %v3651_v33  ;;  %v3642_v38 = vmax.f32 %v3639_v7, %v3640_v27  ;;  %v1860_v28 = vadd.f32 %v9606_v48, %v1432_v45  ;;  %v9610_v7 = vld [vmem:[#allocation51_spill] sm:$0xff]  ;;  %4079 = vmatpush.bf16.msrb.mxu2 %v7337_v9  ;;  %v1861_v5 = vadd.f32 %v9612_v4, %v1433_v8  ;;  %v4125_v21 = vld [vmem:[#allocation8 + $0x208] sm:$0x33] }
 0x22b   :  { %v3185_v25 = vadd.f32 %v9610_v7, %v9609_v60  ;;  %v1863_v44 = vadd.f32 %v9613_v3, %v1435_v61  ;;  %v9621_v9 = vld [vmem:[#allocation47_spill] sm:$0xff]  ;;  %v4211_v54 = vunpack.c.h.b16 %v4125_v21  ;;  %v7484_v3 = vld [vmem:[#allocation8 + $0x1e8] sm:$0xf] }
 0x22c   :  { %v3648_v37 = vadd.f32 %v9355_v14, %v3642_v38  ;;  %v3574_v47 = vpop.f32.mrf.mxu0  ;;  %v3588_v42 = vpop.f32.mrf.mxu1  ;;  %v7341_v14 = vor.u32 %v8295_v39, %v7338_v16  ;;  %v2304_v20 = vadd.f32 %v9614_v51, %v1860_v28  ;;  %v9615_v38 = vld [vmem:[#allocation38_spill] sm:$0xff]  ;;  %v2305_v46 = vadd.f32 %v9616_v18, %v1861_v5  ;;  %v8351_v4 = vld [vmem:[#allocation8 + $0x1e4] sm:$0xf]  ;;  %v7478_v5 = vld [vmem:[#allocation8 + $0x1f0] sm:$0xf0] }
 0x22d   :  { %v3625_v33 = vadd.f32 %v3574_v47, %v3182_v63  ;;  %v3626_v40 = vadd.f32 %v3588_v42, %v3183_v2  ;;  %v2306_v24 = vadd.f32 %v9615_v38, %v1862_v35  ;;  %v2307_v50 = vadd.f32 %v9617_v30, %v1863_v44  ;;  %v9619_v16 = vld [vmem:[#allocation46_spill] sm:$0xff]  ;;  %v7460_v38 = vld [vmem:[#allocation8 + $0x1c0] sm:$0xf]  ;;  %v7462_v30 = vld [vmem:[#allocation8 + $0x1d0] sm:$0xf0] }
 0x22e   :  { %v3650_v62 = vmax.f32 %v3648_v37, 0.0  ;;  %4093 = vmatpush.bf16.msrb.mxu3 %v7341_v14  ;;  %v8481_v37 = vld [vmem:[#allocation6] ss:$0 sm:$0xff]  ;;  %v2747_v39 = vadd.f32 %v9618_v59, %v2304_v20  ;;  %v2748_v47 = vadd.f32 %v9620_v0, %v2305_v46  ;;  %v4210_v28 = vunpack.c.l.b16 %v4125_v21  ;;  %v8354_v44 = vld [vmem:[#allocation8 + $0x1f4] sm:$0xf0] }
 0x22f   :  { %v2749_v56 = vadd.f32 %v9619_v16, %v2306_v24  ;;  %v2750_v19 = vadd.f32 %v9621_v9, %v2307_v50  ;;  %v4235_v7 = vpack.c.b16 %v4211_v54, %v4211_v54  ;;  %v7481_v20 = vor.u32 %v8351_v4, %v7478_v5  ;;  %v8349_v24 = vld [vmem:[#allocation8 + $0x1cc] sm:$0xf0]  ;;  %v8347_v46 = vld [vmem:[#allocation8 + $0x1c4] sm:$0xf]  ;;  %v7468_v50 = vld [vmem:[#allocation8 + $0x1c8] sm:$0xf] }
 0x230   :  { %v3652_v34 = vpack.c.bf16 %v3650_v62, %v3650_v62  ;;  %v3190_v14 = vadd.f32 %v9306_v32, %v2747_v39  ;;  %v3191_v6 = vadd.f32 %v9308_v29, %v2748_v47  ;;  %v4234_v60 = vpack.c.b16 %v4210_v28, %v4210_v28  ;;  %v7470_v59 = vld [vmem:[#allocation8 + $0x1d8] sm:$0xf0]  ;;  %v8345_v0 = vld [vmem:[#allocation8 + $0x1ac] sm:$0xf0]  ;;  %v8343_v47 = vld [vmem:[#allocation8 + $0x1a4] sm:$0xf] }
 0x231   :  { %v3192_v13 = vadd.f32 %v9321_v12, %v2749_v56  ;;  %v3193_v52 = vadd.f32 %v9329_v57, %v2750_v19  ;;  %v7461_v39 = vor.u32 %v8349_v24, %v7460_v38  ;;  %v7465_v16 = vor.u32 %v8347_v46, %v7462_v30  ;;  %v7444_v56 = vld [vmem:[#allocation8 + $0x1a0] sm:$0xf]  ;;  %v7438_v21 = vld [vmem:[#allocation8 + $0x198] sm:$0xf0]  ;;  %v8336_v4 = vld [vmem:[#allocation8 + $0x16c] sm:$0xf] }
 0x232   :  { %3655 = vst.msk [vmem:[#allocation2 + $0x4] sm:$0xf] %vm3653_vm3, %v3652_v34  ;;  %v4124_v34 = vld [vmem:[#allocation8 + $0x200] sm:$0x33]  ;;  %v4266_v11 = vsel %vm3845_vm2, %v4234_v60, 0 }
 0x233   :  { %v3602_v26 = vpop.f32.mrf.mxu2  ;;  %v4208_v57 = vunpack.c.l.b16 %v4124_v34  ;;  %v4209_v48 = vunpack.c.h.b16 %v4124_v34  ;;  %v8340_v34 = vld [vmem:[#allocation8 + $0x18c] sm:$0xf]  ;;  %v7422_v5 = vld [vmem:[#allocation8 + $0x178] sm:$0xf0]  ;;  %v7560_v46 = vld [vmem:[#allocation8 + $0x290] sm:$0xf] }
 0x234   :  { %v3627_v27 = vadd.f32 %v3602_v26, %v3184_v43  ;;  %v3616_v22 = vpop.f32.mrf.mxu3  ;;  %v3576_v42 = vpop.f32.mrf.mxu0  ;;  %v7425_v24 = vor.u32 %v8336_v4, %v7422_v5  ;;  %v8373_v30 = vld [vmem:[#allocation8 + $0x29c] sm:$0xf0]  ;;  %v7520_v4 = vld [vmem:[#allocation8 + $0x238] sm:$0xf]  ;;  %v4593_v5 = vld [vmem:[#allocation8 + $0x368] sm:$0x33] }
 0x235   :  { %v3628_v41 = vadd.f32 %v3616_v22, %v3185_v25  ;;  %v3590_v17 = vpop.f32.mrf.mxu1  ;;  %v3633_v8 = vadd.f32 %v3576_v42, %v3190_v14  ;;  %v4232_v58 = vpack.c.b16 %v4208_v57, %v4208_v57  ;;  %v4233_v2 = vpack.c.b16 %v4209_v48, %v4209_v48  ;;  %v8353_v22 = vld [vmem:[#allocation8 + $0x1ec] sm:$0xf0]  ;;  %v7452_v42 = vld [vmem:[#allocation8 + $0x1a8] sm:$0xf]  ;;  %v8346_v14 = vld [vmem:[#allocation8 + $0x1b4] sm:$0xf0] }
 0x236   :  { %v3657_v31 = vmax.f32 %v3625_v33, %v3627_v27  ;;  %v3634_v49 = vadd.f32 %v3590_v17, %v3191_v6  ;;  %v4269_v33 = vsel %vm3845_vm2, %v4235_v7, 0  ;;  %v7476_v27 = vld [vmem:[#allocation8 + $0x1e0] sm:$0xf]  ;;  %v7454_v17 = vld [vmem:[#allocation8 + $0x1b8] sm:$0xf0] }
 0x237   :  { %v3658_v15 = vmax.f32 %v3626_v40, %v3628_v41  ;;  %v4260_v25 = vsel %vm3845_vm2, %v4232_v58, 0  ;;  %v4263_v26 = vsel %vm3845_vm2, %v4233_v2, 0  ;;  %v8352_v40 = vld [vmem:[#allocation8 + $0x1ec] sm:$0xf]  ;;  %v7486_v41 = vld [vmem:[#allocation8 + $0x1f8] sm:$0xf0]  ;;  %v7477_v51 = vor.u32 %v8353_v22, %v7476_v27 }
 0x238   :  { %v7489_v18 = vor.u32 %v8352_v40, %v7486_v41  ;;  %v4359_v6 = vld [vmem:[#allocation8 + $0x2b0] sm:$0x33]  ;;  %v7412_v58 = vld [vmem:[#allocation8 + $0x160] sm:$0xf]  ;;  %v8338_v22 = vld [vmem:[#allocation8 + $0x174] sm:$0xf0] }
 0x239   :  { %v3661_v62 = vmax.f32 %v3657_v31, %v3658_v15  ;;  %v7485_v31 = vor.u32 %v8354_v44, %v7484_v3  ;;  %v8350_v15 = vld [vmem:[#allocation8 + $0x1d4] sm:$0xf0]  ;;  %v8337_v2 = vld [vmem:[#allocation8 + $0x16c] sm:$0xf0] }
 0x23a   :  { %v7469_v9 = vor.u32 %v8350_v15, %v7468_v50  ;;  %v9417_v60 = vld [vmem:[#allocation2] sm:$0xff]   ;;  %v7413_v40 = vor.u32 %v8337_v2, %v7412_v58  ;;  %v8371_v50 = vld [vmem:[#allocation8 + $0x294] sm:$0xf]  ;;  %v7512_v58 = vld [vmem:[#allocation8 + $0x230] sm:$0xf] }
 0x23b   :  { %v3667_v45 = vadd.f32 %v8481_v37, %v3661_v62  ;;  %v3604_v23 = vpop.f32.mrf.mxu2  ;;  %v7446_v62 = vld [vmem:[#allocation8 + $0x1b0] sm:$0xf0]  ;;  %v4337_v2 = vld [vmem:[#allocation2 + $0x14] sm:$0x1] }
 0x23c   :  { %v3635_v55 = vadd.f32 %v3604_v23, %v3192_v13  ;;  %v3618_v10 = vpop.f32.mrf.mxu3  ;;  %v8344_v13 = vld [vmem:[#allocation8 + $0x1ac] sm:$0xf]  ;;  %v7445_v23 = vor.u32 %v8345_v0, %v7444_v56  ;;  %v8372_v56 = vld [vmem:[#allocation8 + $0x29c] sm:$0xf] }
 0x23d   :  { %v3669_v1 = vmax.f32 %v3667_v45, 0.0  ;;  %v3636_v63 = vadd.f32 %v3618_v10, %v3193_v52  ;;  %v7428_v52 = vld [vmem:[#allocation8 + $0x180] sm:$0xf]  ;;  %v8339_v10 = vld [vmem:[#allocation8 + $0x184] sm:$0xf] }
 0x23e   :  { %v3659_v53 = vmax.f32 %v3633_v8, %v3635_v55  ;;  %v4102_v45 = vld [vmem:[#allocation2 + $0x8] sm:$0x1]  ;;  %v7449_v8 = vor.u32 %v8343_v47, %v7446_v62  ;;  %v8341_v55 = vld [vmem:[#allocation8 + $0x18c] sm:$0xf0]  ;;  %v7570_v0 = vld [vmem:[#allocation8 + $0x2a8] sm:$0xf0] }
 0x23f   :  { %v3671_v36 = vpack.c.bf16 %v3669_v1, %v3669_v1  ;;  %v3660_v43 = vmax.f32 %v3634_v49, %v3636_v63  ;;  %v4360_v1 = vld [vmem:[#allocation8 + $0x2b8] sm:$0x33]  ;;  %v7453_v49 = vor.u32 %v8346_v14, %v7452_v42  ;;  %v7457_v63 = vor.u32 %v8344_v13, %v7454_v17  ;;  %v7544_v62 = vld [vmem:[#allocation8 + $0x270] sm:$0xf]  ;;  %v8369_v42 = vld [vmem:[#allocation8 + $0x27c] sm:$0xf0] }
 0x240   :  { %v4446_v57 = vunpack.c.h.b16 %v4360_v1  ;;  %v7429_v48 = vor.u32 %v8341_v55, %v7428_v52  ;;  %v4131_v7 = vunpack.c.l.b16 %v4102_v45  ;;  %v7573_v52 = vor.u32 %v8372_v56, %v7570_v0  ;;  %v8367_v45 = vld [vmem:[#allocation8 + $0x274] sm:$0xf]  ;;  %v8370_v55 = vld [vmem:[#allocation8 + $0x284] sm:$0xf0]  ;;  %v7504_v56 = vld [vmem:[#allocation8 + $0x218] sm:$0xf] }
 0x241   :  { %3674 = vst.msk [vmem:[#allocation2 + $0xc] sm:$0xf] %vm3653_vm3, %v3671_v36  ;;  %v3662_v32 = vmax.f32 %v3659_v53, %v3660_v43  ;;  %v7430_v53 = vld [vmem:[#allocation8 + $0x190] sm:$0xf0]  ;;  %v7436_v36 = vld [vmem:[#allocation8 + $0x188] sm:$0xf] }
 0x242   :  { %v8342_v43 = vld [vmem:[#allocation8 + $0x194] sm:$0xf0]  ;;  %v7433_v28 = vor.u32 %v8339_v10, %v7430_v53  ;;  %v4470_v44 = vpack.c.b16 %v4446_v57, %v4446_v57  ;;  %v8368_v10 = vld [vmem:[#allocation8 + $0x27c] sm:$0xf]  ;;  %v8358_v0 = vld [vmem:[#allocation8 + $0x224] sm:$0xf0] }
 0x243   :  { %v3668_v12 = vadd.f32 %v8481_v37, %v3662_v32  ;;  %v8348_v37 = vld [vmem:[#allocation8 + $0x1cc] sm:$0xf]  ;;  %v4443_v32 = vunpack.c.l.b16 %v4359_v6  ;;  %v7437_v54 = vor.u32 %v8342_v43, %v7436_v36  ;;  %v7528_v43 = vld [vmem:[#allocation8 + $0x250] sm:$0xf]  ;;  %v7536_v57 = vld [vmem:[#allocation8 + $0x258] sm:$0xf] }
 0x244   :  { %v7473_v19 = vor.u32 %v8348_v37, %v7470_v59  ;;  %v4504_v37 = vsel %vm3845_vm2, %v4470_v44, 0  ;;  %v7562_v59 = vld [vmem:[#allocation8 + $0x2a0] sm:$0xf0]  ;;  %v8360_v44 = vld [vmem:[#allocation8 + $0x23c] sm:$0xf] }
 0x245   :  { %v3670_v29 = vmax.f32 %v3668_v12, 0.0  ;;  %v4444_v12 = vunpack.c.h.b16 %v4359_v6 }
 0x247   :  { %v3672_v61 = vpack.c.bf16 %v3670_v29, %v3670_v29  ;;  %v8293_v29 = vld [vmem:[#allocation2] sm:$0xff]  ;;  %v4468_v27 = vpack.c.b16 %v4444_v12, %v4444_v12 }
 0x249   :  { %3675 = vst.msk [vmem:[#allocation2 + $0x10] sm:$0xf] %vm3653_vm3, %v3672_v61  ;;  %v4445_v61 = vunpack.c.l.b16 %v4360_v1  ;;  %v7554_v1 = vld [vmem:[#allocation8 + $0x288] sm:$0xf0] }
 0x24b   :  { %v4469_v3 = vpack.c.b16 %v4445_v61, %v4445_v61  ;;  %v7530_v61 = vld [vmem:[#allocation8 + $0x260] sm:$0xf0] }
 0x24d   :  { %v4501_v15 = vsel %vm3845_vm2, %v4469_v3, 0  ;;  %v8362_v3 = vld [vmem:[#allocation8 + $0x244] sm:$0xf0] }
 0x250   :  { %v8314_v35 = vld [vmem:[#allocation2 + $0xc] sm:$0xff] }
 0x251   :  { %7318 = vmatmul.msk.bf16.vlgmr.msra.gmra.mxu0 %vm3841_vm4, %v8314_v35  ;;  %7319 = vmatmul.msk.bf16.vlgmr.msra.gmra.mxu1 %vm3841_vm4, %v8314_v35  ;;  %v9431_v13 = vld [vmem:[#allocation2 + $0xc] sm:$0xff]  }
 0x252   :  { %7320 = vmatmul.msk.bf16.vlgmr.msra.gmra.mxu2 %vm3841_vm4, %v8314_v35  ;;  %7321 = vmatmul.msk.bf16.vlgmr.msra.gmra.mxu3 %vm3841_vm4, %v8314_v35  ;;  %v7420_v35 = vld [vmem:[#allocation8 + $0x168] sm:$0xf] }
 0x253   :  { %4273 = vmatpush.bf16.msra.mxu0 %v4260_v25  ;;  %4287 = vmatpush.bf16.msra.mxu1 %v4263_v26  ;;  %v7441_v25 = vor.u32 %v8340_v34, %v7438_v21  ;;  %v8335_v26 = vld [vmem:[#allocation8 + $0x164] sm:$0xf]  ;;  %v7421_v38 = vor.u32 %v8338_v22, %v7420_v35  ;;  %v9433_v17 = vld [vmem:[#allocation2 + $0xc] sm:$0xf0]  ;;  %v7557_v34 = vor.u32 %v8368_v10, %v7554_v1 }
 0x254   :  { %4301 = vmatpush.bf16.msra.mxu2 %v4266_v11  ;;  %4315 = vmatpush.bf16.msra.mxu3 %v4269_v33  ;;  %v7414_v11 = vld [vmem:[#allocation8 + $0x170] sm:$0xf0]  ;;  %v4467_v33 = vpack.c.b16 %v4443_v32, %v4443_v32  ;;  %v8365_v32 = vld [vmem:[#allocation8 + $0x25c] sm:$0xf0]  ;;  %v7514_v22 = vld [vmem:[#allocation8 + $0x240] sm:$0xf0] }
 0x255   :  { %v7417_v41 = vor.u32 %v8335_v26, %v7414_v11  ;;  %v8359_v26 = vld [vmem:[#allocation8 + $0x234] sm:$0xf]  ;;  %v4592_v11 = vld [vmem:[#allocation8 + $0x360] sm:$0x33] }
 0x257   :  { %4274 = vmatpush.bf16.msra.mxu0 %v7477_v51  ;;  %4288 = vmatpush.bf16.msra.mxu1 %v7481_v20  ;;  %v9423_v51 = vpack.c.b16 %v4131_v7, %v4131_v7  ;;  %v4137_v20 = vshll.u32 %v9417_v60, 16 }
 0x258   :  { %4302 = vmatpush.bf16.msra.mxu2 %v7485_v31  ;;  %4316 = vmatpush.bf16.msra.mxu3 %v7489_v18  ;;  %v4495_v31 = vsel %vm3845_vm2, %v4467_v33, 0  ;;  %v4498_v18 = vsel %vm3845_vm2, %v4468_v27, 0 }
 0x259   :  { %v4142_v47 = vshll.u32 %v9423_v51, 16  ;;  %v4139_v14 = vrot.slane %v4137_v20, 1  ;;  %v4664_v20 = vunpack.c.h.b16 %v4592_v11 }
 0x25b   :  { %4275 = vmatpush.bf16.msra.mxu0 %v7461_v39  ;;  %4289 = vmatpush.bf16.msra.mxu1 %v7465_v16  ;;  %v7568_v39 = vld [vmem:[#allocation8 + $0x298] sm:$0xf]  ;;  %v8374_v16 = vld [vmem:[#allocation8 + $0x2a4] sm:$0xf0]  ;;  %v4144_v36 = vrot.slane %v4142_v47, 1 }
 0x25c   :  { %4303 = vmatpush.bf16.msra.mxu2 %v7469_v9  ;;  %4317 = vmatpush.bf16.msra.mxu3 %v7473_v19  ;;  %v7561_v9 = vor.u32 %v8373_v30, %v7560_v46  ;;  %v7565_v19 = vor.u32 %v8371_v50, %v7562_v59  ;;  %v7569_v6 = vor.u32 %v8374_v16, %v7568_v39  ;;  %v7496_v46 = vld [vmem:[#allocation8 + $0x210] sm:$0xf]  ;;  %v8357_v30 = vld [vmem:[#allocation8 + $0x21c] sm:$0xf0]  ;;  %v4665_v50 = vunpack.c.l.b16 %v4593_v5  ;;  %v8355_v39 = vld [vmem:[#allocation8 + $0x214] sm:$0xf] }
 0x25d   :  { %v7498_v16 = vld [vmem:[#allocation8 + $0x220] sm:$0xf0]  ;;  %v8356_v47 = vld [vmem:[#allocation8 + $0x21c] sm:$0xf] }
 0x25f   :  { %4276 = vmatpush.bf16.msra.mxu0 %v7445_v23  ;;  %4290 = vmatpush.bf16.msra.mxu1 %v7449_v8  ;;  %v7546_v23 = vld [vmem:[#allocation8 + $0x280] sm:$0xf0]  ;;  %v7552_v8 = vld [vmem:[#allocation8 + $0x278] sm:$0xf] }
 0x260   :  { %4304 = vmatpush.bf16.msra.mxu2 %v7453_v49  ;;  %4318 = vmatpush.bf16.msra.mxu3 %v7457_v63  ;;  %v4135_v49 = vshrl.u32 %v9417_v60, 16  ;;  %v7545_v63 = vor.u32 %v8369_v42, %v7544_v62  ;;  %v7549_v53 = vor.u32 %v8367_v45, %v7546_v23  ;;  %v7553_v12 = vor.u32 %v8370_v55, %v7552_v8  ;;  %v7644_v55 = vld [vmem:[#allocation8 + $0x340] sm:$0xf] }
 0x261   :  { %7406 = vmatmul.msk.bf16.vlgmr.msrb.gmra.mxu0 %vm3841_vm4, %v8293_v29  ;;  %7407 = vmatmul.msk.bf16.vlgmr.msrb.gmra.mxu1 %vm3841_vm4, %v8293_v29  ;;  %v7529_v60 = vor.u32 %v8365_v32, %v7528_v43  ;;  %v4688_v42 = vpack.c.b16 %v4664_v20, %v4664_v20  ;;  %v7505_v23 = vor.u32 %v8358_v0, %v7504_v56  ;;  %v7652_v32 = vld [vmem:[#allocation8 + $0x348] sm:$0xf]  ;;  %v8383_v20 = vld [vmem:[#allocation8 + $0x304] sm:$0xf] }
 0x262   :  { %7408 = vmatmul.msk.bf16.vlgmr.msrb.gmra.mxu2 %vm3841_vm4, %v8293_v29  ;;  %7409 = vmatmul.msk.bf16.vlgmr.msrb.gmra.mxu3 %vm3841_vm4, %v8293_v29  ;;  %v4140_v21 = vor.u32 %v4139_v14, %v4135_v49  ;;  %v8363_v29 = vld [vmem:[#allocation8 + $0x254] sm:$0xf]  ;;  %v8393_v49 = vld [vmem:[#allocation8 + $0x34c] sm:$0xf0] }
 0x263   :  { %4277 = vmatpush.bf16.msra.mxu0 %v7429_v48  ;;  %4291 = vmatpush.bf16.msra.mxu1 %v7433_v28  ;;  %v8366_v48 = vld [vmem:[#allocation8 + $0x264] sm:$0xf0]  ;;  %v8364_v28 = vld [vmem:[#allocation8 + $0x25c] sm:$0xf]  ;;  %v7533_v7 = vor.u32 %v8363_v29, %v7530_v61  ;;  %v4718_v43 = vsel %vm3845_vm2, %v4688_v42, 0 }
 0x264   :  { %4305 = vmatpush.bf16.msra.mxu2 %v7437_v54  ;;  %4319 = vmatpush.bf16.msra.mxu3 %v7441_v25  ;;  %v7538_v54 = vld [vmem:[#allocation8 + $0x268] sm:$0xf0]  ;;  %v8361_v25 = vld [vmem:[#allocation8 + $0x23c] sm:$0xf0]  ;;  %v4145_v35 = vsel %vm1924_vm1, %v4140_v21, %v4144_v36  ;;  %v7537_v33 = vor.u32 %v8366_v48, %v7536_v57  ;;  %v7654_v61 = vld [vmem:[#allocation8 + $0x358] sm:$0xf0]  ;;  %v7645_v48 = vor.u32 %v8393_v49, %v7644_v55 }
 0x265   :  { %v7541_v27 = vor.u32 %v8364_v28, %v7538_v54  ;;  %v8392_v29 = vld [vmem:[#allocation8 + $0x34c] sm:$0xf]  ;;  %v4370_v57 = vshrl.u32 %v9431_v13, 16  ;;  %v8377_v49 = vld [vmem:[#allocation8 + $0x2cc] sm:$0xf0] }
 0x266   :  { %v8380_v42 = vld [vmem:[#allocation8 + $0x2ec] sm:$0xf] }
 0x267   :  { %4278 = vmatpush.bf16.msra.mxu0 %v7413_v40  ;;  %4292 = vmatpush.bf16.msra.mxu1 %v7417_v41  ;;  %v7522_v40 = vld [vmem:[#allocation8 + $0x248] sm:$0xf0]  ;;  %v4663_v41 = vunpack.c.l.b16 %v4592_v11  ;;  %v7630_v11 = vld [vmem:[#allocation8 + $0x330] sm:$0xf0] }
 0x268   :  { %4306 = vmatpush.bf16.msra.mxu2 %v7421_v38  ;;  %4320 = vmatpush.bf16.msra.mxu3 %v7425_v24  ;;  %v4366_v38 = vunpack.c.l.b16 %v4337_v2  ;;  %v4372_v24 = vshll.u32 %v9431_v13, 16  ;;  %v7525_v59 = vor.u32 %v8360_v44, %v7522_v40  ;;  %v8389_v2 = vld [vmem:[#allocation8 + $0x32c] sm:$0xf0] }
 0x269   :  { %v4687_v62 = vpack.c.b16 %v4663_v41, %v4663_v41 }
 0x26a   :  { %v9442_v14 = vpack.c.b16 %v4366_v38, %v4366_v38  ;;  %v4374_v10 = vrot.slane %v4372_v24, 1  ;;  %v7614_v38 = vld [vmem:[#allocation8 + $0x310] sm:$0xf0]  ;;  %v7620_v24 = vld [vmem:[#allocation8 + $0x308] sm:$0xf] }
 0x26b   :  { %4508 = vmatpush.bf16.msrb.mxu0 %v4495_v31  ;;  %4522 = vmatpush.bf16.msrb.mxu1 %v4498_v18  ;;  %v7513_v31 = vor.u32 %v8361_v25, %v7512_v58  ;;  %v7517_v18 = vor.u32 %v8359_v26, %v7514_v22  ;;  %v4715_v36 = vsel %vm3845_vm2, %v4687_v62, 0  ;;  %v7628_v58 = vld [vmem:[#allocation8 + $0x320] sm:$0xf]  ;;  %v8387_v26 = vld [vmem:[#allocation8 + $0x324] sm:$0xf] }
 0x26c   :  { %4536 = vmatpush.bf16.msrb.mxu2 %v4501_v15  ;;  %4550 = vmatpush.bf16.msrb.mxu3 %v4504_v37  ;;  %v4666_v15 = vunpack.c.h.b16 %v4593_v5  ;;  %v7521_v37 = vor.u32 %v8362_v3, %v7520_v4  ;;  %v4377_v1 = vshll.u32 %v9442_v14, 16  ;;  %v4375_v25 = vor.u32 %v4374_v10, %v4370_v57  ;;  %v7638_v22 = vld [vmem:[#allocation8 + $0x338] sm:$0xf0]  ;;  %v7612_v5 = vld [vmem:[#allocation8 + $0x300] sm:$0xf] }
 0x26d   :  { %v7629_v13 = vor.u32 %v8389_v2, %v7628_v58  ;;  %v7633_v4 = vor.u32 %v8387_v26, %v7630_v11  ;;  %v8385_v3 = vld [vmem:[#allocation8 + $0x30c] sm:$0xf0]  ;;  %v8382_v62 = vld [vmem:[#allocation8 + $0x2f4] sm:$0xf0]  ;;  %v4599_v26 = vrot.slane %v9423_v51, 1 }
 0x26e   :  { %v4690_v45 = vpack.c.b16 %v4666_v15, %v4666_v15  ;;  %v4379_v54 = vrot.slane %v4377_v1, 1  ;;  %v7617_v15 = vor.u32 %v8383_v20, %v7614_v38  ;;  %v7580_v1 = vld [vmem:[#allocation8 + $0x2c0] sm:$0xf]  ;;  %v7728_v11 = vld [vmem:[#allocation8 + $0x3f0] sm:$0xf] }
 0x26f   :  { %4509 = vmatpush.bf16.msrb.mxu0 %v7561_v9  ;;  %4523 = vmatpush.bf16.msrb.mxu1 %v7565_v19  ;;  %v7506_v9 = vld [vmem:[#allocation8 + $0x228] sm:$0xf0]  ;;  %v7497_v19 = vor.u32 %v8357_v30, %v7496_v46  ;;  %v7622_v46 = vld [vmem:[#allocation8 + $0x318] sm:$0xf0]  ;;  %v7596_v30 = vld [vmem:[#allocation8 + $0x2e0] sm:$0xf]  ;;  %v7581_v58 = vor.u32 %v8377_v49, %v7580_v1 }
 0x270   :  { %4537 = vmatpush.bf16.msrb.mxu2 %v7569_v6  ;;  %4551 = vmatpush.bf16.msrb.mxu3 %v7573_v52  ;;  %v7501_v6 = vor.u32 %v8355_v39, %v7498_v16  ;;  %v4689_v52 = vpack.c.b16 %v4665_v50, %v4665_v50  ;;  %v7509_v8 = vor.u32 %v8356_v47, %v7506_v9  ;;  %v4724_v21 = vsel %vm3845_vm2, %v4690_v45, 0  ;;  %v4813_v39 = vld [vmem:[#allocation8 + $0x418] sm:$0x33]  ;;  %v8460_v16 = vld [vmem:[#allocation2] sm:$0xf0] }
 0x271   :  { %7490 = vmatmul.msk.bf16.vlgmr.msra.gmra.mxu0 %vm3841_vm4, %v4145_v35  ;;  %7491 = vmatmul.msk.bf16.vlgmr.msra.gmra.mxu1 %vm3841_vm4, %v4145_v35  ;;  %v4380_v44 = vsel %vm1924_vm1, %v4375_v25, %v4379_v54  ;;  %v7613_v50 = vor.u32 %v8385_v3, %v7612_v5  ;;  %v8379_v47 = vld [vmem:[#allocation8 + $0x2e4] sm:$0xf]  ;;  %v7598_v9 = vld [vmem:[#allocation8 + $0x2f0] sm:$0xf0]  ;;  %v7736_v3 = vld [vmem:[#allocation8 + $0x3f8] sm:$0xf] }
 0x272   :  { %7492 = vmatmul.msk.bf16.vlgmr.msra.gmra.mxu2 %vm3841_vm4, %v4145_v35  ;;  %7493 = vmatmul.msk.bf16.vlgmr.msra.gmra.mxu3 %vm3841_vm4, %v4145_v35  ;;  %v7636_v35 = vld [vmem:[#allocation8 + $0x328] sm:$0xf]  ;;  %v7601_v10 = vor.u32 %v8379_v47, %v7598_v9  ;;  %v7712_v38 = vld [vmem:[#allocation8 + $0x3d0] sm:$0xf]  ;;  %v8405_v47 = vld [vmem:[#allocation8 + $0x3bc] sm:$0xf0] }
 0x273   :  { %4510 = vmatpush.bf16.msrb.mxu0 %v7545_v63  ;;  %4524 = vmatpush.bf16.msrb.mxu1 %v7549_v53  ;;  %v8391_v63 = vld [vmem:[#allocation8 + $0x344] sm:$0xf]  ;;  %v7646_v53 = vld [vmem:[#allocation8 + $0x350] sm:$0xf0]  ;;  %v8401_v1 = vld [vmem:[#allocation8 + $0x39c] sm:$0xf0] }
 0x274   :  { %4538 = vmatpush.bf16.msrb.mxu2 %v7553_v12  ;;  %4552 = vmatpush.bf16.msrb.mxu3 %v7557_v34  ;;  %v8394_v12 = vld [vmem:[#allocation8 + $0x354] sm:$0xf0]  ;;  %v4721_v34 = vsel %vm3845_vm2, %v4689_v52, 0  ;;  %v7649_v28 = vor.u32 %v8391_v63, %v7646_v53  ;;  %v8495_v49 = vld [vmem:[#allocation2 + $0xc] sm:$0xe] }
 0x275   :  { %v8461_v63 = vld [vmem:[#allocation2] sm:$0xe] }
 0x277   :  { %4511 = vmatpush.bf16.msrb.mxu0 %v7529_v60  ;;  %4525 = vmatpush.bf16.msrb.mxu1 %v7533_v7  ;;  %v7653_v60 = vor.u32 %v8394_v12, %v7652_v32  ;;  %v7657_v7 = vor.u32 %v8392_v29, %v7654_v61  ;;  %v7582_v32 = vld [vmem:[#allocation8 + $0x2d0] sm:$0xf0]  ;;  %v7588_v12 = vld [vmem:[#allocation8 + $0x2c8] sm:$0xf]  ;;  %v8376_v29 = vld [vmem:[#allocation8 + $0x2cc] sm:$0xf] }
 0x278   :  { %4539 = vmatpush.bf16.msrb.mxu2 %v7537_v33  ;;  %4553 = vmatpush.bf16.msrb.mxu3 %v7541_v27  ;;  %v8390_v33 = vld [vmem:[#allocation8 + $0x334] sm:$0xf0]  ;;  %v8388_v27 = vld [vmem:[#allocation8 + $0x32c] sm:$0xf]  ;;  %v7590_v61 = vld [vmem:[#allocation8 + $0x2d8] sm:$0xf0] }
 0x279   :  { %v7637_v40 = vor.u32 %v8390_v33, %v7636_v35  ;;  %v7641_v41 = vor.u32 %v8388_v27, %v7638_v22  ;;  %v8413_v35 = vld [vmem:[#allocation8 + $0x3fc] sm:$0xf0]  ;;  %v8411_v33 = vld [vmem:[#allocation8 + $0x3f4] sm:$0xf]  ;;  %v7730_v27 = vld [vmem:[#allocation8 + $0x400] sm:$0xf0] }
 0x27a   :  { %v7729_v51 = vor.u32 %v8413_v35, %v7728_v11  ;;  %v7733_v20 = vor.u32 %v8411_v33, %v7730_v27  ;;  %v8496_v11 = vor.u32 %v8495_v49, %v9433_v17  ;;  %v8419_v49 = vld [vmem:[#allocation11 + $0x20] sm:$0xff] }
 0x27b   :  { %4512 = vmatpush.bf16.msrb.mxu0 %v7513_v31  ;;  %4526 = vmatpush.bf16.msrb.mxu1 %v7517_v18  ;;  %v8386_v31 = vld [vmem:[#allocation8 + $0x314] sm:$0xf0]  ;;  %v8384_v18 = vld [vmem:[#allocation8 + $0x30c] sm:$0xf] }
 0x27c   :  { %4540 = vmatpush.bf16.msrb.mxu2 %v7521_v37  ;;  %4554 = vmatpush.bf16.msrb.mxu3 %v7525_v59  ;;  %v8381_v37 = vld [vmem:[#allocation8 + $0x2ec] sm:$0xf0]  ;;  %v7621_v56 = vor.u32 %v8386_v31, %v7620_v24  ;;  %v7625_v0 = vor.u32 %v8384_v18, %v7622_v46  ;;  %v8409_v24 = vld [vmem:[#allocation8 + $0x3dc] sm:$0xf0] }
 0x27d   :  { %v4812_v59 = vld [vmem:[#allocation8 + $0x410] sm:$0x33]  ;;  %v7597_v55 = vor.u32 %v8381_v37, %v7596_v30  ;;  %v8410_v37 = vld [vmem:[#allocation8 + $0x3e4] sm:$0xf0] }
 0x27e   :  { %v4882_v52 = vunpack.c.l.b16 %v4812_v59  ;;  %v4883_v45 = vunpack.c.h.b16 %v4812_v59  ;;  %v8407_v30 = vld [vmem:[#allocation8 + $0x3d4] sm:$0xf]  ;;  %v8408_v59 = vld [vmem:[#allocation8 + $0x3dc] sm:$0xf] }
 0x27f   :  { %4513 = vmatpush.bf16.msrb.mxu0 %v7497_v19  ;;  %4527 = vmatpush.bf16.msrb.mxu1 %v7501_v6  ;;  %v7604_v19 = vld [vmem:[#allocation8 + $0x2e8] sm:$0xf]  ;;  %v7606_v6 = vld [vmem:[#allocation8 + $0x2f8] sm:$0xf0] }
 0x280   :  { %4541 = vmatpush.bf16.msrb.mxu2 %v7505_v23  ;;  %4555 = vmatpush.bf16.msrb.mxu3 %v7509_v8  ;;  %v4884_v23 = vunpack.c.l.b16 %v4813_v39  ;;  %v4885_v8 = vunpack.c.h.b16 %v4813_v39  ;;  %v7605_v53 = vor.u32 %v8382_v62, %v7604_v19  ;;  %v4906_v57 = vpack.c.b16 %v4882_v52, %v4882_v52  ;;  %v7722_v39 = vld [vmem:[#allocation8 + $0x3e8] sm:$0xf0]  ;;  %v8403_v62 = vld [vmem:[#allocation8 + $0x3b4] sm:$0xf]  ;;  %v8406_v52 = vld [vmem:[#allocation8 + $0x3c4] sm:$0xf0] }
 0x281   :  { %v7725_v19 = vor.u32 %v8408_v59, %v7722_v39 }
 0x282   :  { %7574 = vmatmul.msk.bf16.vlgmr.msrb.gmra.mxu0 %vm3841_vm4, %v4380_v44  ;;  %7575 = vmatmul.msk.bf16.vlgmr.msrb.gmra.mxu1 %vm3841_vm4, %v4380_v44  ;;  %v4909_v54 = vpack.c.b16 %v4885_v8, %v4885_v8  ;;  %v4934_v22 = vsel %vm3845_vm2, %v4906_v57, 0  ;;  %v7664_v57 = vld [vmem:[#allocation8 + $0x370] sm:$0xf] }
 0x283   :  { %4728 = vmatpush.bf16.msra.mxu0 %v4715_v36  ;;  %4742 = vmatpush.bf16.msra.mxu1 %v4718_v43  ;;  %v7609_v36 = vor.u32 %v8380_v42, %v7606_v6  ;;  %v8375_v43 = vld [vmem:[#allocation8 + $0x2c4] sm:$0xf]  ;;  %v7704_v6 = vld [vmem:[#allocation8 + $0x3b8] sm:$0xf] }
 0x284   :  { %4756 = vmatpush.bf16.msra.mxu2 %v4721_v34  ;;  %4770 = vmatpush.bf16.msra.mxu3 %v4724_v21  ;;  %v8462_v34 = vor.u32 %v8461_v63, %v8460_v16  ;;  %v8378_v21 = vld [vmem:[#allocation8 + $0x2d4] sm:$0xf0]  ;;  %v7585_v2 = vor.u32 %v8375_v43, %v7582_v32  ;;  %v4943_v5 = vsel %vm3845_vm2, %v4909_v54, 0  ;;  %v7713_v16 = vor.u32 %v8409_v24, %v7712_v38  ;;  %v7698_v42 = vld [vmem:[#allocation8 + $0x3c0] sm:$0xf0] }
 0x285   :  { %7576 = vmatmul.msk.bf16.vlgmr.msrb.gmra.mxu2 %vm3841_vm4, %v4380_v44  ;;  %7577 = vmatmul.msk.bf16.vlgmr.msrb.gmra.mxu3 %vm3841_vm4, %v4380_v44  ;;  %v8414_v44 = vld [vmem:[#allocation8 + $0x404] sm:$0xf0]  ;;  %v7705_v63 = vor.u32 %v8406_v52, %v7704_v6  ;;  %v7682_v43 = vld [vmem:[#allocation8 + $0x3a0] sm:$0xf0]  ;;  %v7688_v32 = vld [vmem:[#allocation8 + $0x398] sm:$0xf] }
 0x286   :  { %v4598_v25 = vrot.slane %v8462_v34, 1  ;;  %v7737_v18 = vor.u32 %v8414_v44, %v7736_v3  ;;  %v8400_v34 = vld [vmem:[#allocation8 + $0x39c] sm:$0xf] }
 0x287   :  { %4729 = vmatpush.bf16.msra.mxu0 %v7645_v48  ;;  %4743 = vmatpush.bf16.msra.mxu1 %v7649_v28  ;;  %v4907_v48 = vpack.c.b16 %v4883_v45, %v4883_v45  ;;  %v4908_v28 = vpack.c.b16 %v4884_v23, %v4884_v23  ;;  %v8404_v45 = vld [vmem:[#allocation8 + $0x3bc] sm:$0xf]  ;;  %v7706_v23 = vld [vmem:[#allocation8 + $0x3c8] sm:$0xf0] }
 0x288   :  { %4757 = vmatpush.bf16.msra.mxu2 %v7653_v60  ;;  %4771 = vmatpush.bf16.msra.mxu3 %v7657_v7  ;;  %v7589_v60 = vor.u32 %v8378_v21, %v7588_v12  ;;  %v7593_v7 = vor.u32 %v8376_v29, %v7590_v61  ;;  %v4600_v31 = vsel %vm4597_vm5, %v4598_v25, %v4599_v26  ;;  %v8402_v12 = vld [vmem:[#allocation8 + $0x3a4] sm:$0xf0]  ;;  %v7690_v21 = vld [vmem:[#allocation8 + $0x3a8] sm:$0xf0]  ;;  %v8396_v25 = vld [vmem:[#allocation8 + $0x37c] sm:$0xf] }
 0x289   :  { %v7693_v54 = vor.u32 %v8400_v34, %v7690_v21  ;;  %v7674_v26 = vld [vmem:[#allocation8 + $0x388] sm:$0xf0]  ;;  %v8417_v34 = vld [vmem:[#allocation11 + $0x10] sm:$0xff] }
 0x28a   :  { %v8429_v21 = vld [vmem:[#allocation11 + $0x70] sm:$0xff] }
 0x28b   :  { %4730 = vmatpush.bf16.msra.mxu0 %v7629_v13  ;;  %4744 = vmatpush.bf16.msra.mxu1 %v7633_v4  ;;  %v4937_v13 = vsel %vm3845_vm2, %v4907_v48, 0  ;;  %v4940_v4 = vsel %vm3845_vm2, %v4908_v28, 0  ;;  %v8397_v48 = vld [vmem:[#allocation8 + $0x37c] sm:$0xf0]  ;;  %v7689_v28 = vor.u32 %v8402_v12, %v7688_v32  ;;  %v8424_v12 = vld [vmem:[#allocation11 + $0x48] sm:$0xff] }
 0x28c   :  { %4758 = vmatpush.bf16.msra.mxu2 %v7637_v40  ;;  %4772 = vmatpush.bf16.msra.mxu3 %v7641_v41  ;;  %v8412_v40 = vld [vmem:[#allocation8 + $0x3fc] sm:$0xf]  ;;  %v7738_v41 = vld [vmem:[#allocation8 + $0x408] sm:$0xf0]  ;;  %v7665_v35 = vor.u32 %v8397_v48, %v7664_v57 }
 0x28d   :  { %v7741_v46 = vor.u32 %v8412_v40, %v7738_v41  ;;  %v8428_v57 = vld [vmem:[#allocation11 + $0x68] sm:$0xff] }
 0x28f   :  { %4731 = vmatpush.bf16.msra.mxu0 %v7613_v50  ;;  %4745 = vmatpush.bf16.msra.mxu1 %v7617_v15  ;;  %v7714_v50 = vld [vmem:[#allocation8 + $0x3e0] sm:$0xf0]  ;;  %v7720_v15 = vld [vmem:[#allocation8 + $0x3d8] sm:$0xf] }
 0x290   :  { %4759 = vmatpush.bf16.msra.mxu2 %v7621_v56  ;;  %4773 = vmatpush.bf16.msra.mxu3 %v7625_v0  ;;  %v7717_v56 = vor.u32 %v8407_v30, %v7714_v50  ;;  %v7696_v0 = vld [vmem:[#allocation8 + $0x3b0] sm:$0xf]  ;;  %v7721_v9 = vor.u32 %v8410_v37, %v7720_v15 }
 0x291   :  { %v7697_v8 = vor.u32 %v8405_v47, %v7696_v0 }
 0x293   :  { %4732 = vmatpush.bf16.msra.mxu0 %v7597_v55  ;;  %4746 = vmatpush.bf16.msra.mxu1 %v7601_v10  ;;  %v7701_v55 = vor.u32 %v8403_v62, %v7698_v42  ;;  %v7680_v10 = vld [vmem:[#allocation8 + $0x390] sm:$0xf] }
 0x294   :  { %4760 = vmatpush.bf16.msra.mxu2 %v7605_v53  ;;  %4774 = vmatpush.bf16.msra.mxu3 %v7609_v36  ;;  %v7709_v53 = vor.u32 %v8404_v45, %v7706_v23  ;;  %v8399_v36 = vld [vmem:[#allocation8 + $0x394] sm:$0xf]  ;;  %v7681_v29 = vor.u32 %v8401_v1, %v7680_v10  ;;  %v9622_v1 = vmov 0  }
 0x295   :  { %v7685_v61 = vor.u32 %v8399_v36, %v7682_v43  ;;  %5028 = vst.msk [vmem:[#allocation3 + $0x8] sm:$0xf] %vm5025_vm6, %v9622_v1  ;;  %v8418_v36 = vld [vmem:[#allocation11 + $0x18] sm:$0xff] }
 0x297   :  { %4733 = vmatpush.bf16.msra.mxu0 %v7581_v58  ;;  %4747 = vmatpush.bf16.msra.mxu1 %v7585_v2  ;;  %v8395_v58 = vld [vmem:[#allocation8 + $0x374] sm:$0xf]  ;;  %v7666_v2 = vld [vmem:[#allocation8 + $0x380] sm:$0xf0] }
 0x298   :  { %4761 = vmatpush.bf16.msra.mxu2 %v7589_v60  ;;  %4775 = vmatpush.bf16.msra.mxu3 %v7593_v7  ;;  %v7672_v60 = vld [vmem:[#allocation8 + $0x378] sm:$0xf]  ;;  %v8398_v7 = vld [vmem:[#allocation8 + $0x384] sm:$0xf0]  ;;  %v7669_v33 = vor.u32 %v8395_v58, %v7666_v2 }
 0x299   :  { %v7673_v27 = vor.u32 %v8398_v7, %v7672_v60 }
 0x29a   :  { %7658 = vmatmul.msk.bf16.vlgmr.msra.gmra.mxu0 %vm3841_vm4, %v4600_v31  ;;  %7659 = vmatmul.msk.bf16.vlgmr.msra.gmra.mxu1 %vm3841_vm4, %v4600_v31 }
 0x29b   :  { %4947 = vmatpush.bf16.msrb.mxu0 %v4934_v22  ;;  %4961 = vmatpush.bf16.msrb.mxu1 %v4937_v13  ;;  %v7677_v22 = vor.u32 %v8396_v25, %v7674_v26  ;;  %v4817_v13 = vrot.slane %v8496_v11, 1  ;;  %v8422_v25 = vld [vmem:[#allocation11 + $0x38] sm:$0xff] }
 0x29c   :  { %4975 = vmatpush.bf16.msrb.mxu2 %v4940_v4  ;;  %4989 = vmatpush.bf16.msrb.mxu3 %v4943_v5  ;;  %v4818_v4 = vrot.slane %v9442_v14, 1 }
 0x29d   :  { %7660 = vmatmul.msk.bf16.vlgmr.msra.gmra.mxu2 %vm3841_vm4, %v4600_v31  ;;  %7661 = vmatmul.msk.bf16.vlgmr.msra.gmra.mxu3 %vm3841_vm4, %v4600_v31 }
 0x29e   :  { %v4819_v5 = vsel %vm4597_vm5, %v4817_v13, %v4818_v4 }
 0x29f   :  { %4948 = vmatpush.bf16.msrb.mxu0 %v7729_v51  ;;  %4962 = vmatpush.bf16.msrb.mxu1 %v7733_v20 }
 0x2a0   :  { %4976 = vmatpush.bf16.msrb.mxu2 %v7737_v18  ;;  %4990 = vmatpush.bf16.msrb.mxu3 %v7741_v46 }
 0x2a3   :  { %4949 = vmatpush.bf16.msrb.mxu0 %v7713_v16  ;;  %4963 = vmatpush.bf16.msrb.mxu1 %v7717_v56 }
 0x2a4   :  { %4977 = vmatpush.bf16.msrb.mxu2 %v7721_v9  ;;  %4991 = vmatpush.bf16.msrb.mxu3 %v7725_v19 }
 0x2a7   :  { %4950 = vmatpush.bf16.msrb.mxu0 %v7697_v8  ;;  %4964 = vmatpush.bf16.msrb.mxu1 %v7701_v55 }
 0x2a8   :  { %4978 = vmatpush.bf16.msrb.mxu2 %v7705_v63  ;;  %4992 = vmatpush.bf16.msrb.mxu3 %v7709_v53 }
 0x2ab   :  { %4951 = vmatpush.bf16.msrb.mxu0 %v7681_v29  ;;  %4965 = vmatpush.bf16.msrb.mxu1 %v7685_v61  ;;  %v8423_v29 = vld [vmem:[#allocation11 + $0x40] sm:$0xff]  ;;  %v8416_v61 = vld [vmem:[#allocation11 + $0x8] sm:$0xff] }
 0x2ac   :  { %4979 = vmatpush.bf16.msrb.mxu2 %v7689_v28  ;;  %4993 = vmatpush.bf16.msrb.mxu3 %v7693_v54 }
 0x2af   :  { %4952 = vmatpush.bf16.msrb.mxu0 %v7665_v35  ;;  %4966 = vmatpush.bf16.msrb.mxu1 %v7669_v33 }
 0x2b0   :  { %4980 = vmatpush.bf16.msrb.mxu2 %v7673_v27  ;;  %4994 = vmatpush.bf16.msrb.mxu3 %v7677_v22  ;;  %v8415_v27 = vld [vmem:[#allocation11] sm:$0xff] }
 0x2b1   :  { %v8427_v22 = vld [vmem:[#allocation11 + $0x60] sm:$0xff] }
 0x2b2   :  { %7742 = vmatmul.msk.bf16.vlgmr.msrb.gmra.mxu0 %vm3841_vm4, %v4819_v5  ;;  %7743 = vmatmul.msk.bf16.vlgmr.msrb.gmra.mxu1 %vm3841_vm4, %v4819_v5 }
 0x2b3   :  { %7744 = vmatmul.msk.bf16.vlgmr.msrb.gmra.mxu2 %vm3841_vm4, %v4819_v5  ;;  %7745 = vmatmul.msk.bf16.vlgmr.msrb.gmra.mxu3 %vm3841_vm4, %v4819_v5  ;;  %v8434_v5 = vld [vmem:[#allocation11 + $0x98] sm:$0xff] }
 0x2b4   :  { %5156 = vmatpush.bf16.msra.mxu3 %v8419_v49  ;;  %5110 = vmatpush.bf16.msra.mxu0 %v8424_v12 }
 0x2b5   :  { %5221 = vmatpush.bf16.msra.mxu2 %v8429_v21 }
 0x2b8   :  { %5157 = vmatpush.bf16.msra.mxu3 %v8418_v36  ;;  %5111 = vmatpush.bf16.msra.mxu0 %v8423_v29 }
 0x2b9   :  { %5222 = vmatpush.bf16.msra.mxu2 %v8428_v57 }
 0x2bc   :  { %5158 = vmatpush.bf16.msra.mxu3 %v8417_v34  ;;  %5112 = vmatpush.bf16.msra.mxu0 %v8422_v25 }
 0x2bd   :  { %5223 = vmatpush.bf16.msra.mxu2 %v8427_v22  ;;  %v5041_v22 = vld [vmem:[#allocation3 + $0x8] sm:$0x1] }
 0x2c0   :  { %5159 = vmatpush.bf16.msra.mxu3 %v8416_v61 }
 0x2c4   :  { %5160 = vmatpush.bf16.msra.mxu3 %v8415_v27  ;;  %v8436_v27 = vld [vmem:[#allocation11 + $0xa8] sm:$0xff] }
 0x2c8   :  { %5303 = vmatpush.bf16.msrb.mxu3 %v8434_v5  ;;  %v5058_v5 = vunpack.c.l.b16 %v5041_v22 }
 0x2ce   :  { %v3867_v17 = vpop.f32.mrf.mxu0  ;;  %v3881_v3 = vpop.f32.mrf.mxu1 }
 0x2d5   :  { %v3895_v44 = vpop.f32.mrf.mxu2  ;;  %v3909_v40 = vpop.f32.mrf.mxu3 }
 0x2d6   :  { %v9472_v41 = vpop.f32.mrf.mxu0  ;;  %v9474_v14 = vpop.f32.mrf.mxu1 }
 0x2dd   :  { %v9476_v51 = vpop.f32.mrf.mxu2  ;;  %v9478_v20 = vpop.f32.mrf.mxu3 }
 0x2de   :  { %v4053_v38 = vpop.f32.mrf.mxu0  ;;  %v4067_v24 = vpop.f32.mrf.mxu1 }
 0x2df   :  { %v4054_v48 = vadd.f32 %v4053_v38, %v3867_v17  ;;  %v4068_v58 = vadd.f32 %v4067_v24, %v3881_v3 }
 0x2e5   :  { %v4081_v31 = vpop.f32.mrf.mxu2  ;;  %v4095_v18 = vpop.f32.mrf.mxu3 }
 0x2e6   :  { %v9480_v46 = vpop.f32.mrf.mxu0  ;;  %v9482_v30 = vpop.f32.mrf.mxu1  ;;  %v4082_v2 = vadd.f32 %v4081_v31, %v3895_v44  ;;  %v4096_v60 = vadd.f32 %v4095_v18, %v3909_v40  ;;  %v8421_v44 = vld [vmem:[#allocation11 + $0x30] sm:$0xff]  ;;  %v8426_v18 = vld [vmem:[#allocation11 + $0x58] sm:$0xff] }
 0x2e7   :  { %5113 = vmatpush.bf16.msra.mxu0 %v8421_v44  ;;  %5224 = vmatpush.bf16.msra.mxu2 %v8426_v18 }
 0x2ed   :  { %v9484_v50 = vpop.f32.mrf.mxu2  ;;  %v9486_v15 = vpop.f32.mrf.mxu3 }
 0x2ee   :  { %v4280_v37 = vpop.f32.mrf.mxu0  ;;  %v4294_v59 = vpop.f32.mrf.mxu1 }
 0x2ef   :  { %v4327_v7 = vadd.f32 %v4280_v37, %v4054_v48  ;;  %v4328_v26 = vadd.f32 %v4294_v59, %v4068_v58  ;;  %v4056_v37 = vadd.f32 %v9480_v46, %v9472_v41  ;;  %v4070_v59 = vadd.f32 %v9482_v30, %v9474_v14  ;;  %v8420_v14 = vld [vmem:[#allocation11 + $0x28] sm:$0xff] }
 0x2f0   :  { %5114 = vmatpush.bf16.msra.mxu0 %v8420_v14 }
 0x2f5   :  { %v4308_v39 = vpop.f32.mrf.mxu2  ;;  %v4322_v16 = vpop.f32.mrf.mxu3 }
 0x2f6   :  { %v9488_v56 = vpop.f32.mrf.mxu0  ;;  %v9490_v0 = vpop.f32.mrf.mxu1  ;;  %v4329_v11 = vadd.f32 %v4308_v39, %v4082_v2  ;;  %v4330_v35 = vadd.f32 %v4322_v16, %v4096_v60  ;;  %v4084_v39 = vadd.f32 %v9484_v50, %v9476_v51  ;;  %v4098_v16 = vadd.f32 %v9486_v15, %v9478_v20  ;;  %v8482_v50 = vld [vmem:[#allocation9] ss:$0 sm:$0xff]  ;;  %v8425_v15 = vld [vmem:[#allocation11 + $0x50] sm:$0xff] }
 0x2f7   :  { %v4332_v41 = vadd.f32 %v9490_v0, %v4070_v59  ;;  %5225 = vmatpush.bf16.msra.mxu2 %v8425_v15 }
 0x2fd   :  { %v9492_v47 = vpop.f32.mrf.mxu2  ;;  %v9494_v9 = vpop.f32.mrf.mxu3 }
 0x2fe   :  { %v4333_v46 = vadd.f32 %v9492_v47, %v4084_v39  ;;  %v4334_v51 = vadd.f32 %v9494_v9, %v4098_v16 }
 0x2ff   :  { %v4515_v19 = vpop.f32.mrf.mxu0  ;;  %v4529_v62 = vpop.f32.mrf.mxu1 }
 0x300   :  { %v4562_v13 = vadd.f32 %v4515_v19, %v4327_v7  ;;  %v4563_v17 = vadd.f32 %v4529_v62, %v4328_v26 }
 0x307   :  { %v9496_v52 = vpop.f32.mrf.mxu0  ;;  %v9498_v45 = vpop.f32.mrf.mxu1 }
 0x308   :  { %v4543_v42 = vpop.f32.mrf.mxu2  ;;  %v4557_v6 = vpop.f32.mrf.mxu3  ;;  %v4567_v12 = vadd.f32 %v9498_v45, %v4332_v41  ;;  %v8438_v45 = vld [vmem:[#allocation11 + $0xb8] sm:$0xff] }
 0x309   :  { %v4564_v38 = vadd.f32 %v4543_v42, %v4329_v11  ;;  %v4565_v1 = vadd.f32 %v4557_v6, %v4330_v35  ;;  %v8433_v42 = vld [vmem:[#allocation11 + $0x90] sm:$0xff] }
 0x30a   :  { %5304 = vmatpush.bf16.msrb.mxu3 %v8433_v42 }
 0x310   :  { %v9500_v23 = vpop.f32.mrf.mxu2  ;;  %v9502_v8 = vpop.f32.mrf.mxu3 }
 0x311   :  { %v4568_v0 = vadd.f32 %v9500_v23, %v4333_v46  ;;  %v4569_v34 = vadd.f32 %v9502_v8, %v4334_v51  ;;  %v8431_v8 = vld [vmem:[#allocation11 + $0x80] sm:$0xff] }
 0x317   :  { %v4735_v55 = vpop.f32.mrf.mxu0  ;;  %v4749_v10 = vpop.f32.mrf.mxu1 }
 0x318   :  { %v4782_v3 = vadd.f32 %v4735_v55, %v4562_v13  ;;  %v4783_v40 = vadd.f32 %v4749_v10, %v4563_v17  ;;  %v8435_v17 = vld [vmem:[#allocation11 + $0xa0] sm:$0xff] }
 0x31f   :  { %v9506_v43 = vpop.f32.mrf.mxu0  ;;  %v9508_v32 = vpop.f32.mrf.mxu1 }
 0x320   :  { %v4763_v63 = vpop.f32.mrf.mxu2  ;;  %v4777_v53 = vpop.f32.mrf.mxu3  ;;  %v4787_v29 = vadd.f32 %v9508_v32, %v4567_v12 }
 0x321   :  { %v4784_v24 = vadd.f32 %v4763_v63, %v4564_v38  ;;  %v4785_v31 = vadd.f32 %v4777_v53, %v4565_v1  ;;  %v4331_v63 = vadd.f32 %v9488_v56, %v4056_v37  ;;  %v8439_v53 = vld [vmem:[#allocation11 + $0xc0] sm:$0xff]  ;;  %v8432_v56 = vld [vmem:[#allocation11 + $0x88] sm:$0xff]  ;;  %v5234_v38 = vld [vmem:[#allocation3 + $0x8] sm:$0x3]  ;;  %v5060_v1 = vpack.c.b16 %v5058_v5, %v5058_v5 }
 0x322   :  { %5371 = vmatpush.bf16.msrb.mxu0 %v8439_v53  ;;  %5305 = vmatpush.bf16.msrb.mxu3 %v8432_v56 }
 0x323   :  { %v4566_v36 = vadd.f32 %v9496_v52, %v4331_v63  ;;  %v5183_v39 = vrot.slane %v5060_v1, 1 }
 0x325   :  { %v4786_v9 = vadd.f32 %v9506_v43, %v4566_v36 }
 0x326   :  { %5372 = vmatpush.bf16.msrb.mxu0 %v8438_v45  ;;  %5306 = vmatpush.bf16.msrb.mxu3 %v8431_v8  ;;  %v8444_v45 = vld [vmem:[#allocation14 + $0x20] sm:$0xff]  ;;  %v8441_v8 = vld [vmem:[#allocation14 + $0x8] sm:$0xff] }
 0x328   :  { %v9510_v28 = vpop.f32.mrf.mxu2  ;;  %v9512_v54 = vpop.f32.mrf.mxu3 }
 0x329   :  { %v4788_v57 = vadd.f32 %v9510_v28, %v4568_v0  ;;  %v4789_v52 = vadd.f32 %v9512_v54, %v4569_v34  ;;  %v8437_v28 = vld [vmem:[#allocation11 + $0xb0] sm:$0xff]  ;;  %v8430_v54 = vld [vmem:[#allocation11 + $0x78] sm:$0xff] }
 0x32a   :  { %5373 = vmatpush.bf16.msrb.mxu0 %v8437_v28  ;;  %5307 = vmatpush.bf16.msrb.mxu3 %v8430_v54  ;;  %v8451_v54 = vld [vmem:[#allocation17 + $0x20] sm:$0xff] }
 0x32e   :  { %5374 = vmatpush.bf16.msrb.mxu0 %v8436_v27 }
 0x32f   :  { %v4954_v33 = vpop.f32.mrf.mxu0  ;;  %v4968_v4 = vpop.f32.mrf.mxu1 }
 0x330   :  { %v5001_v6 = vadd.f32 %v4954_v33, %v4782_v3  ;;  %v5002_v55 = vadd.f32 %v4968_v4, %v4783_v40  ;;  %v5247_v3 = vunpack.c.l.b16 %v5234_v38  ;;  %v5069_v40 = vshll.u32 %v5060_v1, 16 }
 0x332   :  { %5375 = vmatpush.bf16.msrb.mxu0 %v8435_v17  ;;  %v5071_v42 = vrot.slane %v5069_v40, 1 }
 0x336   :  { %v4982_v19 = vpop.f32.mrf.mxu2  ;;  %v4996_v62 = vpop.f32.mrf.mxu3 }
 0x337   :  { %v5003_v10 = vadd.f32 %v4982_v19, %v4784_v24  ;;  %v5004_v49 = vadd.f32 %v4996_v62, %v4785_v31  ;;  %v4956_v47 = vpop.f32.mrf.mxu0  ;;  %v4970_v61 = vpop.f32.mrf.mxu1  ;;  %v5248_v31 = vpack.c.b16 %v5247_v3, %v5247_v3  ;;  %v8483_v3 = vld [vmem:[#allocation12] ss:$0 sm:$0xff] }
 0x338   :  { %v5005_v58 = vadd.f32 %v4956_v47, %v4786_v9  ;;  %v5006_v7 = vadd.f32 %v4970_v61, %v4787_v29  ;;  %v5407_v9 = vld [vmem:[#allocation14 + $0x38] sm:$0xf] }
 0x339   :  { %v5009_v30 = vmax.f32 %v5001_v6, %v5003_v10  ;;  %v5010_v20 = vmax.f32 %v5002_v55, %v5004_v49  ;;  %v5259_v6 = vshrl.u32 %v5248_v31, 16  ;;  %v5262_v55 = vshll.u32 %v5248_v31, 16 }
 0x33a   :  { %v5441_v29 = vunpack.c.l.b16 %v5407_v9 }
 0x33b   :  { %v5013_v21 = vmax.f32 %v5009_v30, %v5010_v20  ;;  %v5261_v20 = vrot.slane %v5259_v6, 1  ;;  %v8447_v6 = vld [vmem:[#allocation17] sm:$0xff] }
 0x33c   :  { %v5449_v61 = vpack.c.b16 %v5441_v29, %v5441_v29 }
 0x33d   :  { %v5019_v48 = vadd.f32 %v8482_v50, %v5013_v21  ;;  %v5333_v21 = vrot.slane %v5248_v31, 2 }
 0x33e   :  { %v4984_v23 = vpop.f32.mrf.mxu2  ;;  %v4998_v2 = vpop.f32.mrf.mxu3 }
 0x33f   :  { %v5021_v60 = vmax.f32 %v5019_v48, 0.0  ;;  %v5007_v43 = vadd.f32 %v4984_v23, %v4788_v57  ;;  %v5008_v25 = vadd.f32 %v4998_v2, %v4789_v52  ;;  %v5463_v57 = vsel %vm5461_vm10, %v5449_v61, 0  ;;  %v8446_v52 = vld [vmem:[#allocation14 + $0x30] sm:$0xff]  ;;  %v8445_v48 = vld [vmem:[#allocation14 + $0x28] sm:$0xff] }
 0x340   :  { %5465 = vmatpush.bf16.msra.mxu1 %v5463_v57  ;;  %v8442_v23 = vld [vmem:[#allocation14 + $0x10] sm:$0xff] }
 0x341   :  { %v5023_v32 = vpack.c.bf16 %v5021_v60, %v5021_v60  ;;  %v5011_v26 = vmax.f32 %v5005_v58, %v5007_v43  ;;  %v5012_v11 = vmax.f32 %v5006_v7, %v5008_v25  ;;  %v8443_v58 = vld [vmem:[#allocation14 + $0x18] sm:$0xff]  ;;  %v8440_v7 = vld [vmem:[#allocation14] sm:$0xff] }
 0x342   :  { %v5492_v43 = vld [vmem:[#allocation17 + $0x28] sm:$0x3] }
 0x343   :  { %5026 = vst.msk [vmem:[#allocation3] sm:$0xf] %vm5025_vm6, %v5023_v32  ;;  %v5014_v35 = vmax.f32 %v5011_v26, %v5012_v11  ;;  %v5518_v25 = vunpack.c.l.b16 %v5492_v43 }
 0x344   :  { %5466 = vmatpush.bf16.msra.mxu1 %v8446_v52 }
 0x345   :  { %v5020_v33 = vadd.f32 %v8482_v50, %v5014_v35  ;;  %v5264_v50 = vrot.slane %v5262_v55, 2  ;;  %v5524_v32 = vpack.c.b16 %v5518_v25, %v5518_v25 }
 0x347   :  { %v5022_v13 = vmax.f32 %v5020_v33, 0.0  ;;  %v5265_v36 = vor.u32 %v5264_v50, %v5261_v20  ;;  %v5534_v11 = vsel %vm3845_vm2, %v5524_v32, 0 }
 0x348   :  { %5467 = vmatpush.bf16.msra.mxu1 %v8445_v48  ;;  %5538 = vmatpush.bf16.msrb.mxu2 %v5534_v11 }
 0x349   :  { %v5024_v4 = vpack.c.bf16 %v5022_v13, %v5022_v13 }
 0x34a   :  { %v5167_v44 = vld [vmem:[#allocation3] sm:$0xe] }
 0x34b   :  { %5027 = vst.msk [vmem:[#allocation3 + $0x4] sm:$0xf] %vm5025_vm6, %v5024_v4  ;;  %v5180_v59 = vunpack.c.l.b16 %v5167_v44  ;;  %v5316_v15 = vld [vmem:[#allocation3] sm:$0xc] }
 0x34c   :  { %v5329_v12 = vunpack.c.l.b16 %v5316_v15  ;;  %5468 = vmatpush.bf16.msra.mxu1 %v8444_v45  ;;  %5539 = vmatpush.bf16.msrb.mxu2 %v8451_v54 }
 0x350   :  { %5469 = vmatpush.bf16.msra.mxu1 %v8443_v58 }
 0x352   :  { %v8457_v24 = vld [vmem:[#allocation3] sm:$0xff]  }
 0x353   :  { %v8459_v18 = vunpack.c.h.b16 %v8457_v24  ;;  %v5064_v37 = vshll.u32 %v8457_v24, 16  ;;  %7787 = vmatmul.msk.bf16.vlgmr.msra.gmra.mxu3 %vm5103_vm7, %v8457_v24  ;;  %v5062_v16 = vshrl.u32 %v8457_v24, 16 }
 0x354   :  { %5470 = vmatpush.bf16.msra.mxu1 %v8442_v23 }
 0x355   :  { %v5066_v19 = vrot.slane %v5064_v37, 1  ;;  %v5181_v62 = vpack.c.b16 %v8459_v18, %v5180_v59  ;;  %v5330_v56 = vpack.c.b16 %v8459_v18, %v5329_v12 }
 0x357   :  { %v5067_v10 = vor.u32 %v5066_v19, %v5062_v16  ;;  %v5182_v49 = vrot.slane %v5181_v62, 1  ;;  %v5251_v63 = vshrl.u32 %v5181_v62, 16  ;;  %v5254_v41 = vshll.u32 %v5181_v62, 16  ;;  %v8450_v19 = vld [vmem:[#allocation17 + $0x18] sm:$0xff]  ;;  %v8449_v62 = vld [vmem:[#allocation17 + $0x10] sm:$0xff] }
 0x358   :  { %v5332_v34 = vrot.slane %v5330_v56, 2  ;;  %5471 = vmatpush.bf16.msra.mxu1 %v8441_v8  ;;  %5540 = vmatpush.bf16.msrb.mxu2 %v8450_v19 }
 0x359   :  { %v5072_v14 = vsel %vm1924_vm1, %v5067_v10, %v5071_v42  ;;  %v5184_v46 = vsel %vm4597_vm5, %v5182_v49, %v5183_v39  ;;  %v5253_v51 = vrot.slane %v5251_v63, 1  ;;  %v5256_v30 = vrot.slane %v5254_v41, 2  ;;  %v8448_v42 = vld [vmem:[#allocation17 + $0x8] sm:$0xff]  ;;  %v8484_v10 = vld [vmem:[#allocation15] ss:$0 sm:$0xff] }
 0x35a   :  { %7766 = vmatmul.msk.bf16.vlgmr.msra.gmra.mxu0 %vm5103_vm7, %v5072_v14  ;;  %7808 = vmatmul.msk.bf16.vlgmr.msra.gmra.mxu2 %vm5103_vm7, %v5184_v46  ;;  %v5334_v47 = vsel %vm5331_vm9, %v5332_v34, %v5333_v21 }
 0x35b   :  { %v5257_v53 = vor.u32 %v5256_v30, %v5253_v51  ;;  %v8485_v30 = vld [vmem:[#allocation18] ss:$0 sm:$0xff] }
 0x35c   :  { %5472 = vmatpush.bf16.msra.mxu1 %v8440_v7  ;;  %5541 = vmatpush.bf16.msrb.mxu2 %v8449_v62 }
 0x35d   :  { %v5266_v0 = vsel %vm5249_vm8, %v5257_v53, %v5265_v36 }
 0x360   :  { %5542 = vmatpush.bf16.msrb.mxu2 %v8448_v42 }
 0x363   :  { %7829 = vmatmul.msk.bf16.vlgmr.msrb.gmra.mxu3 %vm5103_vm7, %v5266_v0 }
 0x364   :  { %5543 = vmatpush.bf16.msrb.mxu2 %v8447_v6 }
 0x36a   :  { %7850 = vmatmul.msk.bf16.vlgmr.msrb.gmra.mxu0 %vm5103_vm7, %v5334_v47 }
 0x3d6   :  { %v5162_v2 = vpop.f32.mrf.mxu3 }
 0x3d7   :  { %v5116_v60 = vpop.f32.mrf.mxu0 }
 0x3d8   :  { %v5163_v33 = vadd.f32 %v5162_v2, %v5116_v60 }
 0x3dd   :  { %v5227_v35 = vpop.f32.mrf.mxu2 }
 0x3de   :  { %v5164_v26 = vpop.f32.mrf.mxu3  ;;  %v5232_v22 = vadd.f32 %v5227_v35, %v5163_v33 }
 0x3df   :  { %v5118_v28 = vpop.f32.mrf.mxu0 }
 0x3e0   :  { %v5165_v17 = vadd.f32 %v5164_v26, %v5118_v28 }
 0x3e5   :  { %v5229_v5 = vpop.f32.mrf.mxu2 }
 0x3e6   :  { %v5309_v27 = vpop.f32.mrf.mxu3  ;;  %v5233_v38 = vadd.f32 %v5229_v5, %v5165_v17 }
 0x3e7   :  { %v5377_v13 = vpop.f32.mrf.mxu0  ;;  %v5314_v4 = vadd.f32 %v5309_v27, %v5232_v22 }
 0x3e9   :  { %v5382_v1 = vadd.f32 %v5377_v13, %v5314_v4 }
 0x3eb   :  { %v5388_v31 = vadd.f32 %v8483_v3, %v5382_v1 }
 0x3ed   :  { %v5390_v59 = vmax.f32 %v5388_v31, 0.0 }
 0x3ee   :  { %v5311_v44 = vpop.f32.mrf.mxu3 }
 0x3ef   :  { %v5315_v40 = vadd.f32 %v5311_v44, %v5233_v38  ;;  %v5379_v24 = vpop.f32.mrf.mxu0 }
 0x3f1   :  { %v5383_v18 = vadd.f32 %v5379_v24, %v5315_v40 }
 0x3f3   :  { %v5389_v37 = vadd.f32 %v8483_v3, %v5383_v18 }
 0x3f5   :  { %v5391_v39 = vmax.f32 %v5389_v37, 0.0 }
 0x3f7   :  { %v5392_v16 = vpack.c.bf16 %v5391_v39, %v5390_v59 }
 0x3f9   :  { %7879 = vmatmul.msk.bf16.vlgmr.msra.gmra.mxu1 %vm5457_vm11, %v5392_v16 }
 0x476   :  { %v5474_v55 = vpop.f32.mrf.mxu1 }
 0x477   :  { %v5475_v49 = vadd.f32 %v8484_v10, %v5474_v55 }
 0x479   :  { %v5479_v14 = vmax.f32 %v5475_v49, 0.0 }
 0x47e   :  { %v5476_v63 = vpop.f32.mrf.mxu1 }
 0x47f   :  { %v5477_v41 = vadd.f32 %v8484_v10, %v5476_v63 }
 0x481   :  { %v5480_v46 = vmax.f32 %v5477_v41, 0.0 }
 0x483   :  { %v5481_v51 = vpack.c.bf16 %v5480_v46, %v5479_v14 }
 0x485   :  { %7900 = vmatmul.msk.bf16.vlgmr.msrb.gmra.mxu2 %vm3841_vm4, %v5481_v51 }
 0x508   :  { %v5545_v20 = vpop.f32.mrf.mxu2 }
 0x509   :  { %v5546_v50 = vadd.f32 %v8485_v30, %v5545_v20 }
 0x50b   :  { %v5551_v15 = vsel %vm5550_vm12, %v5546_v50, -inf }
 0x50c   :  { %5552 = vmax.xlane.f32.xlu0 %v5551_v15 }
 0x510   :  { %v5547_v53 = vpop.f32.mrf.mxu2 }
 0x511   :  { %v5548_v36 = vadd.f32 %v8485_v30, %v5547_v53 }
 0x513   :  { %v5554_v12 = vsel %vm5550_vm12, %v5548_v36, -inf }
 0x514   :  { %5555 = vmax.xlane.f32.xlu0 %v5554_v12 }
 0x57f   :  { %v5553_v56 = vpop.xlane.xlu0 %5552 }
 0x580   :  { %v5557_v0 = vsub.f32 %v5546_v50, %v5553_v56 }
 0x582   :  { %v5559_v34 = vmul.f32 1.442695, %v5557_v0 }
 0x584   :  { %8486 = vpow2.f32 %v5559_v34 }
 0x587   :  { %v5556_v21 = vpop.xlane.xlu0 %5555 }
 0x588   :  { %v5558_v47 = vsub.f32 %v5548_v36, %v5556_v21 }
 0x58a   :  { %v8487_v9 = vpop.eup %8486  ;;  %v5561_v29 = vmul.f32 1.442695, %v5558_v47 }
 0x58b   :  { %v5563_v61 = vsel %vm5550_vm12, %v8487_v9, 0.0 }
 0x58c   :  { %8488 = vpow2.f32 %v5561_v29  ;;  %5564 = vadd.xlane.f32.xlu1 %v5563_v61 }
 0x592   :  { %v8489_v57 = vpop.eup %8488 }
 0x593   :  { %v5566_v52 = vsel %vm5550_vm12, %v8489_v57, 0.0 }
 0x594   :  { %5567 = vadd.xlane.f32.xlu1 %v5566_v52 }
 0x5ff   :  { %v5565_v48 = vpop.xlane.xlu1 %5564 }
 0x600   :  { %8490 = vlog2.f32 %v5565_v48 }
 0x606   :  { %v8491_v45 = vpop.eup %8490 }
 0x607   :  { %v5570_v58 = vmul.f32 0.6931472, %v8491_v45  ;;  %v5568_v23 = vpop.xlane.xlu1 %5567 }
 0x608   :  { %8492 = vlog2.f32 %v5568_v23 }
 0x609   :  { %v5573_v2 = vsub.f32 %v5557_v0, %v5570_v58 }
 0x60b   :  { %5575 = vst.msk [vmem:[%s9568_s11] sm:$0xff] %vm5550_vm12, %v5573_v2 }
 0x60e   :  { %v8493_v8 = vpop.eup %8492 }
 0x60f   :  { %v5572_v60 = vmul.f32 0.6931472, %v8493_v8 }
 0x611   :  { %v5574_v7 = vsub.f32 %v5558_v47, %v5572_v60 }
 0x613   :  { %5576 = vst.msk [vmem:[%s9568_s11 + $0x8] sm:$0xff] %vm5550_vm12, %v5574_v7 }
 0x614   :  { %5581 = vsyncpa [#allocation5], 1 }
 0x615   :  { %5582 = vsyncpa [#allocation7], 1 }
 0x616   :  { %5583 = vsyncpa [#allocation10], 1 }
 0x617   :  { %5584 = vsyncpa [#allocation13], 1 }
 0x618   :  { %5585 = vsyncpa [#allocation16], 1 }
 0x619   :  { %5586 = vsyncpa [#allocation19], 1 }

</bundles_post_ra>
